<compile_context>
chip_gen: v7x
topology: tpu7x:2x2x1
jax: 0.10.0
libtpu: 0.0.40
codegen_flags: <defaults>
</compile_context>

<pallas_src>
import functools

import jax
import jax.numpy as jnp
from jax import lax
from jax.experimental import pallas as pl
from jax.experimental.pallas import tpu as pltpu

EPS = 1e-5                      # nn.BatchNorm3d default
TM = 512                        # lane tile (multiple of 128)
MM_DTYPE = jnp.float32          # set to jnp.bfloat16 on v6e/v7x for ~2x HBM/MXU path
_VMEM_LIMIT = 64 * 1024 * 1024  # explicit scoped-VMEM cap (tiles are far below it)


# ----------------------------------------------------------------------------- kernels
def _matmul_stats_kernel(x_ref, w_ref, y_ref, sum_ref, ssq_ref):
    """y = W @ x for one M-tile; accumulate per-row sum / sum-of-squares."""
    i = pl.program_id(0)

    @pl.when(i == 0)
    def _init():
        sum_ref[...] = jnp.zeros_like(sum_ref)
        ssq_ref[...] = jnp.zeros_like(ssq_ref)

    y = jnp.dot(w_ref[...], x_ref[...], preferred_element_type=jnp.float32)
    y_ref[...] = y
    sum_ref[...] += jnp.sum(y, axis=-1, keepdims=True)
    ssq_ref[...] += jnp.sum(y * y, axis=-1, keepdims=True)


def _bn_relu_matmul_stats_kernel(yprev_ref, scale_ref, shift_ref, w_ref,
                                 y_ref, sum_ref, ssq_ref,
                                 *, needs_mask, m_real, tm):
    """a = relu(y_prev*scale + shift);  y = W @ a;  accumulate sum / sumsq of y."""
    i = pl.program_id(0)

    @pl.when(i == 0)
    def _init():
        sum_ref[...] = jnp.zeros_like(sum_ref)
        ssq_ref[...] = jnp.zeros_like(ssq_ref)

    a = jnp.maximum(yprev_ref[...] * scale_ref[...] + shift_ref[...], 0.0)
    if needs_mask:  # static: only compiled when M was padded up to a tile multiple
        col = i * tm + lax.broadcasted_iota(jnp.int32, a.shape, 1)
        a = jnp.where(col < m_real, a, 0.0)
    y = jnp.dot(w_ref[...], a.astype(MM_DTYPE), preferred_element_type=jnp.float32)
    y_ref[...] = y
    sum_ref[...] += jnp.sum(y, axis=-1, keepdims=True)
    ssq_ref[...] += jnp.sum(y * y, axis=-1, keepdims=True)


def _bn_relu_kernel(y_ref, scale_ref, shift_ref, o_ref):
    o_ref[...] = jnp.maximum(y_ref[...] * scale_ref[...] + shift_ref[...], 0.0)


# ---------------------------------------------------------------------- pallas wrappers
def _compiler_params(parallel):
    return pltpu.CompilerParams(
        dimension_semantics=("parallel",) if parallel else ("arbitrary",),
        vmem_limit_bytes=_VMEM_LIMIT)


def _call_matmul_stats(x2d, wmat, tm):
    crows, cinp = wmat.shape
    mpad = x2d.shape[1]
    nt = mpad // tm
    return pl.pallas_call(
        _matmul_stats_kernel,
        out_shape=(
            jax.ShapeDtypeStruct((crows, mpad), jnp.float32),
            jax.ShapeDtypeStruct((crows, 1), jnp.float32),
            jax.ShapeDtypeStruct((crows, 1), jnp.float32),
        ),
        grid=(nt,),
        in_specs=[
            pl.BlockSpec((cinp, tm), lambda i: (0, i)),
            pl.BlockSpec((crows, cinp), lambda i: (0, 0)),
        ],
        out_specs=(
            pl.BlockSpec((crows, tm), lambda i: (0, i)),
            pl.BlockSpec((crows, 1), lambda i: (0, 0)),
            pl.BlockSpec((crows, 1), lambda i: (0, 0)),
        ),
        compiler_params=_compiler_params(parallel=False),
    )(x2d, wmat)


def _call_bn_relu_matmul_stats(yprev, scale, shift, wmat, tm, m_real):
    crows, cprev = wmat.shape
    mpad = yprev.shape[1]
    nt = mpad // tm
    kern = functools.partial(_bn_relu_matmul_stats_kernel,
                             needs_mask=(mpad != m_real), m_real=m_real, tm=tm)
    return pl.pallas_call(
        kern,
        out_shape=(
            jax.ShapeDtypeStruct((crows, mpad), jnp.float32),
            jax.ShapeDtypeStruct((crows, 1), jnp.float32),
            jax.ShapeDtypeStruct((crows, 1), jnp.float32),
        ),
        grid=(nt,),
        in_specs=[
            pl.BlockSpec((cprev, tm), lambda i: (0, i)),
            pl.BlockSpec((cprev, 1), lambda i: (0, 0)),
            pl.BlockSpec((cprev, 1), lambda i: (0, 0)),
            pl.BlockSpec((crows, cprev), lambda i: (0, 0)),
        ],
        out_specs=(
            pl.BlockSpec((crows, tm), lambda i: (0, i)),
            pl.BlockSpec((crows, 1), lambda i: (0, 0)),
            pl.BlockSpec((crows, 1), lambda i: (0, 0)),
        ),
        compiler_params=_compiler_params(parallel=False),
    )(yprev, scale, shift, wmat)


def _call_bn_relu(y, scale, shift, tm):
    crows, mpad = y.shape
    nt = mpad // tm
    return pl.pallas_call(
        _bn_relu_kernel,
        out_shape=jax.ShapeDtypeStruct((crows, mpad), jnp.float32),
        grid=(nt,),
        in_specs=[
            pl.BlockSpec((crows, tm), lambda i: (0, i)),
            pl.BlockSpec((crows, 1), lambda i: (0, 0)),
            pl.BlockSpec((crows, 1), lambda i: (0, 0)),
        ],
        out_specs=pl.BlockSpec((crows, tm), lambda i: (0, i)),
        compiler_params=_compiler_params(parallel=True),
    )(y, scale, shift)


# ----------------------------------------------------------------------------- forward
def _pad8(c):
    return ((c + 7) // 8) * 8


def _bn_scale_shift(sum_, ssq, gamma, beta, n_groups, gpad, c_real, count):
    """Fold training-mode BN (biased var, eps=1e-5) + affine into per-row scale/shift."""
    # TODO(synk): for very large counts a two-pass mean-then-variance scheme is
    # numerically safer than E[x^2] - E[x]^2; fine at these sizes in f32.
    s = sum_.reshape(n_groups, gpad).sum(axis=0)
    q = ssq.reshape(n_groups, gpad).sum(axis=0)
    mean = s / count
    var = jnp.maximum(q / count - mean * mean, 0.0)          # biased variance
    g = jnp.zeros((gpad,), jnp.float32).at[:c_real].set(gamma.astype(jnp.float32))
    b = jnp.zeros((gpad,), jnp.float32).at[:c_real].set(beta.astype(jnp.float32))
    scale = g * lax.rsqrt(var + EPS)
    shift = b - mean * scale
    scale = jnp.tile(scale, (n_groups,)).reshape(n_groups * gpad, 1)
    shift = jnp.tile(shift, (n_groups,)).reshape(n_groups * gpad, 1)
    return scale, shift


def linknet_up_3d(x, w1, b1, g1, be1, w2, b2, g2, be2, w3, b3, g3, be3):
    """linknetUp3D forward.  x: (N, Cin, D, H, W) float32.
    Conv/deconv biases cancel exactly under training-mode BatchNorm, so the fused
    kernels do not consume them (they are accepted for API fidelity)."""
    del b1, b2, b3
    n, cin, dd, hh, ww = x.shape
    cmid = w1.shape[0]
    cout = w3.shape[0]

    cin_p = _pad8(cin)
    g1p = _pad8(cmid)            # stage-1 output rows
    g2p = _pad8(cmid)            # per-offset row group of the deconv output
    g3p = _pad8(cout)            # per-offset row group of the stage-3 output

    tm = TM
    m = n * dd * hh * ww
    mpad = ((m + tm - 1) // tm) * tm

    # ---- channel-major, zero-padded operands ---------------------------------
    x2 = jnp.transpose(x, (1, 0, 2, 3, 4)).reshape(cin, m).astype(MM_DTYPE)
    x2 = jnp.pad(x2, ((0, cin_p - cin), (0, mpad - m)))

    w1m = jnp.zeros((g1p, cin_p), MM_DTYPE).at[:cmid, :cin].set(
        w1.reshape(cmid, cin).astype(MM_DTYPE))

    # ConvTranspose3d(k=2, s=2, p=0): weight (Cin, Cout, 2, 2, 2); offset o=(a,b,c)
    # contributes W[ci, co, a, b, c] to output voxel (2d+a, 2h+b, 2w+c); since
    # stride == kernel there is no overlap -> 8 stacked channel matmuls.
    w2t = jnp.transpose(w2, (2, 3, 4, 1, 0)).reshape(8, cmid, cmid)     # (o, co, ci)
    w2m = (jnp.zeros((8, g2p, g1p), MM_DTYPE)
           .at[:, :cmid, :cmid].set(w2t.astype(MM_DTYPE))
           .reshape(8 * g2p, g1p))

    # Stage-3 1x1x1 conv acts per voxel -> block-diagonal over the 8 offset groups.
    w3p = jnp.zeros((g3p, g2p), MM_DTYPE).at[:cout, :cmid].set(
        w3.reshape(cout, cmid).astype(MM_DTYPE))
    w3m = jnp.einsum("pq,cd->pcqd", jnp.eye(8, dtype=MM_DTYPE), w3p
                     ).reshape(8 * g3p, 8 * g2p)

    # ---- stage 1: 1x1x1 conv (+ BN stats) ------------------------------------
    y1, s1, q1 = _call_matmul_stats(x2, w1m, tm)
    sc1, sh1 = _bn_scale_shift(s1, q1, g1, be1, 1, g1p, cmid, float(m))

    # ---- stage 2: BN+ReLU of stage 1 fused with deconv matmul (+ stats) ------
    y2, s2, q2 = _call_bn_relu_matmul_stats(y1, sc1, sh1, w2m, tm, m)
    sc2, sh2 = _bn_scale_shift(s2, q2, g2, be2, 8, g2p, cmid, float(8 * m))

    # ---- stage 3: BN+ReLU of stage 2 fused with 1x1x1 conv (+ stats) ---------
    y3, s3, q3 = _call_bn_relu_matmul_stats(y2, sc2, sh2, w3m, tm, m)
    sc3, sh3 = _bn_scale_shift(s3, q3, g3, be3, 8, g3p, cout, float(8 * m))

    # ---- final BN + ReLU (apply-only, "parallel" grid) ------------------------
    a3 = _call_bn_relu(y3, sc3, sh3, tm)

    # ---- unscramble (pure indexing glue): rows = (offset, channel), lanes = (n,d,h,w)
    a3 = a3[:, :m].reshape(8, g3p, n, dd, hh, ww)[:, :cout]
    a3 = a3.reshape(2, 2, 2, cout, n, dd, hh, ww)
    out = jnp.transpose(a3, (4, 3, 5, 0, 6, 1, 7, 2))        # (n, co, d, a, h, b, w, c)
    return out.reshape(n, cout, 2 * dd, 2 * hh, 2 * ww)


# ----------------------------------------------------------------------------- reference
def _bn_relu_ref(y, gamma, beta):
    mean = jnp.mean(y, axis=(0, 2, 3, 4), keepdims=True)
    var = jnp.mean((y - mean) ** 2, axis=(0, 2, 3, 4), keepdims=True)
    z = (y - mean) * lax.rsqrt(var + EPS)
    z = z * gamma.reshape(1, -1, 1, 1, 1) + beta.reshape(1, -1, 1, 1, 1)
    return jnp.maximum(z, 0.0)


def _reference(x, w1, b1, g1, be1, w2, b2, g2, be2, w3, b3, g3, be3):
    n, cin, dd, hh, ww = x.shape
    cmid = w1.shape[0]
    cout = w3.shape[0]
    # conv3DBatchNormRelu(in_channels, n_filters/2, k=1, s=1, p=0)
    y = jnp.einsum("nidhw,oi->nodhw", x, w1.reshape(cmid, cin))
    y = _bn_relu_ref(y + b1.reshape(1, -1, 1, 1, 1), g1, be1)
    # deconv3DBatchNormRelu(k=2, s=2, p=0): out[n,co,2d+a,2h+b,2w+c] = sum_ci x*W[ci,co,a,b,c]
    y = jnp.einsum("nidhw,ioabc->nodahbwc", y, w2)
    y = y.reshape(n, cmid, 2 * dd, 2 * hh, 2 * ww) + b2.reshape(1, -1, 1, 1, 1)
    y = _bn_relu_ref(y, g2, be2)
    # conv3DBatchNormRelu(n_filters/2, n_filters, k=1, s=1, p=0)
    y = jnp.einsum("nidhw,oi->nodhw", y, w3.reshape(cout, cmid))
    y = _bn_relu_ref(y + b3.reshape(1, -1, 1, 1, 1), g3, be3)
    return y


if __name__ == "__main__":
    key = jax.random.PRNGKey(0)
    ks = jax.random.split(key, 13)

    # linknetUp3D(in_channels=8, n_filters=8)  ->  Cmid = 4, Cout = 8
    N, Cin, D, H, W = 2, 8, 16, 16, 16
    n_filters = 8
    Cmid, Cout = n_filters // 2, n_filters

    x = jax.random.normal(ks[0], (N, Cin, D, H, W), jnp.float32)

    w1 = 0.3 * jax.random.normal(ks[1], (Cmid, Cin, 1, 1, 1), jnp.float32)
    b1 = 0.1 * jax.random.normal(ks[2], (Cmid,), jnp.float32)
    g1 = 1.0 + 0.1 * jax.random.normal(ks[3], (Cmid,), jnp.float32)
    be1 = 0.1 * jax.random.normal(ks[4], (Cmid,), jnp.float32)

    w2 = 0.3 * jax.random.normal(ks[5], (Cmid, Cmid, 2, 2, 2), jnp.float32)
    b2 = 0.1 * jax.random.normal(ks[6], (Cmid,), jnp.float32)
    g2 = 1.0 + 0.1 * jax.random.normal(ks[7], (Cmid,), jnp.float32)
    be2 = 0.1 * jax.random.normal(ks[8], (Cmid,), jnp.float32)

    w3 = 0.3 * jax.random.normal(ks[9], (Cout, Cmid, 1, 1, 1), jnp.float32)
    b3 = 0.1 * jax.random.normal(ks[10], (Cout,), jnp.float32)
    g3 = 1.0 + 0.1 * jax.random.normal(ks[11], (Cout,), jnp.float32)
    be3 = 0.1 * jax.random.normal(ks[12], (Cout,), jnp.float32)

    args = (x, w1, b1, g1, be1, w2, b2, g2, be2, w3, b3, g3, be3)

    out = jax.block_until_ready(jax.jit(linknet_up_3d)(*args))
    ref = jax.block_until_ready(_reference(*args))

    assert out.shape == (N, Cout, 2 * D, 2 * H, 2 * W), out.shape
    max_err = float(jnp.max(jnp.abs(out - ref)))
    assert jnp.allclose(out, ref, rtol=2e-3, atol=2e-3), max_err
    print("KERNEL_OK")
</pallas_src>

<mosaic_0001>
module attributes {stable_mosaic.version = 11 : i64} {
  func.func @_matmul_stats_kernel(%arg0: i32, %arg1: memref<8x512xf32, #tpu.memory_space<vmem>>, %arg2: memref<8x8xf32, #tpu.memory_space<vmem>>, %arg3: memref<8x512xf32, #tpu.memory_space<vmem>>, %arg4: memref<8x1xf32, #tpu.memory_space<vmem>>, %arg5: memref<8x1xf32, #tpu.memory_space<vmem>>) attributes {dimension_semantics = [#tpu.dimension_semantics<arbitrary>], iteration_bounds = array<i64: 16>, scalar_prefetch = 0 : i64, scratch_operands = 0 : i64, tpu.core_type = #tpu.core_type<tc>, window_params = [{transform_indices = @transform_0, window_bounds = array<i64: 8, 512>}, {pipeline_mode = #tpu.pipeline_mode<synchronous>, transform_indices = @transform_1, window_bounds = array<i64: 8, 8>}, {transform_indices = @transform_2, window_bounds = array<i64: 8, 512>}, {pipeline_mode = #tpu.pipeline_mode<synchronous>, transform_indices = @transform_3, window_bounds = array<i64: 8, 1>}, {pipeline_mode = #tpu.pipeline_mode<synchronous>, transform_indices = @transform_4, window_bounds = array<i64: 8, 1>}]} {
    %c0_i32 = arith.constant 0 : i32
    %0 = arith.cmpi eq, %arg0, %c0_i32 : i32
    %1 = arith.extui %0 : i1 to i32
    %c0_i32_0 = arith.constant 0 : i32
    %2 = arith.cmpi ne, %1, %c0_i32_0 : i32
    scf.if %2 {
      %cst_16 = arith.constant 0.000000e+00 : f32
      %18 = vector.broadcast %cst_16 : f32 to vector<8x1xf32>
      %c0_17 = arith.constant 0 : index
      %c0_18 = arith.constant 0 : index
      %19 = vector.load %arg4[%c0_17, %c0_18] : memref<8x1xf32, #tpu.memory_space<vmem>>, vector<8x1xf32>
      tpu.vector_store %arg4[%c0_17, %c0_18], %18 {strides = array<i32>} : memref<8x1xf32, #tpu.memory_space<vmem>>, vector<8x1xf32>,
      %cst_19 = arith.constant 0.000000e+00 : f32
      %20 = vector.broadcast %cst_19 : f32 to vector<8x1xf32>
      %c0_20 = arith.constant 0 : index
      %c0_21 = arith.constant 0 : index
      %21 = vector.load %arg5[%c0_20, %c0_21] : memref<8x1xf32, #tpu.memory_space<vmem>>, vector<8x1xf32>
      tpu.vector_store %arg5[%c0_20, %c0_21], %20 {strides = array<i32>} : memref<8x1xf32, #tpu.memory_space<vmem>>, vector<8x1xf32>,
    } else {
    }
    %c0 = arith.constant 0 : index
    %c0_1 = arith.constant 0 : index
    %3 = vector.load %arg2[%c0, %c0_1] : memref<8x8xf32, #tpu.memory_space<vmem>>, vector<8x8xf32>
    %c0_2 = arith.constant 0 : index
    %c0_3 = arith.constant 0 : index
    %4 = vector.load %arg1[%c0_2, %c0_3] : memref<8x512xf32, #tpu.memory_space<vmem>>, vector<8x512xf32>
    %cst = arith.constant dense<0.000000e+00> : vector<8x512xf32>
    %5 = tpu.matmul %3, %4, %cst {dimension_numbers = #tpu.dot_dimension_numbers<[1], [0], [0], [1], [0, 0, 1, 1], [], []>} : vector<8x8xf32>, vector<8x512xf32>, vector<8x512xf32> -> vector<8x512xf32>
    %c0_4 = arith.constant 0 : index
    %c0_5 = arith.constant 0 : index
    %6 = vector.load %arg3[%c0_4, %c0_5] : memref<8x512xf32, #tpu.memory_space<vmem>>, vector<8x512xf32>
    tpu.vector_store %arg3[%c0_4, %c0_5], %5 {strides = array<i32>} : memref<8x512xf32, #tpu.memory_space<vmem>>, vector<8x512xf32>,
    %c0_6 = arith.constant 0 : index
    %c0_7 = arith.constant 0 : index
    %7 = vector.load %arg4[%c0_6, %c0_7] : memref<8x1xf32, #tpu.memory_space<vmem>>, vector<8x1xf32>
    %cst_8 = arith.constant dense<0.000000e+00> : vector<8xf32>
    %8 = vector.multi_reduction <add>, %5, %cst_8 [1] : vector<8x512xf32> to vector<8xf32>
    %9 = vector.shape_cast %8 : vector<8xf32> to vector<8x1xf32>
    %10 = arith.addf %7, %9 : vector<8x1xf32>
    %c0_9 = arith.constant 0 : index
    %c0_10 = arith.constant 0 : index
    %11 = vector.load %arg4[%c0_9, %c0_10] : memref<8x1xf32, #tpu.memory_space<vmem>>, vector<8x1xf32>
    tpu.vector_store %arg4[%c0_9, %c0_10], %10 {strides = array<i32>} : memref<8x1xf32, #tpu.memory_space<vmem>>, vector<8x1xf32>,
    %c0_11 = arith.constant 0 : index
    %c0_12 = arith.constant 0 : index
    %12 = vector.load %arg5[%c0_11, %c0_12] : memref<8x1xf32, #tpu.memory_space<vmem>>, vector<8x1xf32>
    %13 = arith.mulf %5, %5 : vector<8x512xf32>
    %cst_13 = arith.constant dense<0.000000e+00> : vector<8xf32>
    %14 = vector.multi_reduction <add>, %13, %cst_13 [1] : vector<8x512xf32> to vector<8xf32>
    %15 = vector.shape_cast %14 : vector<8xf32> to vector<8x1xf32>
    %16 = arith.addf %12, %15 : vector<8x1xf32>
    %c0_14 = arith.constant 0 : index
    %c0_15 = arith.constant 0 : index
    %17 = vector.load %arg5[%c0_14, %c0_15] : memref<8x1xf32, #tpu.memory_space<vmem>>, vector<8x1xf32>
    tpu.vector_store %arg5[%c0_14, %c0_15], %16 {strides = array<i32>} : memref<8x1xf32, #tpu.memory_space<vmem>>, vector<8x1xf32>,
    return
  }
  func.func @transform_0(%arg0: i32) -> (i32, i32) {
    %c0_i32 = arith.constant 0 : i32
    %c0_i32_0 = arith.constant 0 : i32
    return %c0_i32, %arg0 : i32, i32
  }
  func.func @transform_1(%arg0: i32) -> (i32, i32) {
    %c0_i32 = arith.constant 0 : i32
    %c0_i32_0 = arith.constant 0 : i32
    %c0_i32_1 = arith.constant 0 : i32
    return %c0_i32, %c0_i32_0 : i32, i32
  }
  func.func @transform_2(%arg0: i32) -> (i32, i32) {
    %c0_i32 = arith.constant 0 : i32
    %c0_i32_0 = arith.constant 0 : i32
    return %c0_i32, %arg0 : i32, i32
  }
  func.func @transform_3(%arg0: i32) -> (i32, i32) {
    %c0_i32 = arith.constant 0 : i32
    %c0_i32_0 = arith.constant 0 : i32
    %c0_i32_1 = arith.constant 0 : i32
    return %c0_i32, %c0_i32_0 : i32, i32
  }
  func.func @transform_4(%arg0: i32) -> (i32, i32) {
    %c0_i32 = arith.constant 0 : i32
    %c0_i32_0 = arith.constant 0 : i32
    %c0_i32_1 = arith.constant 0 : i32
    return %c0_i32, %c0_i32_0 : i32, i32
  }
}

module attributes {stable_mosaic.version = 11 : i64} {
  func.func @_bn_relu_matmul_stats_kernel(%arg0: i32, %arg1: memref<8x512xf32, #tpu.memory_space<vmem>>, %arg2: memref<8x1xf32, #tpu.memory_space<vmem>>, %arg3: memref<8x1xf32, #tpu.memory_space<vmem>>, %arg4: memref<64x8xf32, #tpu.memory_space<vmem>>, %arg5: memref<64x512xf32, #tpu.memory_space<vmem>>, %arg6: memref<64x1xf32, #tpu.memory_space<vmem>>, %arg7: memref<64x1xf32, #tpu.memory_space<vmem>>) attributes {dimension_semantics = [#tpu.dimension_semantics<arbitrary>], iteration_bounds = array<i64: 16>, scalar_prefetch = 0 : i64, scratch_operands = 0 : i64, tpu.core_type = #tpu.core_type<tc>, window_params = [{transform_indices = @transform_0, window_bounds = array<i64: 8, 512>}, {pipeline_mode = #tpu.pipeline_mode<synchronous>, transform_indices = @transform_1, window_bounds = array<i64: 8, 1>}, {pipeline_mode = #tpu.pipeline_mode<synchronous>, transform_indices = @transform_2, window_bounds = array<i64: 8, 1>}, {pipeline_mode = #tpu.pipeline_mode<synchronous>, transform_indices = @transform_3, window_bounds = array<i64: 64, 8>}, {transform_indices = @transform_4, window_bounds = array<i64: 64, 512>}, {pipeline_mode = #tpu.pipeline_mode<synchronous>, transform_indices = @transform_5, window_bounds = array<i64: 64, 1>}, {pipeline_mode = #tpu.pipeline_mode<synchronous>, transform_indices = @transform_6, window_bounds = array<i64: 64, 1>}]} {
    %c0_i32 = arith.constant 0 : i32
    %0 = arith.cmpi eq, %arg0, %c0_i32 : i32
    %1 = arith.extui %0 : i1 to i32
    %c0_i32_0 = arith.constant 0 : i32
    %2 = arith.cmpi ne, %1, %c0_i32_0 : i32
    scf.if %2 {
      %cst_21 = arith.constant 0.000000e+00 : f32
      %26 = vector.broadcast %cst_21 : f32 to vector<64x1xf32>
      %c0_22 = arith.constant 0 : index
      %c0_23 = arith.constant 0 : index
      %27 = vector.load %arg6[%c0_22, %c0_23] : memref<64x1xf32, #tpu.memory_space<vmem>>, vector<64x1xf32>
      tpu.vector_store %arg6[%c0_22, %c0_23], %26 {strides = array<i32>} : memref<64x1xf32, #tpu.memory_space<vmem>>, vector<64x1xf32>,
      %cst_24 = arith.constant 0.000000e+00 : f32
      %28 = vector.broadcast %cst_24 : f32 to vector<64x1xf32>
      %c0_25 = arith.constant 0 : index
      %c0_26 = arith.constant 0 : index
      %29 = vector.load %arg7[%c0_25, %c0_26] : memref<64x1xf32, #tpu.memory_space<vmem>>, vector<64x1xf32>
      tpu.vector_store %arg7[%c0_25, %c0_26], %28 {strides = array<i32>} : memref<64x1xf32, #tpu.memory_space<vmem>>, vector<64x1xf32>,
    } else {
    }
    %c0 = arith.constant 0 : index
    %c0_1 = arith.constant 0 : index
    %3 = vector.load %arg1[%c0, %c0_1] : memref<8x512xf32, #tpu.memory_space<vmem>>, vector<8x512xf32>
    %c0_2 = arith.constant 0 : index
    %c0_3 = arith.constant 0 : index
    %4 = vector.load %arg2[%c0_2, %c0_3] : memref<8x1xf32, #tpu.memory_space<vmem>>, vector<8x1xf32>
    %5 = vector.broadcast %4 : vector<8x1xf32> to vector<8x512xf32>
    %6 = arith.mulf %3, %5 : vector<8x512xf32>
    %c0_4 = arith.constant 0 : index
    %c0_5 = arith.constant 0 : index
    %7 = vector.load %arg3[%c0_4, %c0_5] : memref<8x1xf32, #tpu.memory_space<vmem>>, vector<8x1xf32>
    %8 = vector.broadcast %7 : vector<8x1xf32> to vector<8x512xf32>
    %9 = arith.addf %6, %8 : vector<8x512xf32>
    %cst = arith.constant 0.000000e+00 : f32
    %10 = vector.broadcast %cst : f32 to vector<8x512xf32>
    %11 = arith.maximumf %9, %10 : vector<8x512xf32>
    %c0_6 = arith.constant 0 : index
    %c0_7 = arith.constant 0 : index
    %12 = vector.load %arg4[%c0_6, %c0_7] : memref<64x8xf32, #tpu.memory_space<vmem>>, vector<64x8xf32>
    %cst_8 = arith.constant dense<0.000000e+00> : vector<64x512xf32>
    %13 = tpu.matmul %12, %11, %cst_8 {dimension_numbers = #tpu.dot_dimension_numbers<[1], [0], [0], [1], [0, 0, 1, 1], [], []>} : vector<64x8xf32>, vector<8x512xf32>, vector<64x512xf32> -> vector<64x512xf32>
    %c0_9 = arith.constant 0 : index
    %c0_10 = arith.constant 0 : index
    %14 = vector.load %arg5[%c0_9, %c0_10] : memref<64x512xf32, #tpu.memory_space<vmem>>, vector<64x512xf32>
    tpu.vector_store %arg5[%c0_9, %c0_10], %13 {strides = array<i32>} : memref<64x512xf32, #tpu.memory_space<vmem>>, vector<64x512xf32>,
    %c0_11 = arith.constant 0 : index
    %c0_12 = arith.constant 0 : index
    %15 = vector.load %arg6[%c0_11, %c0_12] : memref<64x1xf32, #tpu.memory_space<vmem>>, vector<64x1xf32>
    %cst_13 = arith.constant dense<0.000000e+00> : vector<64xf32>
    %16 = vector.multi_reduction <add>, %13, %cst_13 [1] : vector<64x512xf32> to vector<64xf32>
    %17 = vector.shape_cast %16 : vector<64xf32> to vector<64x1xf32>
    %18 = arith.addf %15, %17 : vector<64x1xf32>
    %c0_14 = arith.constant 0 : index
    %c0_15 = arith.constant 0 : index
    %19 = vector.load %arg6[%c0_14, %c0_15] : memref<64x1xf32, #tpu.memory_space<vmem>>, vector<64x1xf32>
    tpu.vector_store %arg6[%c0_14, %c0_15], %18 {strides = array<i32>} : memref<64x1xf32, #tpu.memory_space<vmem>>, vector<64x1xf32>,
    %c0_16 = arith.constant 0 : index
    %c0_17 = arith.constant 0 : index
    %20 = vector.load %arg7[%c0_16, %c0_17] : memref<64x1xf32, #tpu.memory_space<vmem>>, vector<64x1xf32>
    %21 = arith.mulf %13, %13 : vector<64x512xf32>
    %cst_18 = arith.constant dense<0.000000e+00> : vector<64xf32>
    %22 = vector.multi_reduction <add>, %21, %cst_18 [1] : vector<64x512xf32> to vector<64xf32>
    %23 = vector.shape_cast %22 : vector<64xf32> to vector<64x1xf32>
    %24 = arith.addf %20, %23 : vector<64x1xf32>
    %c0_19 = arith.constant 0 : index
    %c0_20 = arith.constant 0 : index
    %25 = vector.load %arg7[%c0_19, %c0_20] : memref<64x1xf32, #tpu.memory_space<vmem>>, vector<64x1xf32>
    tpu.vector_store %arg7[%c0_19, %c0_20], %24 {strides = array<i32>} : memref<64x1xf32, #tpu.memory_space<vmem>>, vector<64x1xf32>,
    return
  }
  func.func @transform_0(%arg0: i32) -> (i32, i32) {
    %c0_i32 = arith.constant 0 : i32
    %c0_i32_0 = arith.constant 0 : i32
    return %c0_i32, %arg0 : i32, i32
  }
  func.func @transform_1(%arg0: i32) -> (i32, i32) {
    %c0_i32 = arith.constant 0 : i32
    %c0_i32_0 = arith.constant 0 : i32
    %c0_i32_1 = arith.constant 0 : i32
    return %c0_i32, %c0_i32_0 : i32, i32
  }
  func.func @transform_2(%arg0: i32) -> (i32, i32) {
    %c0_i32 = arith.constant 0 : i32
    %c0_i32_0 = arith.constant 0 : i32
    %c0_i32_1 = arith.constant 0 : i32
    return %c0_i32, %c0_i32_0 : i32, i32
  }
  func.func @transform_3(%arg0: i32) -> (i32, i32) {
    %c0_i32 = arith.constant 0 : i32
    %c0_i32_0 = arith.constant 0 : i32
    %c0_i32_1 = arith.constant 0 : i32
    return %c0_i32, %c0_i32_0 : i32, i32
  }
  func.func @transform_4(%arg0: i32) -> (i32, i32) {
    %c0_i32 = arith.constant 0 : i32
    %c0_i32_0 = arith.constant 0 : i32
    return %c0_i32, %arg0 : i32, i32
  }
  func.func @transform_5(%arg0: i32) -> (i32, i32) {
    %c0_i32 = arith.constant 0 : i32
    %c0_i32_0 = arith.constant 0 : i32
    %c0_i32_1 = arith.constant 0 : i32
    return %c0_i32, %c0_i32_0 : i32, i32
  }
  func.func @transform_6(%arg0: i32) -> (i32, i32) {
    %c0_i32 = arith.constant 0 : i32
    %c0_i32_0 = arith.constant 0 : i32
    %c0_i32_1 = arith.constant 0 : i32
    return %c0_i32, %c0_i32_0 : i32, i32
  }
}

module attributes {stable_mosaic.version = 11 : i64} {
  func.func @_bn_relu_matmul_stats_kernel(%arg0: i32, %arg1: memref<64x512xf32, #tpu.memory_space<vmem>>, %arg2: memref<64x1xf32, #tpu.memory_space<vmem>>, %arg3: memref<64x1xf32, #tpu.memory_space<vmem>>, %arg4: memref<64x64xf32, #tpu.memory_space<vmem>>, %arg5: memref<64x512xf32, #tpu.memory_space<vmem>>, %arg6: memref<64x1xf32, #tpu.memory_space<vmem>>, %arg7: memref<64x1xf32, #tpu.memory_space<vmem>>) attributes {dimension_semantics = [#tpu.dimension_semantics<arbitrary>], iteration_bounds = array<i64: 16>, scalar_prefetch = 0 : i64, scratch_operands = 0 : i64, tpu.core_type = #tpu.core_type<tc>, window_params = [{transform_indices = @transform_0, window_bounds = array<i64: 64, 512>}, {pipeline_mode = #tpu.pipeline_mode<synchronous>, transform_indices = @transform_1, window_bounds = array<i64: 64, 1>}, {pipeline_mode = #tpu.pipeline_mode<synchronous>, transform_indices = @transform_2, window_bounds = array<i64: 64, 1>}, {pipeline_mode = #tpu.pipeline_mode<synchronous>, transform_indices = @transform_3, window_bounds = array<i64: 64, 64>}, {transform_indices = @transform_4, window_bounds = array<i64: 64, 512>}, {pipeline_mode = #tpu.pipeline_mode<synchronous>, transform_indices = @transform_5, window_bounds = array<i64: 64, 1>}, {pipeline_mode = #tpu.pipeline_mode<synchronous>, transform_indices = @transform_6, window_bounds = array<i64: 64, 1>}]} {
    %c0_i32 = arith.constant 0 : i32
    %0 = arith.cmpi eq, %arg0, %c0_i32 : i32
    %1 = arith.extui %0 : i1 to i32
    %c0_i32_0 = arith.constant 0 : i32
    %2 = arith.cmpi ne, %1, %c0_i32_0 : i32
    scf.if %2 {
      %cst_21 = arith.constant 0.000000e+00 : f32
      %26 = vector.broadcast %cst_21 : f32 to vector<64x1xf32>
      %c0_22 = arith.constant 0 : index
      %c0_23 = arith.constant 0 : index
      %27 = vector.load %arg6[%c0_22, %c0_23] : memref<64x1xf32, #tpu.memory_space<vmem>>, vector<64x1xf32>
      tpu.vector_store %arg6[%c0_22, %c0_23], %26 {strides = array<i32>} : memref<64x1xf32, #tpu.memory_space<vmem>>, vector<64x1xf32>,
      %cst_24 = arith.constant 0.000000e+00 : f32
      %28 = vector.broadcast %cst_24 : f32 to vector<64x1xf32>
      %c0_25 = arith.constant 0 : index
      %c0_26 = arith.constant 0 : index
      %29 = vector.load %arg7[%c0_25, %c0_26] : memref<64x1xf32, #tpu.memory_space<vmem>>, vector<64x1xf32>
      tpu.vector_store %arg7[%c0_25, %c0_26], %28 {strides = array<i32>} : memref<64x1xf32, #tpu.memory_space<vmem>>, vector<64x1xf32>,
    } else {
    }
    %c0 = arith.constant 0 : index
    %c0_1 = arith.constant 0 : index
    %3 = vector.load %arg1[%c0, %c0_1] : memref<64x512xf32, #tpu.memory_space<vmem>>, vector<64x512xf32>
    %c0_2 = arith.constant 0 : index
    %c0_3 = arith.constant 0 : index
    %4 = vector.load %arg2[%c0_2, %c0_3] : memref<64x1xf32, #tpu.memory_space<vmem>>, vector<64x1xf32>
    %5 = vector.broadcast %4 : vector<64x1xf32> to vector<64x512xf32>
    %6 = arith.mulf %3, %5 : vector<64x512xf32>
    %c0_4 = arith.constant 0 : index
    %c0_5 = arith.constant 0 : index
    %7 = vector.load %arg3[%c0_4, %c0_5] : memref<64x1xf32, #tpu.memory_space<vmem>>, vector<64x1xf32>
    %8 = vector.broadcast %7 : vector<64x1xf32> to vector<64x512xf32>
    %9 = arith.addf %6, %8 : vector<64x512xf32>
    %cst = arith.constant 0.000000e+00 : f32
    %10 = vector.broadcast %cst : f32 to vector<64x512xf32>
    %11 = arith.maximumf %9, %10 : vector<64x512xf32>
    %c0_6 = arith.constant 0 : index
    %c0_7 = arith.constant 0 : index
    %12 = vector.load %arg4[%c0_6, %c0_7] : memref<64x64xf32, #tpu.memory_space<vmem>>, vector<64x64xf32>
    %cst_8 = arith.constant dense<0.000000e+00> : vector<64x512xf32>
    %13 = tpu.matmul %12, %11, %cst_8 {dimension_numbers = #tpu.dot_dimension_numbers<[1], [0], [0], [1], [0, 0, 1, 1], [], []>} : vector<64x64xf32>, vector<64x512xf32>, vector<64x512xf32> -> vector<64x512xf32>
    %c0_9 = arith.constant 0 : index
    %c0_10 = arith.constant 0 : index
    %14 = vector.load %arg5[%c0_9, %c0_10] : memref<64x512xf32, #tpu.memory_space<vmem>>, vector<64x512xf32>
    tpu.vector_store %arg5[%c0_9, %c0_10], %13 {strides = array<i32>} : memref<64x512xf32, #tpu.memory_space<vmem>>, vector<64x512xf32>,
    %c0_11 = arith.constant 0 : index
    %c0_12 = arith.constant 0 : index
    %15 = vector.load %arg6[%c0_11, %c0_12] : memref<64x1xf32, #tpu.memory_space<vmem>>, vector<64x1xf32>
    %cst_13 = arith.constant dense<0.000000e+00> : vector<64xf32>
    %16 = vector.multi_reduction <add>, %13, %cst_13 [1] : vector<64x512xf32> to vector<64xf32>
    %17 = vector.shape_cast %16 : vector<64xf32> to vector<64x1xf32>
    %18 = arith.addf %15, %17 : vector<64x1xf32>
    %c0_14 = arith.constant 0 : index
    %c0_15 = arith.constant 0 : index
    %19 = vector.load %arg6[%c0_14, %c0_15] : memref<64x1xf32, #tpu.memory_space<vmem>>, vector<64x1xf32>
    tpu.vector_store %arg6[%c0_14, %c0_15], %18 {strides = array<i32>} : memref<64x1xf32, #tpu.memory_space<vmem>>, vector<64x1xf32>,
    %c0_16 = arith.constant 0 : index
    %c0_17 = arith.constant 0 : index
    %20 = vector.load %arg7[%c0_16, %c0_17] : memref<64x1xf32, #tpu.memory_space<vmem>>, vector<64x1xf32>
    %21 = arith.mulf %13, %13 : vector<64x512xf32>
    %cst_18 = arith.constant dense<0.000000e+00> : vector<64xf32>
    %22 = vector.multi_reduction <add>, %21, %cst_18 [1] : vector<64x512xf32> to vector<64xf32>
    %23 = vector.shape_cast %22 : vector<64xf32> to vector<64x1xf32>
    %24 = arith.addf %20, %23 : vector<64x1xf32>
    %c0_19 = arith.constant 0 : index
    %c0_20 = arith.constant 0 : index
    %25 = vector.load %arg7[%c0_19, %c0_20] : memref<64x1xf32, #tpu.memory_space<vmem>>, vector<64x1xf32>
    tpu.vector_store %arg7[%c0_19, %c0_20], %24 {strides = array<i32>} : memref<64x1xf32, #tpu.memory_space<vmem>>, vector<64x1xf32>,
    return
  }
  func.func @transform_0(%arg0: i32) -> (i32, i32) {
    %c0_i32 = arith.constant 0 : i32
    %c0_i32_0 = arith.constant 0 : i32
    return %c0_i32, %arg0 : i32, i32
  }
  func.func @transform_1(%arg0: i32) -> (i32, i32) {
    %c0_i32 = arith.constant 0 : i32
    %c0_i32_0 = arith.constant 0 : i32
    %c0_i32_1 = arith.constant 0 : i32
    return %c0_i32, %c0_i32_0 : i32, i32
  }
  func.func @transform_2(%arg0: i32) -> (i32, i32) {
    %c0_i32 = arith.constant 0 : i32
    %c0_i32_0 = arith.constant 0 : i32
    %c0_i32_1 = arith.constant 0 : i32
    return %c0_i32, %c0_i32_0 : i32, i32
  }
  func.func @transform_3(%arg0: i32) -> (i32, i32) {
    %c0_i32 = arith.constant 0 : i32
    %c0_i32_0 = arith.constant 0 : i32
    %c0_i32_1 = arith.constant 0 : i32
    return %c0_i32, %c0_i32_0 : i32, i32
  }
  func.func @transform_4(%arg0: i32) -> (i32, i32) {
    %c0_i32 = arith.constant 0 : i32
    %c0_i32_0 = arith.constant 0 : i32
    return %c0_i32, %arg0 : i32, i32
  }
  func.func @transform_5(%arg0: i32) -> (i32, i32) {
    %c0_i32 = arith.constant 0 : i32
    %c0_i32_0 = arith.constant 0 : i32
    %c0_i32_1 = arith.constant 0 : i32
    return %c0_i32, %c0_i32_0 : i32, i32
  }
  func.func @transform_6(%arg0: i32) -> (i32, i32) {
    %c0_i32 = arith.constant 0 : i32
    %c0_i32_0 = arith.constant 0 : i32
    %c0_i32_1 = arith.constant 0 : i32
    return %c0_i32, %c0_i32_0 : i32, i32
  }
}

module attributes {stable_mosaic.version = 11 : i64} {
  func.func @_bn_relu_kernel(%arg0: i32, %arg1: memref<64x512xf32, #tpu.memory_space<vmem>>, %arg2: memref<64x1xf32, #tpu.memory_space<vmem>>, %arg3: memref<64x1xf32, #tpu.memory_space<vmem>>, %arg4: memref<64x512xf32, #tpu.memory_space<vmem>>) attributes {dimension_semantics = [#tpu.dimension_semantics<parallel>], iteration_bounds = array<i64: 16>, scalar_prefetch = 0 : i64, scratch_operands = 0 : i64, tpu.core_type = #tpu.core_type<tc>, window_params = [{transform_indices = @transform_0, window_bounds = array<i64: 64, 512>}, {pipeline_mode = #tpu.pipeline_mode<synchronous>, transform_indices = @transform_1, window_bounds = array<i64: 64, 1>}, {pipeline_mode = #tpu.pipeline_mode<synchronous>, transform_indices = @transform_2, window_bounds = array<i64: 64, 1>}, {transform_indices = @transform_3, window_bounds = array<i64: 64, 512>}]} {
    %c0 = arith.constant 0 : index
    %c0_0 = arith.constant 0 : index
    %0 = vector.load %arg1[%c0, %c0_0] : memref<64x512xf32, #tpu.memory_space<vmem>>, vector<64x512xf32>
    %c0_1 = arith.constant 0 : index
    %c0_2 = arith.constant 0 : index
    %1 = vector.load %arg2[%c0_1, %c0_2] : memref<64x1xf32, #tpu.memory_space<vmem>>, vector<64x1xf32>
    %2 = vector.broadcast %1 : vector<64x1xf32> to vector<64x512xf32>
    %3 = arith.mulf %0, %2 : vector<64x512xf32>
    %c0_3 = arith.constant 0 : index
    %c0_4 = arith.constant 0 : index
    %4 = vector.load %arg3[%c0_3, %c0_4] : memref<64x1xf32, #tpu.memory_space<vmem>>, vector<64x1xf32>
    %5 = vector.broadcast %4 : vector<64x1xf32> to vector<64x512xf32>
    %6 = arith.addf %3, %5 : vector<64x512xf32>
    %cst = arith.constant 0.000000e+00 : f32
    %7 = vector.broadcast %cst : f32 to vector<64x512xf32>
    %8 = arith.maximumf %6, %7 : vector<64x512xf32>
    %c0_5 = arith.constant 0 : index
    %c0_6 = arith.constant 0 : index
    %9 = vector.load %arg4[%c0_5, %c0_6] : memref<64x512xf32, #tpu.memory_space<vmem>>, vector<64x512xf32>
    tpu.vector_store %arg4[%c0_5, %c0_6], %8 {strides = array<i32>} : memref<64x512xf32, #tpu.memory_space<vmem>>, vector<64x512xf32>,
    return
  }
  func.func @transform_0(%arg0: i32) -> (i32, i32) {
    %c0_i32 = arith.constant 0 : i32
    %c0_i32_0 = arith.constant 0 : i32
    return %c0_i32, %arg0 : i32, i32
  }
  func.func @transform_1(%arg0: i32) -> (i32, i32) {
    %c0_i32 = arith.constant 0 : i32
    %c0_i32_0 = arith.constant 0 : i32
    %c0_i32_1 = arith.constant 0 : i32
    return %c0_i32, %c0_i32_0 : i32, i32
  }
  func.func @transform_2(%arg0: i32) -> (i32, i32) {
    %c0_i32 = arith.constant 0 : i32
    %c0_i32_0 = arith.constant 0 : i32
    %c0_i32_1 = arith.constant 0 : i32
    return %c0_i32, %c0_i32_0 : i32, i32
  }
  func.func @transform_3(%arg0: i32) -> (i32, i32) {
    %c0_i32 = arith.constant 0 : i32
    %c0_i32_0 = arith.constant 0 : i32
    return %c0_i32, %arg0 : i32, i32
  }
}

</mosaic_0001>

<bundles_post_ra>
// kernel: tile.32
= control target key start
LH: loop header
LB: loop body
LE: loop exit
PB: predicated region body
PF: predicated region fallthrough
CT: control target
= control target key end

     0   :  { %s22_s0 = inlined_call_operand.vmem [shape: f32[8], index: 0, kind: input, shape index: {}]   ;;  %s23_s1 = inlined_call_operand.vmem [shape: f32[8,8], index: 1, kind: output, shape index: {}]  }
   0x1   :  { %v4_v0 = vld [vmem:[%s22_s0] ss:$0 sm:$0xff] }
   0x2   :  { %5 = vst [vmem:[%s23_s1] sm:$0xff] %v4_v0 }

// kernel: tile.0
= control target key start
LH: loop header
LB: loop body
LE: loop exit
PB: predicated region body
PF: predicated region fallthrough
CT: control target
= control target key end

     0   :  { %vm4_vm0 = vcmask 7168   ;;  %s154_s0 = inlined_call_operand.vmem [shape: f32[8,8], index: 0, kind: input, shape index: {}]   ;;  %s155_s1 = inlined_call_operand.hbm [shape: f32[64,1], index: 1, kind: output, shape index: {}]  }
   0x1   :  { %v7_v0 = vld [vmem:[%s154_s0] sm:$0xff]  }
   0x2   :  { %2 = vsyncpa [#allocation1], 0  ;;  %s105_s0 = smov 127   ;;  %s106_s8 = smov 125  }
   0x3   :  { %8 = vrot.lane.b32.xlu0 %v7_v0, %s105_s0  ;;  %24 = vrot.lane.b32.xlu1 %v7_v0, %s106_s8  ;;  %5 = vst.msk [vmem:[#allocation0] ss:$8 sm:$0xf] %vm4_vm0, %v7_v0   ;;  %6 = vst.msk [vmem:[#allocation0] ss:$8 sm:$0xf0] %vm4_vm0, %v7_v0  }
   0x4   :  { %s107_s9 = smov 126   ;;  %s108_s10 = smov 124  }
   0x5   :  { %s109_s11 = smov 123   ;;  %s110_s12 = smov 122  }
   0x6   :  { %s111_s13 = smov 121   ;;  %s112_s14 = smov [#allocation0]  }
   0x7   :  { %16 = vrot.lane.b32.xlu0 %v7_v0, %s107_s9  ;;  %32 = vrot.lane.b32.xlu1 %v7_v0, %s108_s10  ;;  %s67_s15 = sshll.u32 %s112_s14, 4  ;;  %s68_s15 = int_to_ptr.vmem [resolvable:$true] %s67_s15 }
   0x8   :  { %s81_s16 = scalar_lea.vmem %s68_s15, 1024  ;;  %p86_p1 = scmp.lt.s32.totalorder %s68_s15, %s68_s15 }
   0x9   :  { %p82_p0 = scmp.ne.s32.totalorder %s68_s15, %s81_s16  ;;  %p87_p2 = scmp.lt.s32.totalorder %s81_s16, %s81_s16 }
   0xb   :  { %40 = vrot.lane.b32.xlu0 %v7_v0, %s109_s11  ;;  %48 = vrot.lane.b32.xlu1 %v7_v0, %s110_s12  ;;  %p88_p3 = por %p87_p2, %p86_p1 }
   0xd   :  { %p89_p4 = pnand %p88_p3, %p82_p0 }
   0xf   :  { %56 = vrot.lane.b32.xlu0 %v7_v0, %s111_s13 }
  0x75   :  { %v9_v1 = vpop.permute.xlu0 %8   ;;  %v25_v2 = vpop.permute.xlu1 %24  }
  0x76   :  { %12 = vst.msk [vmem:[#allocation0 + $0x1] ss:$8 sm:$0xf] %vm4_vm0, %v9_v1   ;;  %14 = vst.msk [vmem:[#allocation0 + $0x1] ss:$8 sm:$0xf0] %vm4_vm0, %v9_v1  }
  0x77   :  { %28 = vst.msk [vmem:[#allocation0 + $0x3] ss:$8 sm:$0xf] %vm4_vm0, %v25_v2   ;;  %30 = vst.msk [vmem:[#allocation0 + $0x3] ss:$8 sm:$0xf0] %vm4_vm0, %v25_v2  }
  0x79   :  { %v17_v3 = vpop.permute.xlu0 %16   ;;  %v33_v4 = vpop.permute.xlu1 %32  }
  0x7a   :  { %20 = vst.msk [vmem:[#allocation0 + $0x2] ss:$8 sm:$0xf] %vm4_vm0, %v17_v3   ;;  %22 = vst.msk [vmem:[#allocation0 + $0x2] ss:$8 sm:$0xf0] %vm4_vm0, %v17_v3  }
  0x7b   :  { %36 = vst.msk [vmem:[#allocation0 + $0x4] ss:$8 sm:$0xf] %vm4_vm0, %v33_v4   ;;  %38 = vst.msk [vmem:[#allocation0 + $0x4] ss:$8 sm:$0xf0] %vm4_vm0, %v33_v4  }
  0x7d   :  { %v41_v5 = vpop.permute.xlu0 %40   ;;  %v49_v6 = vpop.permute.xlu1 %48  }
  0x7e   :  { %44 = vst.msk [vmem:[#allocation0 + $0x5] ss:$8 sm:$0xf] %vm4_vm0, %v41_v5   ;;  %46 = vst.msk [vmem:[#allocation0 + $0x5] ss:$8 sm:$0xf0] %vm4_vm0, %v41_v5  }
  0x7f   :  { %52 = vst.msk [vmem:[#allocation0 + $0x6] ss:$8 sm:$0xf] %vm4_vm0, %v49_v6   ;;  %54 = vst.msk [vmem:[#allocation0 + $0x6] ss:$8 sm:$0xf0] %vm4_vm0, %v49_v6  }
  0x81   :  { %v57_v7 = vpop.permute.xlu0 %56  }
  0x82   :  { %60 = vst.msk [vmem:[#allocation0 + $0x7] ss:$8 sm:$0xf] %vm4_vm0, %v57_v7   ;;  %62 = vst.msk [vmem:[#allocation0 + $0x7] ss:$8 sm:$0xf0] %vm4_vm0, %v57_v7  }
  0x83   :  { %92 = shalt.err (!%p89_p4)
}
  0x84   :  { %s93_s19 = scalar_lea.hbm %s155_s1, 1024 }
  0x85   :  { %p94_p5 = scmp.ne.s32.totalorder %s155_s1, %s93_s19  ;;  %p97_p6 = scmp.lt.u32.totalorder %s93_s19, %s155_s1 }
  0x87   :  { %p99_p7 = pnand %p97_p6, %p94_p5 }
  0x89   :  { %102 = shalt.err (!%p99_p7)
}
  0x8a   :  { %70 = dma.vmem_to_hbm [thread:$0]  %s68_s15, 1024, %s155_s1, [#allocation1]  }
  0x8b   :  { %103 = dma.done.wait [#allocation1], 1024  }
  0x8c   :  { %104 = vsyncadd [#allocation1], 4294966272 }
  0x8d   :  { %72 = vsyncpa [#allocation1], 1 }

// kernel: linknet_up_3d.4
= control target key start
LH: loop header
LB: loop body
LE: loop exit
PB: predicated region body
PF: predicated region fallthrough
CT: control target
= control target key end

     0   :  { %10 = vsyncpa [#allocation3], 0  ;;  %s1107_s0 = inlined_call_operand.hbm [shape: f32[8,8192], index: 0, kind: input, shape index: {}]   ;;  %s1108_s1 = inlined_call_operand.hbm [shape: f32[8,8], index: 1, kind: input, shape index: {}]   ;;  %s1109_s2 = inlined_call_operand.hbm [shape: f32[8,8192], index: 2, kind: output, shape index: {0}]   ;;  %s1110_s3 = inlined_call_operand.hbm [shape: f32[8,1], index: 3, kind: output, shape index: {1}]   ;;  %s1111_s4 = inlined_call_operand.hbm [shape: f32[8,1], index: 4, kind: output, shape index: {2}]  }
   0x1   :  { %12 = vsyncpa [#allocation3 + $0x1], 0 }
   0x2   :  { %13 = vsyncpa [#allocation6], 0 }
   0x3   :  { %14 = vsyncpa [#allocation4], 0 }
   0x4   :  { %16 = vsyncpa [#allocation4 + $0x1], 0 }
   0x5   :  { %17 = vsyncpa [#allocation9], 0  ;;  %s862_s15 = smov 0   ;;  %s864_s16 = smov 0  }
   0x6   :  { %s866_s17 = smov 0   ;;  %s868_s18 = smov 0  }
   0x7 LB: > { %s883_s19 = sadd.s32 4294967295, %s828_s18   ;;  %s546_s20 = sadd.s32 4294967294, %s828_s18   ;;  %s828_s18 = sphi %s868_s18, %s1143_s18   ;;  %s824_s17 = sphi %s866_s17, %s1142_s17   ;;  %s820_s16 = sphi %s864_s16, %s1141_s16   ;;  %s816_s15 = sphi %s862_s15, %s1140_s15  }
   0x8   : > { %p43_p0 = scmp.ne.s32.totalorder %s820_s16, %s816_s15  ;;  %p1112_p1 = scmp.eq.s32.totalorder %s883_s19, 0 }
   0x9   : > { %p94_p3 = scmp.eq.s32.totalorder %s546_s20, 15  ;;  %p547_p5 = scmp.ge.s32.totalorder %s828_s18, 1 }
   0xa   : > { %p892_p4 = por %p1112_p1, %p43_p0  ;;  %p143_p7 = scmp.lt.s32.totalorder %s828_s18, 17 }
   0xb   : > { %p897_p6 = por %p94_p3, %p43_p0  ;;  %s830_s24 = smov [#allocation5]  }
   0xc   : > { %s1115_s21 = scalar_select %p892_p4, 1, 0 }
   0xd   : > { %s1116_s22 = scalar_select %p897_p6, 1, 0 }
   0xe   : > { %p903_p9 = pnand %p547_p5, %p143_p7  ;;  %s156_s25 = sshll.u32 %s830_s24, 4  ;;  %s157_s25 = int_to_ptr.vmem [resolvable:$true] %s156_s25 }
   0xf   : > { %s910_s26 = sadd.s32 1, %s828_s18   ;;  %s30_s30 = sadd.s32 1, %s824_s17 }
  0x10   : > { %s1117_s23 = scalar_select %p903_p9, 1, 0 }
  0x11   : > { %p587_p10 = pneg %p903_p9  ;;  %s27_s28 = ssub.s32 %s828_s18, %s910_s26 }
  0x12   : > { %p920_p12 = scmp.eq.s32.totalorder %s27_s28, 0  ;;  %s644_s7 = scalar_lea.hbm %s1108_s1, 128 }
  0x13   : > { %p914_p11 = pnand %p587_p10, %p1112_p1  ;;  %p645_p0 = scmp.ne.s32.totalorder %s1108_s1, %s644_s7 }
  0x14   : > { %s1119_s29 = scalar_select %p920_p12, 1, 0 }
  0x15   : > { %p646_p3 = pneg %p914_p11  ;;  %p651_p10 = scmp.lt.u32.totalorder %s644_s7, %s1108_s1 }
  0x17   : > { %p647_p5 = pnand %p646_p3, %p645_p0 }
  0x19   : > { %p648_p7 = pneg %p647_p5 }
  0x1b   : > { %p653_p8 = pnand %p651_p10, %p648_p7 }
  0x1d   : > { %656 = shalt.err (!%p653_p8)
}
  0x1e   : > { %s657_s12 = scalar_lea.vmem %s157_s25, 128  ;;  %p665_p6 = scmp.lt.s32.totalorder %s157_s25, %s157_s25 }
  0x1f   : > { %p658_p1 = scmp.ne.s32.totalorder %s157_s25, %s657_s12  ;;  %p666_p4 = scmp.lt.s32.totalorder %s657_s12, %s657_s12 }
  0x21   : > { %p660_p2 = pnand %p658_p1, %p646_p3  ;;  %p667_p9 = por %p666_p4, %p665_p6 }
  0x23   : > { %p661_p13 = pneg %p660_p2 }
  0x25   : > { %p668_p12 = pnand %p667_p9, %p661_p13 }
  0x27   : > { %671 = shalt.err (!%p668_p12)
}
  0x28   : > { %590 = dma.hbm_to_vmem [thread:$0]  (!%p914_p11), %s1108_s1, 128, %s157_s25, [#allocation6]  }
  0x29   : > { %p1120_p1 = scmp.ne.s32.totalorder %s1119_s29, 0  ;;  %p38_p2 = scmp.eq.s32.totalorder %s828_s18, 0 }
  0x2a   : > { %p1121_p4 = scmp.ne.s32.totalorder %s824_s17, %s820_s16  ;;  %p1122_p6 = scmp.eq.s32.totalorder %s883_s19, 15 }
  0x2b   : > { %s946_s20 = scalar_select %p1120_p1, %s824_s17, %s30_s30  }
  0x2c   : > { %p954_p8 = por %p1122_p6, %p1121_p4  ;;  %p600_p9 = scmp.lt.s32.totalorder %s828_s18, 16 }
  0x2d   : > { %s167_s27 = sand.u32 1, %s824_s17   ;;  %p1124_p12 = pmov %p1121_p4 }
  0x2e   : > { %s550_s28 = sshll.u32 %s167_s27, 5  ;;  %s569_s5 = sshll.u32 %s828_s18, 9 }
  0x2f   : > { %p39_p13 = por %p38_p2, %p1124_p12  ;;  %s967_s25 = scalar_lea.hbm %s1107_s0, %s569_s5 }
  0x30   : > { %s171_s29 = scalar_lea.vmem [#allocation2], %s550_s28  ;;  %s168_s9 = scalar_lea.sflag [#allocation3], %s167_s27 }
  0x31   : > { %s179_s30 = sshll.u32 %s171_s29, 4  ;;  %p969_p11 = pnand %p600_p9, %p39_p13  ;;  %s973_s30 = int_to_ptr.vmem [resolvable:$true] %s179_s30 }
  0x32   : > { %s672_s10 = scalar_lea.hbm %s967_s25, 512  ;;  %s677_s13 = scalar_lea.hbm %s1107_s0, 8192 }
  0x33   : > { %p673_p0 = scmp.ne.s32.totalorder %s967_s25, %s672_s10  ;;  %p674_p3 = pneg %p969_p11 }
  0x34   : > { %p678_p10 = scmp.lt.u32.totalorder %s967_s25, %s1107_s0  ;;  %p679_p1 = scmp.lt.u32.totalorder %s677_s13, %s672_s10 }
  0x35   : > { %p675_p5 = pnand %p674_p3, %p673_p0  ;;  %p681_p4 = scmp.lt.u32.totalorder %s672_s10, %s967_s25 }
  0x36   : > { %p680_p2 = por %p679_p1, %p678_p10 }
  0x37   : > { %p676_p7 = pneg %p675_p5 }
  0x38   : > { %p682_p6 = por %p681_p4, %p680_p2 }
  0x3a   : > { %p683_p9 = pnand %p682_p6, %p676_p7 }
  0x3c   : > { %686 = shalt.err (!%p683_p9)
}
  0x3d   : > { %s687_s27 = scalar_lea.vmem %s973_s30, 512  ;;  %s831_s5 = smov [#allocation2]  }
  0x3e   : > { %p688_p12 = scmp.ne.s32.totalorder %s973_s30, %s687_s27  ;;  %s692_s6 = sshll.u32 %s831_s5, 4  ;;  %s693_s6 = int_to_ptr.vmem [resolvable:$false] %s692_s6 }
  0x3f   : > { %s694_s7 = scalar_lea.vmem %s693_s6, 1024  ;;  %p695_p5 = scmp.lt.s32.totalorder %s973_s30, %s693_s6 }
  0x40   : > { %p690_p13 = pnand %p688_p12, %p674_p3  ;;  %p696_p10 = scmp.lt.s32.totalorder %s694_s7, %s687_s27 }
  0x42   : > { %p691_p0 = pneg %p690_p13  ;;  %p697_p1 = por %p696_p10, %p695_p5 }
  0x44   : > { %p698_p2 = pnand %p697_p1, %p691_p0 }
  0x46   : > { %701 = shalt.err (!%p698_p2)
}
  0x47   : > { %594 = dma.hbm_to_vmem [thread:$0]  (!%p969_p11), %s967_s25, 512, %s973_s30, %s168_s9  }
  0x48   : > { %p1126_p7 = scmp.ne.s32.totalorder %s1117_s23, 0 }
  0x49   : > { %s1003_s29 = sand.u32 (!%p1126_p7), 1, %s820_s16   ;;  %p1127_p3 = scmp.ne.s32.totalorder (!%p1126_p7), %s1115_s21, 0 }
  0x4a   : > { %188 = sbr.rel (%p1126_p7) target bundleno = 502 (0x1f6), region = 28  ;;  %s554_s10 = sshll.u32 (!%p1126_p7), %s1003_s29, 5 }
  0x4b   : > { %s191_s11 = scalar_lea.sflag (!%p1126_p7), [#allocation3], %s1003_s29  ;;  %s194_s12 = scalar_lea.vmem (!%p1126_p7), [#allocation2], %s554_s10 }
  0x51   : > { %799 = dma.done.wait (%p1127_p3), %s191_s11, 512  }
  0x52   : > { %801 = vsyncadd (%p1127_p3), %s191_s11, 4294966784  ;;  %p1128_p4 = scmp.eq.s32.totalorder %s883_s19, 0 }
  0x54   : > { %803 = dma.done.wait (%p1128_p4), [#allocation6], 128   ;;  %p1129_p11 = pmov %p1128_p4 }
  0x55   : > { %s1015_s23 = scalar_lea.vmem [#allocation7], %s554_s10  ;;  %p1130_p6 = scmp.ne.s32.totalorder %s883_s19, 0 }
  0x56   : > { %805 = vsyncadd (%p1129_p11), [#allocation6], 4294967168  ;;  %vm229_vm0 = vcmask (!%p1130_p6), 7168   ;;  %v832_v0 = vmov (!%p1130_p6), 0.0  }
  0x57   : > { %228 = sbr.rel (%p1130_p6) target bundleno = 94 (0x5e), region = 40  ;;  %230 = vst.msk [vmem:[#allocation8] sm:$0xff] (!%p1130_p6), %vm229_vm0, %v832_v0  ;;  %231 = vst.msk [vmem:[#allocation10] sm:$0xff] (!%p1130_p6), %vm229_vm0, %v832_v0 }
  0x5e PF: > { %v234_v1 = vld [vmem:[%s194_s12 + $0x8] sm:$0xff]  ;;  %v233_v2 = vld [vmem:[%s194_s12] sm:$0xff]  ;;  %vm237_vm1 = vcmask 64512   ;;  %v833_v4 = vmov 0.0   ;;  %v236_v5 = vld [vmem:[%s194_s12 + $0x18] sm:$0xff]  ;;  %s570_s21 = sshll.u32 %s883_s19, 9 }
  0x5f   : > { %v232_v3 = vld [vmem:[#allocation5] sm:$0xff]  ;;  %241 = vmatprep.subr.mxu0 %v234_v1  ;;  %305 = vmatprep.mubr.f32.mxu0 %v833_v4  ;;  %v235_v6 = vld [vmem:[%s194_s12 + $0x10] sm:$0xff]  ;;  %s1027_s8 = scalar_lea.hbm %s1109_s2, %s570_s21  ;;  %s423_s9 = sshll.u32 %s1015_s23, 4  ;;  %s424_s9 = int_to_ptr.vmem [resolvable:$true] %s423_s9 }
  0x60   : > { %242 = vmatpush1.msra.mxu0 %v233_v2  ;;  %312 = vmatprep.subr.mxu1 %v236_v5  ;;  %s409_s13 = scalar_lea.sflag [#allocation4], %s1003_s29  ;;  %s702_s14 = scalar_lea.vmem %s424_s9, 512 }
  0x61   : > { %558 = vmatmul.mubr.msk.f32.vlgmr.msra.gmra.mrb[0].mxu0 %vm237_vm1, %v232_v3  ;;  %313 = vmatpush1.msra.mxu1 %v235_v6  ;;  %p703_p9 = scmp.ne.s32.totalorder %s424_s9, %s702_s14  ;;  %s834_s28 = smov [#allocation7]  }
  0x62   : > { %376 = vmatprep.mubr.f32.mxu1 %v833_v4  ;;  %s706_s27 = sshll.u32 %s834_s28, 4  ;;  %s707_s27 = int_to_ptr.vmem [resolvable:$false] %s706_s27 }
  0x63   : > { %559 = vmatmul.mubr.msk.f32.vlgmr.msra.gmra.mrb[0].mxu1 %vm237_vm1, %v232_v3  ;;  %p704_p12 = pnand %p703_p9, %p954_p8  ;;  %s708_s5 = scalar_lea.vmem %s707_s27, 1024 }
  0x64   : > { %p709_p0 = scmp.lt.s32.totalorder %s424_s9, %s707_s27  ;;  %p710_p5 = scmp.lt.s32.totalorder %s708_s5, %s702_s14 }
  0x65   : > { %p705_p13 = pneg %p704_p12 }
  0x66   : > { %p711_p10 = por %p710_p5, %p709_p0 }
  0x68   : > { %p712_p1 = pnand %p711_p10, %p705_p13 }
 0x134   : > { %v307_v7 = vpop.f32.mrb[0].mxu0 }
 0x135   : > { %383 = vst [vmem:[%s1015_s23] sm:$0xff] %v307_v7  ;;  %v397_v8 = vmul.f32 %v307_v7, %v307_v7  ;;  %v309_v9 = vpop.f32.mrb[1].mxu0 }
 0x136   : > { %384 = vst [vmem:[%s1015_s23 + $0x8] sm:$0xff] %v309_v9  ;;  %v388_v10 = vadd.f32 %v309_v9, %v307_v7  ;;  %v398_v11 = vmul.f32 %v309_v9, %v309_v9  ;;  %v378_v12 = vpop.f32.mrb[0].mxu1 }
 0x137   : > { %385 = vst [vmem:[%s1015_s23 + $0x10] sm:$0xff] %v378_v12  ;;  %v399_v13 = vmul.f32 %v378_v12, %v378_v12  ;;  %v380_v14 = vpop.f32.mrb[1].mxu1 }
 0x138   : > { %v401_v15 = vadd.f32 %v398_v11, %v397_v8  ;;  %386 = vst [vmem:[%s1015_s23 + $0x18] sm:$0xff] %v380_v14  ;;  %v389_v16 = vadd.f32 %v388_v10, %v378_v12  ;;  %v400_v17 = vmul.f32 %v380_v14, %v380_v14 }
 0x13a   : > { %v390_v18 = vadd.f32 %v389_v16, %v380_v14  ;;  %v402_v19 = vadd.f32 %v401_v15, %v399_v13 }
 0x13c   : > { %391 = vadd.xlane.f32.xlu0 %v390_v18  ;;  %v403_v20 = vadd.f32 %v402_v19, %v400_v17 }
 0x140   : > { %404 = vadd.xlane.f32.xlu0 %v403_v20 }
 0x141   : > { %715 = shalt.err (!%p712_p1)
}
 0x142   : > { %s716_s6 = scalar_lea.hbm %s1027_s8, 512  ;;  %s720_s10 = scalar_lea.hbm %s1109_s2, 8192 }
 0x143   : > { %p717_p2 = scmp.ne.s32.totalorder %s1027_s8, %s716_s6  ;;  %p721_p4 = scmp.lt.u32.totalorder %s1027_s8, %s1109_s2 }
 0x144   : > { %p722_p11 = scmp.lt.u32.totalorder %s720_s10, %s716_s6  ;;  %p724_p9 = scmp.lt.u32.totalorder %s716_s6, %s1027_s8 }
 0x145   : > { %p718_p7 = pnand %p717_p2, %p954_p8 }
 0x146   : > { %p723_p6 = por %p722_p11, %p721_p4 }
 0x147   : > { %p719_p3 = pneg %p718_p7 }
 0x148   : > { %p725_p12 = por %p724_p9, %p723_p6 }
 0x14a   : > { %p726_p13 = pnand %p725_p12, %p719_p3 }
 0x14c   : > { %729 = shalt.err (!%p726_p13)
}
 0x14d   : > { %577 = dma.vmem_to_hbm [thread:$0]  (%p954_p8), %s424_s9, 512, %s1027_s8, %s409_s13   ;;  %v387_v21 = vld [vmem:[#allocation8] sm:$0xff]  ;;  %vm394_vm2 = vcmask 7168   ;;  %v396_v24 = vld [vmem:[#allocation10] sm:$0xff] }
 0x14e   : > { %s835_s23 = smov [#allocation8]   ;;  %s836_s25 = smov [#allocation10]  }
 0x14f   : > { %s434_s21 = sshll.u32 %s835_s23, 4  ;;  %s445_s30 = sshll.u32 %s836_s25, 4  ;;  %s435_s21 = int_to_ptr.vmem [resolvable:$true] %s434_s21  ;;  %s446_s30 = int_to_ptr.vmem [resolvable:$true] %s445_s30 }
 0x150   : > { %s730_s14 = scalar_lea.vmem %s435_s21, 128  ;;  %p1131_p5 = scmp.eq.s32.totalorder %s883_s19, 15 }
 0x151   : > { %p731_p0 = scmp.ne.s32.totalorder %s435_s21, %s730_s14  ;;  %p737_p2 = scmp.lt.s32.totalorder %s435_s21, %s435_s21 }
 0x152   : > { %p738_p8 = scmp.lt.s32.totalorder %s730_s14, %s730_s14 }
 0x153   : > { %p732_p10 = pnand %p731_p0, %p1131_p5 }
 0x154   : > { %p739_p7 = por %p738_p8, %p737_p2 }
 0x155   : > { %p733_p1 = pneg %p732_p10 }
 0x157   : > { %p740_p3 = pnand %p739_p7, %p733_p1 }
 0x1c9   : > { %v392_v22 = vpop.xlane.xlu0 %391 }
 0x1ca   : > { %v393_v23 = vadd.f32 %v392_v22, %v387_v21 }
 0x1cc   : > { %395 = vst.msk [vmem:[#allocation8] sm:$0xff] %vm394_vm2, %v393_v23 }
 0x1cd   : > { %v405_v25 = vpop.xlane.xlu0 %404 }
 0x1ce   : > { %743 = shalt.err (!%p740_p3)
}
 0x1cf   : > { %s744_s9 = scalar_lea.hbm %s1110_s3, 128  ;;  %p1132_p11 = pmov %p1131_p5 }
 0x1d0   : > { %p745_p4 = scmp.ne.s32.totalorder %s1110_s3, %s744_s9  ;;  %p750_p12 = scmp.lt.u32.totalorder %s744_s9, %s1110_s3 }
 0x1d2   : > { %p746_p6 = pnand %p745_p4, %p1132_p11 }
 0x1d4   : > { %p747_p9 = pneg %p746_p6 }
 0x1d6   : > { %p752_p13 = pnand %p750_p12, %p747_p9 }
 0x1d8   : > { %755 = shalt.err (!%p752_p13)
}
 0x1d9   : > { %p1133_p0 = pmov %p1131_p5  ;;  %v406_v26 = vadd.f32 %v405_v25, %v396_v24  ;;  %s756_s29 = scalar_lea.vmem %s446_s30, 128 }
 0x1da   : > { %p757_p5 = scmp.ne.s32.totalorder %s446_s30, %s756_s29  ;;  %p763_p8 = scmp.lt.s32.totalorder %s446_s30, %s446_s30 }
 0x1db   : > { %579 = dma.vmem_to_hbm [thread:$0]  (%p1133_p0), %s435_s21, 128, %s1110_s3, [#allocation9]   ;;  %407 = vst.msk [vmem:[#allocation10] sm:$0xff] %vm394_vm2, %v406_v26 }
 0x1dc   : > { %p1134_p10 = pmov %p1133_p0  ;;  %p764_p7 = scmp.lt.s32.totalorder %s756_s29, %s756_s29 }
 0x1de   : > { %p758_p1 = pnand %p757_p5, %p1134_p10  ;;  %p765_p3 = por %p764_p7, %p763_p8 }
 0x1e0   : > { %p759_p2 = pneg %p758_p1 }
 0x1e2   : > { %p766_p4 = pnand %p765_p3, %p759_p2 }
 0x1e4   : > { %769 = shalt.err (!%p766_p4)
}
 0x1e5   : > { %s770_s12 = scalar_lea.hbm %s1111_s4, 128  ;;  %p1135_p6 = pmov %p1133_p0 }
 0x1e6   : > { %p771_p11 = scmp.ne.s32.totalorder %s1111_s4, %s770_s12  ;;  %p776_p13 = scmp.lt.u32.totalorder %s770_s12, %s1111_s4 }
 0x1e8   : > { %p772_p9 = pnand %p771_p11, %p1135_p6 }
 0x1ea   : > { %p773_p12 = pneg %p772_p9 }
 0x1ec   : > { %p778_p0 = pnand %p776_p13, %p773_p12 }
 0x1ee   : > { %781 = shalt.err (!%p778_p0)
}
 0x1ef   : > { %p1136_p5 = pmov %p1135_p6 }
 0x1f1   : > { %581 = dma.vmem_to_hbm [thread:$0]  (%p1136_p5), %s446_s30, 128, %s1111_s4, [#allocation9]  }
 0x1f2   : > { %p1137_p10 = pmov %p1136_p5 }
 0x1f3   : > { %p1138_p1 = pmov %p1136_p5 }
 0x1f4   : > { %807 = dma.done.wait (%p1137_p10), [#allocation9], 256  }
 0x1f5   : > { %809 = vsyncadd (%p1138_p1), [#allocation9], 4294967040 }
 0x1f6 PF: > { %p606_p2 = scmp.ge.s32.totalorder %s828_s18, 2  ;;  %s465_s9 = sand.u32 1, %s816_s15  }
 0x1f7   : > { %p1139_p8 = scmp.ne.s32.totalorder %s1116_s22, 0  ;;  %s466_s13 = scalar_lea.sflag [#allocation4], %s465_s9 }
 0x1f9   : > { %p596_p7 = pnand %p606_p2, %p1139_p8 }
 0x1fb   : > { %811 = dma.done.wait (!%p596_p7), %s466_s13, 512  }
 0x1fc   : > { %813 = vsyncadd (!%p596_p7), %s466_s13, 4294966784  ;;  %p20_p3 = scmp.ge.s32.totalorder %s910_s26, 18   ;;  %s1140_s15 = smov %s820_s16 }
 0x1fd   : > { %s1141_s16 = smov %s824_s17  ;;  %s1142_s17 = smov %s946_s20 }
 0x1fe   : > { %s1143_s18 = smov %s910_s26  ;;  %22 = sbr.rel (!%p20_p3) target bundleno = 7 (0x7), region = 97 }
 0x205   :  { %471 = vsyncpa [#allocation3], 1 }
 0x206   :  { %473 = vsyncpa [#allocation3 + $0x1], 1 }
 0x207   :  { %474 = vsyncpa [#allocation6], 1 }
 0x208   :  { %475 = vsyncpa [#allocation4], 1 }
 0x209   :  { %477 = vsyncpa [#allocation4 + $0x1], 1 }
 0x20a   :  { %478 = vsyncpa [#allocation9], 1 }

// kernel: linknet_up_3d.5
= control target key start
LH: loop header
LB: loop body
LE: loop exit
PB: predicated region body
PF: predicated region fallthrough
CT: control target
= control target key end

     0   :  { %12 = vsyncpa [#allocation3], 0  ;;  %s1797_s0 = inlined_call_operand.hbm [shape: f32[8,8192], index: 0, kind: input, shape index: {}]   ;;  %s1798_s1 = inlined_call_operand.hbm [shape: f32[8,1], index: 1, kind: input, shape index: {}]   ;;  %s1799_s2 = inlined_call_operand.hbm [shape: f32[8,1], index: 2, kind: input, shape index: {}]   ;;  %s1800_s3 = inlined_call_operand.hbm [shape: f32[64,8], index: 3, kind: input, shape index: {}]   ;;  %s1801_s4 = inlined_call_operand.hbm [shape: f32[64,8192], index: 4, kind: output, shape index: {0}]   ;;  %s1802_s5 = inlined_call_operand.hbm [shape: f32[64,1], index: 5, kind: output, shape index: {1}]   ;;  %s1803_s6 = inlined_call_operand.hbm [shape: f32[64,1], index: 6, kind: output, shape index: {2}]  }
   0x1   :  { %14 = vsyncpa [#allocation3 + $0x1], 0 }
   0x2   :  { %15 = vsyncpa [#allocation6], 0 }
   0x3   :  { %16 = vsyncpa [#allocation9], 0 }
   0x4   :  { %17 = vsyncpa [#allocation4], 0 }
   0x5   :  { %19 = vsyncpa [#allocation4 + $0x1], 0 }
   0x6   :  { %20 = vsyncpa [#allocation12], 0  ;;  %s1413_s21 = smov 0   ;;  %s1415_s22 = smov 0  }
   0x7   :  { %s1417_s23 = smov 0   ;;  %s1419_s24 = smov 0  }
   0x8 LB: > { %s1434_s25 = sadd.s32 4294967295, %s1359_s24   ;;  %s970_s26 = sadd.s32 4294967294, %s1359_s24   ;;  %s1359_s24 = sphi %s1419_s24, %s1834_s24   ;;  %s1355_s23 = sphi %s1417_s23, %s1833_s23   ;;  %s1351_s22 = sphi %s1415_s22, %s1832_s22   ;;  %s1347_s21 = sphi %s1413_s21, %s1831_s21  }
   0x9   : > { %p46_p0 = scmp.ne.s32.totalorder %s1351_s22, %s1347_s21  ;;  %p1804_p1 = scmp.eq.s32.totalorder %s1434_s25, 0 }
   0xa   : > { %p139_p3 = scmp.eq.s32.totalorder %s970_s26, 15  ;;  %p971_p5 = scmp.ge.s32.totalorder %s1359_s24, 1 }
   0xb   : > { %p1443_p4 = por %p1804_p1, %p46_p0  ;;  %p188_p7 = scmp.lt.s32.totalorder %s1359_s24, 17 }
   0xc   : > { %p1448_p6 = por %p139_p3, %p46_p0  ;;  %s1361_s30 = smov [#allocation5]  }
   0xd   : > { %s1807_s27 = scalar_select %p1443_p4, 1, 0 }
   0xe   : > { %s1808_s28 = scalar_select %p1448_p6, 1, 0 }
   0xf   : > { %p1454_p9 = pnand %p971_p5, %p188_p7  ;;  %s201_s7 = sshll.u32 %s1361_s30, 4  ;;  %s202_s7 = int_to_ptr.vmem [resolvable:$true] %s201_s7 }
  0x10   : > { %s1362_s8 = smov [#allocation7]   ;;  %s1363_s11 = smov [#allocation8]  }
  0x11   : > { %s1809_s29 = scalar_select %p1454_p9, 1, 0 }
  0x12   : > { %p1037_p10 = pneg %p1454_p9  ;;  %s212_s9 = sshll.u32 %s1362_s8, 4  ;;  %s1466_s9 = int_to_ptr.vmem [resolvable:$true] %s212_s9 }
  0x13   : > { %s222_s12 = sshll.u32 %s1363_s11, 4  ;;  %s1115_s15 = scalar_lea.hbm %s1798_s1, 128  ;;  %s1468_s12 = int_to_ptr.vmem [resolvable:$true] %s222_s12 }
  0x14   : > { %p1462_p11 = pnand %p1037_p10, %p1804_p1  ;;  %p1116_p12 = scmp.ne.s32.totalorder %s1798_s1, %s1115_s15 }
  0x15   : > { %p1122_p5 = scmp.lt.u32.totalorder %s1115_s15, %s1798_s1 }
  0x16   : > { %p1478_p13 = pneg %p1462_p11 }
  0x18   : > { %p1118_p0 = pnand %p1478_p13, %p1116_p12 }
  0x1a   : > { %p1119_p3 = pneg %p1118_p0 }
  0x1c   : > { %p1124_p7 = pnand %p1122_p5, %p1119_p3 }
  0x1e   : > { %1127 = shalt.err (!%p1124_p7)
}
  0x1f   : > { %s1128_s26 = scalar_lea.vmem %s202_s7, 128  ;;  %p1136_p2 = scmp.lt.s32.totalorder %s202_s7, %s202_s7 }
  0x20   : > { %p1129_p10 = scmp.ne.s32.totalorder %s202_s7, %s1128_s26  ;;  %p1137_p6 = scmp.lt.s32.totalorder %s1128_s26, %s1128_s26 }
  0x22   : > { %p1131_p8 = pnand %p1129_p10, %p1478_p13  ;;  %p1138_p4 = por %p1137_p6, %p1136_p2 }
  0x24   : > { %p1132_p1 = pneg %p1131_p8 }
  0x26   : > { %p1139_p9 = pnand %p1138_p4, %p1132_p1 }
  0x28   : > { %1142 = shalt.err (!%p1139_p9)
}
  0x29   : > { %1040 = dma.hbm_to_vmem [thread:$0]  (!%p1462_p11), %s1798_s1, 128, %s202_s7, [#allocation6]  }
  0x2a   : > { %s1143_s14 = scalar_lea.hbm %s1799_s2, 128 }
  0x2b   : > { %p1144_p8 = scmp.ne.s32.totalorder %s1799_s2, %s1143_s14  ;;  %p1150_p1 = scmp.lt.u32.totalorder %s1143_s14, %s1799_s2 }
  0x2d   : > { %p1146_p12 = pnand %p1144_p8, %p1478_p13 }
  0x2f   : > { %p1147_p2 = pneg %p1146_p12 }
  0x31   : > { %p1152_p4 = pnand %p1150_p1, %p1147_p2 }
  0x33   : > { %1155 = shalt.err (!%p1152_p4)
}
  0x34   : > { %s1156_s7 = scalar_lea.vmem %s1466_s9, 128  ;;  %p1164_p3 = scmp.lt.s32.totalorder %s1466_s9, %s1466_s9 }
  0x35   : > { %p1157_p6 = scmp.ne.s32.totalorder %s1466_s9, %s1156_s7  ;;  %p1165_p5 = scmp.lt.s32.totalorder %s1156_s7, %s1156_s7 }
  0x37   : > { %p1159_p9 = pnand %p1157_p6, %p1478_p13  ;;  %p1166_p7 = por %p1165_p5, %p1164_p3 }
  0x39   : > { %p1160_p0 = pneg %p1159_p9 }
  0x3b   : > { %p1167_p10 = pnand %p1166_p7, %p1160_p0 }
  0x3d   : > { %1170 = shalt.err (!%p1167_p10)
}
  0x3e   : > { %1043 = dma.hbm_to_vmem [thread:$0]  (!%p1462_p11), %s1799_s2, 128, %s1466_s9, [#allocation6]  }
  0x3f   : > { %s1171_s11 = scalar_lea.hbm %s1800_s3, 1024 }
  0x40   : > { %p1172_p8 = scmp.ne.s32.totalorder %s1800_s3, %s1171_s11  ;;  %p1178_p1 = scmp.lt.u32.totalorder %s1171_s11, %s1800_s3 }
  0x42   : > { %p1174_p12 = pnand %p1172_p8, %p1478_p13 }
  0x44   : > { %p1175_p2 = pneg %p1174_p12 }
  0x46   : > { %p1180_p4 = pnand %p1178_p1, %p1175_p2 }
  0x48   : > { %1183 = shalt.err (!%p1180_p4)
}
  0x49   : > { %s1184_s9 = scalar_lea.vmem %s1468_s12, 1024  ;;  %p1192_p3 = scmp.lt.s32.totalorder %s1468_s12, %s1468_s12 }
  0x4a   : > { %p1185_p6 = scmp.ne.s32.totalorder %s1468_s12, %s1184_s9  ;;  %p1193_p5 = scmp.lt.s32.totalorder %s1184_s9, %s1184_s9 }
  0x4c   : > { %p1187_p9 = pnand %p1185_p6, %p1478_p13  ;;  %p1194_p7 = por %p1193_p5, %p1192_p3 }
  0x4e   : > { %p1188_p0 = pneg %p1187_p9 }
  0x50   : > { %p1195_p10 = pnand %p1194_p7, %p1188_p0 }
  0x52   : > { %1198 = shalt.err (!%p1195_p10)
}
  0x53   : > { %s1364_s17 = smov 128   ;;  %s1365_s18 = smov 8  }
  0x54   : > { %1046 = dma.hbm_to_vmem [thread:$0]  (!%p1462_p11), %s1800_s3, 1024, %s1468_s12, [#allocation9], %s1364_s17, %s1364_s17, %s1365_s18  }
  0x55   : > { %s1541_s20 = sadd.s32 1, %s1359_s24   ;;  %s33_s30 = sadd.s32 1, %s1355_s23 }
  0x56   : > { %s30_s26 = ssub.s32 %s1359_s24, %s1541_s20  ;;  %p40_p8 = scmp.ne.s32.totalorder %s1355_s23, %s1351_s22 }
  0x57   : > { %p31_p13 = scmp.eq.s32.totalorder %s30_s26, 0  ;;  %p41_p12 = scmp.eq.s32.totalorder %s1359_s24, 0 }
  0x58   : > { %p1058_p2 = scmp.lt.s32.totalorder %s1359_s24, 16  ;;  %p1812_p4 = scmp.eq.s32.totalorder %s1434_s25, 15 }
  0x59   : > { %s1551_s8 = scalar_select %p31_p13, %s1355_s23, %s33_s30  }
  0x5a   : > { %p42_p1 = por %p41_p12, %p40_p8  ;;  %p1555_p6 = por %p1812_p4, %p40_p8 }
  0x5b   : > { %s236_s10 = sand.u32 1, %s1355_s23   ;;  %s1011_s13 = sshll.u32 %s1359_s24, 9 }
  0x5c   : > { %s976_s12 = sshll.u32 %s236_s10, 5  ;;  %s1564_s16 = scalar_lea.hbm %s1797_s0, %s1011_s13 }
  0x5d   : > { %s240_s9 = scalar_lea.vmem [#allocation2], %s976_s12  ;;  %p1566_p11 = pnand %p1058_p2, %p42_p1 }
  0x5e   : > { %s248_s17 = sshll.u32 %s240_s9, 4  ;;  %s237_s19 = scalar_lea.sflag [#allocation3], %s236_s10  ;;  %s1570_s17 = int_to_ptr.vmem [resolvable:$true] %s248_s17 }
  0x5f   : > { %s1199_s7 = scalar_lea.hbm %s1564_s16, 512  ;;  %p1201_p0 = pneg %p1566_p11 }
  0x60   : > { %p1200_p9 = scmp.ne.s32.totalorder %s1564_s16, %s1199_s7  ;;  %s1204_s13 = scalar_lea.hbm %s1797_s0, 8192 }
  0x61   : > { %p1205_p7 = scmp.lt.u32.totalorder %s1564_s16, %s1797_s0  ;;  %p1206_p10 = scmp.lt.u32.totalorder %s1204_s13, %s1199_s7 }
  0x62   : > { %p1202_p3 = pnand %p1201_p0, %p1200_p9  ;;  %p1208_p8 = scmp.lt.u32.totalorder %s1199_s7, %s1564_s16 }
  0x63   : > { %p1207_p13 = por %p1206_p10, %p1205_p7 }
  0x64   : > { %p1203_p5 = pneg %p1202_p3 }
  0x65   : > { %p1209_p12 = por %p1208_p8, %p1207_p13 }
  0x67   : > { %p1210_p2 = pnand %p1209_p12, %p1203_p5 }
  0x69   : > { %1213 = shalt.err (!%p1210_p2)
}
  0x6a   : > { %s1214_s10 = scalar_lea.vmem %s1570_s17, 512  ;;  %s1366_s15 = smov [#allocation2]  }
  0x6b   : > { %p1215_p1 = scmp.ne.s32.totalorder %s1570_s17, %s1214_s10  ;;  %s1219_s9 = sshll.u32 %s1366_s15, 4  ;;  %s1220_s9 = int_to_ptr.vmem [resolvable:$false] %s1219_s9 }
  0x6c   : > { %s1221_s26 = scalar_lea.vmem %s1220_s9, 1024  ;;  %p1222_p3 = scmp.lt.s32.totalorder %s1570_s17, %s1220_s9 }
  0x6d   : > { %p1217_p4 = pnand %p1215_p1, %p1201_p0  ;;  %p1223_p7 = scmp.lt.s32.totalorder %s1221_s26, %s1214_s10 }
  0x6f   : > { %p1218_p9 = pneg %p1217_p4  ;;  %p1224_p10 = por %p1223_p7, %p1222_p3 }
  0x71   : > { %p1225_p13 = pnand %p1224_p10, %p1218_p9 }
  0x73   : > { %1228 = shalt.err (!%p1225_p13)
}
  0x74   : > { %1050 = dma.hbm_to_vmem [thread:$0]  (!%p1566_p11), %s1564_s16, 512, %s1570_s17, %s237_s19  }
  0x75   : > { %p1815_p5 = scmp.ne.s32.totalorder %s1809_s29, 0 }
  0x76   : > { %s1600_s7 = sand.u32 (!%p1815_p5), 1, %s1351_s22   ;;  %p1816_p0 = scmp.ne.s32.totalorder (!%p1815_p5), %s1807_s27, 0 }
  0x77   : > { %257 = sbr.rel (%p1815_p5) target bundleno = 728 (0x2d8), region = 36  ;;  %s980_s30 = sshll.u32 (!%p1815_p5), %s1600_s7, 5 }
  0x78   : > { %s260_s13 = scalar_lea.sflag (!%p1815_p5), [#allocation3], %s1600_s7  ;;  %s1604_s12 = scalar_lea.vmem (!%p1815_p5), [#allocation2], %s980_s30 }
  0x7e   : > { %1326 = dma.done.wait (%p1816_p0), %s260_s13, 512  }
  0x7f   : > { %1328 = vsyncadd (%p1816_p0), %s260_s13, 4294966784  ;;  %p1817_p11 = scmp.eq.s32.totalorder %s1434_s25, 0 }
  0x81   : > { %1330 = dma.done.wait (%p1817_p11), [#allocation6], 256   ;;  %p1818_p8 = pmov %p1817_p11 }
  0x83   : > { %1332 = vsyncadd (%p1818_p8), [#allocation6], 4294967040  ;;  %p1819_p12 = pmov %p1818_p8 }
  0x84   : > { %p1820_p2 = pmov %p1818_p8 }
  0x85   : > { %1334 = dma.done.wait (%p1819_p12), [#allocation9], 1024  }
  0x86   : > { %1336 = vsyncadd (%p1820_p2), [#allocation9], 4294966272  ;;  %s984_s29 = sshll.u32 %s1600_s7, 8  ;;  %p1821_p1 = scmp.ne.s32.totalorder %s1434_s25, 0 }
  0x87   : > { %s1619_s16 = scalar_lea.vmem [#allocation10], %s984_s29  ;;  %vm310_vm0 = vcmask (!%p1821_p1), 7168   ;;  %v1367_v0 = vmov (!%p1821_p1), 0.0  }
  0x88   : > { %309 = sbr.rel (%p1821_p1) target bundleno = 144 (0x90), region = 56  ;;  %311 = vst.msk [vmem:[#allocation11] sm:$0xff] (!%p1821_p1), %vm310_vm0, %v1367_v0  ;;  %312 = vst.msk [vmem:[#allocation11 + $0x8] sm:$0xff] (!%p1821_p1), %vm310_vm0, %v1367_v0 }
  0x89   : > { %313 = vst.msk [vmem:[#allocation11 + $0x10] sm:$0xff] (!%p1821_p1), %vm310_vm0, %v1367_v0  ;;  %314 = vst.msk [vmem:[#allocation11 + $0x18] sm:$0xff] (!%p1821_p1), %vm310_vm0, %v1367_v0 }
  0x8a   : > { %315 = vst.msk [vmem:[#allocation11 + $0x20] sm:$0xff] (!%p1821_p1), %vm310_vm0, %v1367_v0  ;;  %316 = vst.msk [vmem:[#allocation11 + $0x28] sm:$0xff] (!%p1821_p1), %vm310_vm0, %v1367_v0 }
  0x8b   : > { %317 = vst.msk [vmem:[#allocation11 + $0x30] sm:$0xff] (!%p1821_p1), %vm310_vm0, %v1367_v0  ;;  %318 = vst.msk [vmem:[#allocation11 + $0x38] sm:$0xff] (!%p1821_p1), %vm310_vm0, %v1367_v0 }
  0x8c   : > { %319 = vst.msk [vmem:[#allocation13] sm:$0xff] (!%p1821_p1), %vm310_vm0, %v1367_v0  ;;  %320 = vst.msk [vmem:[#allocation13 + $0x8] sm:$0xff] (!%p1821_p1), %vm310_vm0, %v1367_v0 }
  0x8d   : > { %321 = vst.msk [vmem:[#allocation13 + $0x10] sm:$0xff] (!%p1821_p1), %vm310_vm0, %v1367_v0  ;;  %322 = vst.msk [vmem:[#allocation13 + $0x18] sm:$0xff] (!%p1821_p1), %vm310_vm0, %v1367_v0 }
  0x8e   : > { %323 = vst.msk [vmem:[#allocation13 + $0x20] sm:$0xff] (!%p1821_p1), %vm310_vm0, %v1367_v0  ;;  %324 = vst.msk [vmem:[#allocation13 + $0x28] sm:$0xff] (!%p1821_p1), %vm310_vm0, %v1367_v0 }
  0x8f   : > { %325 = vst.msk [vmem:[#allocation13 + $0x30] sm:$0xff] %vm310_vm0, %v1367_v0  ;;  %326 = vst.msk [vmem:[#allocation13 + $0x38] sm:$0xff] %vm310_vm0, %v1367_v0 }
  0x90 PF: > { %v331_v1 = vld [vmem:[#allocation5] sm:$0xff]  ;;  %v1368_v2 = vmov 0   ;;  %v341_v3 = vld [vmem:[#allocation7] sm:$0xff]  ;;  %v1369_v4 = vmov 0.0   ;;  %v330_v7 = vld [vmem:[%s1604_s12 + $0x18] sm:$0xff]  ;;  %vm363_vm1 = vcmask 64512  }
  0x91   : > { %1114 = vset.pattern.permute.xlu0 %v1368_v2  ;;  %452 = vmatprep.mubr.f32.mxu0 %v1369_v4  ;;  %v328_v5 = vld [vmem:[%s1604_s12 + $0x8] sm:$0xff]  ;;  %v327_v8 = vld [vmem:[%s1604_s12] sm:$0xff]  ;;  %v329_v9 = vld [vmem:[%s1604_s12 + $0x10] sm:$0xff]  ;;  %s1012_s27 = sshll.u32 %s1434_s25, 9  ;;  %s821_s17 = sshll.u32 %s1619_s16, 4  ;;  %s1698_s17 = int_to_ptr.vmem [resolvable:$true] %s821_s17 }
  0x92   : > { %334 = vperm.xlu0 %1114, %v331_v1   ;;  %565 = vmatprep.mubr.f32.mxu1 %v1369_v4  ;;  %v355_v23 = vld [vmem:[#allocation8] sm:$0xff]  ;;  %v356_v24 = vld [vmem:[#allocation8 + $0x8] sm:$0xff]  ;;  %v357_v25 = vld [vmem:[#allocation8 + $0x10] sm:$0xff]  ;;  %s1696_s14 = scalar_lea.hbm %s1801_s4, %s1012_s27  ;;  %s808_s10 = scalar_lea.sflag [#allocation4], %s1600_s7 }
  0x93   : > { %v358_v26 = vld [vmem:[#allocation8 + $0x18] sm:$0xff]  ;;  %v359_v27 = vld [vmem:[#allocation8 + $0x20] sm:$0xff]  ;;  %v360_v28 = vld [vmem:[#allocation8 + $0x28] sm:$0xff]  ;;  %s1229_s15 = scalar_lea.vmem %s1698_s17, 4096  ;;  %s1370_s9 = smov [#allocation10]  }
  0x94   : > { %v361_v29 = vld [vmem:[#allocation8 + $0x30] sm:$0xff]  ;;  %v362_v30 = vld [vmem:[#allocation8 + $0x38] sm:$0xff]  ;;  %p1230_p4 = scmp.ne.s32.totalorder %s1698_s17, %s1229_s15  ;;  %s1233_s26 = sshll.u32 %s1370_s9, 4  ;;  %s1234_s26 = int_to_ptr.vmem [resolvable:$false] %s1233_s26 }
  0x95   : > { %s1235_s30 = scalar_lea.vmem %s1234_s26, 8192  ;;  %p1236_p7 = scmp.lt.s32.totalorder %s1698_s17, %s1234_s26 }
  0x96   : > { %344 = vperm.xlu0 %1114, %v341_v3   ;;  %p1231_p9 = pnand %p1230_p4, %p1555_p6  ;;  %p1237_p10 = scmp.lt.s32.totalorder %s1235_s30, %s1229_s15 }
  0x98   : > { %p1232_p3 = pneg %p1231_p9  ;;  %p1238_p13 = por %p1237_p10, %p1236_p7 }
  0x9a   : > { %p1239_p5 = pnand %p1238_p13, %p1232_p3 }
 0x111   : > { %v335_v6 = vpop.permute.xlu0 %334 }
 0x112   : > { %v338_v10 = vmul.f32 %v335_v6, %v328_v5  ;;  %v340_v11 = vmul.f32 %v335_v6, %v330_v7  ;;  %v337_v12 = vmul.f32 %v335_v6, %v327_v8  ;;  %v339_v13 = vmul.f32 %v335_v6, %v329_v9 }
 0x115   : > { %v345_v14 = vpop.permute.xlu0 %344 }
 0x116   : > { %v348_v15 = vadd.f32 %v345_v14, %v338_v10  ;;  %v350_v16 = vadd.f32 %v345_v14, %v340_v11  ;;  %v347_v17 = vadd.f32 %v345_v14, %v337_v12  ;;  %v349_v18 = vadd.f32 %v345_v14, %v339_v13 }
 0x118   : > { %v352_v19 = vmax.f32 %v348_v15, 0.0  ;;  %v354_v20 = vmax.f32 %v350_v16, 0.0  ;;  %v351_v21 = vmax.f32 %v347_v17, 0.0  ;;  %v353_v22 = vmax.f32 %v349_v18, 0.0 }
 0x11a   : > { %388 = vmatprep.subr.mxu0 %v352_v19  ;;  %501 = vmatprep.subr.mxu1 %v354_v20 }
 0x11b   : > { %389 = vmatpush1.msra.mxu0 %v351_v21  ;;  %502 = vmatpush1.msra.mxu1 %v353_v22 }
 0x11c   : > { %986 = vmatmul.mubr.msk.f32.vlgmr.msra.gmra.mrb[0].mxu0 %vm363_vm1, %v355_v23  ;;  %994 = vmatmul.mubr.msk.f32.vlgmr.msra.gmra.mrb[0].mxu1 %vm363_vm1, %v355_v23 }
 0x11d   : > { %458 = vmatprep.mubr.f32.mxu0 %v1369_v4  ;;  %571 = vmatprep.mubr.f32.mxu1 %v1369_v4 }
 0x120   : > { %987 = vmatmul.mubr.msk.f32.gmra.mrb[2].mxu0 %vm363_vm1, %v356_v24  ;;  %995 = vmatmul.mubr.msk.f32.gmra.mrb[2].mxu1 %vm363_vm1, %v356_v24 }
 0x121   : > { %464 = vmatprep.mubr.f32.mxu0 %v1369_v4  ;;  %577 = vmatprep.mubr.f32.mxu1 %v1369_v4 }
 0x124   : > { %988 = vmatmul.mubr.msk.f32.gmra.mrb[4].mxu0 %vm363_vm1, %v357_v25  ;;  %996 = vmatmul.mubr.msk.f32.gmra.mrb[4].mxu1 %vm363_vm1, %v357_v25 }
 0x125   : > { %470 = vmatprep.mubr.f32.mxu0 %v1369_v4  ;;  %583 = vmatprep.mubr.f32.mxu1 %v1369_v4 }
 0x128   : > { %989 = vmatmul.mubr.msk.f32.gmra.mrb[6].mxu0 %vm363_vm1, %v358_v26  ;;  %997 = vmatmul.mubr.msk.f32.gmra.mrb[6].mxu1 %vm363_vm1, %v358_v26 }
 0x129   : > { %476 = vmatprep.mubr.f32.mxu0 %v1369_v4  ;;  %589 = vmatprep.mubr.f32.mxu1 %v1369_v4 }
 0x12c   : > { %990 = vmatmul.mubr.msk.f32.gmra.mrb[8].mxu0 %vm363_vm1, %v359_v27  ;;  %998 = vmatmul.mubr.msk.f32.gmra.mrb[8].mxu1 %vm363_vm1, %v359_v27 }
 0x12d   : > { %482 = vmatprep.mubr.f32.mxu0 %v1369_v4  ;;  %595 = vmatprep.mubr.f32.mxu1 %v1369_v4 }
 0x130   : > { %991 = vmatmul.mubr.msk.f32.gmra.mrb[10].mxu0 %vm363_vm1, %v360_v28  ;;  %999 = vmatmul.mubr.msk.f32.gmra.mrb[10].mxu1 %vm363_vm1, %v360_v28 }
 0x131   : > { %488 = vmatprep.mubr.f32.mxu0 %v1369_v4  ;;  %601 = vmatprep.mubr.f32.mxu1 %v1369_v4 }
 0x134   : > { %992 = vmatmul.mubr.msk.f32.gmra.mrb[12].mxu0 %vm363_vm1, %v361_v29  ;;  %1000 = vmatmul.mubr.msk.f32.gmra.mrb[12].mxu1 %vm363_vm1, %v361_v29 }
 0x135   : > { %494 = vmatprep.mubr.f32.mxu0 %v1369_v4  ;;  %607 = vmatprep.mubr.f32.mxu1 %v1369_v4 }
 0x138   : > { %993 = vmatmul.mubr.msk.f32.gmra.mrb[14].mxu0 %vm363_vm1, %v362_v30  ;;  %1001 = vmatmul.mubr.msk.f32.gmra.mrb[14].mxu1 %vm363_vm1, %v362_v30 }
 0x1ef   : > { %v454_v31 = vpop.f32.mrb[0].mxu0  ;;  %v567_v32 = vpop.f32.mrb[0].mxu1 }
 0x1f0   : > { %614 = vst [vmem:[%s1619_s16] sm:$0xff] %v454_v31  ;;  %v719_v33 = vmul.f32 %v454_v31, %v454_v31  ;;  %v456_v34 = vpop.f32.mrb[1].mxu0  ;;  %616 = vst [vmem:[%s1619_s16 + $0x10] sm:$0xff] %v567_v32  ;;  %v569_v35 = vpop.f32.mrb[1].mxu1  ;;  %v721_v38 = vmul.f32 %v567_v32, %v567_v32 }
 0x1f1   : > { %615 = vst [vmem:[%s1619_s16 + $0x8] sm:$0xff] %v456_v34  ;;  %v654_v36 = vadd.f32 %v456_v34, %v454_v31  ;;  %v720_v37 = vmul.f32 %v456_v34, %v456_v34  ;;  %617 = vst [vmem:[%s1619_s16 + $0x18] sm:$0xff] %v569_v35  ;;  %v722_v47 = vmul.f32 %v569_v35, %v569_v35 }
 0x1f3   : > { %v460_v39 = vpop.f32.mrb[2].mxu0  ;;  %v655_v40 = vadd.f32 %v654_v36, %v567_v32  ;;  %v573_v41 = vpop.f32.mrb[2].mxu1  ;;  %v751_v42 = vadd.f32 %v720_v37, %v719_v33 }
 0x1f4   : > { %618 = vst [vmem:[%s1619_s16 + $0x20] sm:$0xff] %v460_v39  ;;  %v723_v43 = vmul.f32 %v460_v39, %v460_v39  ;;  %v462_v44 = vpop.f32.mrb[3].mxu0  ;;  %620 = vst [vmem:[%s1619_s16 + $0x30] sm:$0xff] %v573_v41  ;;  %v725_v45 = vmul.f32 %v573_v41, %v573_v41  ;;  %v575_v46 = vpop.f32.mrb[3].mxu1 }
 0x1f5   : > { %619 = vst [vmem:[%s1619_s16 + $0x28] sm:$0xff] %v462_v44  ;;  %v659_v48 = vadd.f32 %v462_v44, %v460_v39  ;;  %v724_v49 = vmul.f32 %v462_v44, %v462_v44  ;;  %v656_v50 = vadd.f32 %v655_v40, %v569_v35  ;;  %621 = vst [vmem:[%s1619_s16 + $0x38] sm:$0xff] %v575_v46 }
 0x1f6   : > { %v752_v51 = vadd.f32 %v751_v42, %v721_v38  ;;  %v726_v56 = vmul.f32 %v575_v46, %v575_v46 }
 0x1f7   : > { %657 = vadd.xlane.f32.xlu1 %v656_v50  ;;  %v466_v53 = vpop.f32.mrb[4].mxu0  ;;  %v579_v54 = vpop.f32.mrb[4].mxu1  ;;  %v660_v55 = vadd.f32 %v659_v48, %v573_v41  ;;  %v756_v57 = vadd.f32 %v724_v49, %v723_v43 }
 0x1f8   : > { %v753_v52 = vadd.f32 %v752_v51, %v722_v47  ;;  %622 = vst [vmem:[%s1619_s16 + $0x40] sm:$0xff] %v466_v53  ;;  %v727_v58 = vmul.f32 %v466_v53, %v466_v53  ;;  %v468_v59 = vpop.f32.mrb[5].mxu0  ;;  %624 = vst [vmem:[%s1619_s16 + $0x50] sm:$0xff] %v579_v54  ;;  %v729_v60 = vmul.f32 %v579_v54, %v579_v54  ;;  %v581_v61 = vpop.f32.mrb[5].mxu1 }
 0x1f9   : > { %623 = vst [vmem:[%s1619_s16 + $0x48] sm:$0xff] %v468_v59  ;;  %v664_v62 = vadd.f32 %v468_v59, %v466_v53  ;;  %v728_v63 = vmul.f32 %v468_v59, %v468_v59  ;;  %v661_v0 = vadd.f32 %v660_v55, %v575_v46  ;;  %625 = vst [vmem:[%s1619_s16 + $0x58] sm:$0xff] %v581_v61 }
 0x1fa   : > { %v757_v1 = vadd.f32 %v756_v57, %v725_v45  ;;  %v730_v6 = vmul.f32 %v581_v61, %v581_v61 }
 0x1fb   : > { %754 = vadd.xlane.f32.xlu1 %v753_v52  ;;  %v472_v2 = vpop.f32.mrb[6].mxu0  ;;  %v665_v4 = vadd.f32 %v664_v62, %v579_v54  ;;  %v585_v5 = vpop.f32.mrb[6].mxu1  ;;  %v761_v7 = vadd.f32 %v728_v63, %v727_v58 }
 0x1fc   : > { %v758_v3 = vadd.f32 %v757_v1, %v726_v56  ;;  %626 = vst [vmem:[%s1619_s16 + $0x60] sm:$0xff] %v472_v2  ;;  %v731_v8 = vmul.f32 %v472_v2, %v472_v2  ;;  %v474_v9 = vpop.f32.mrb[7].mxu0  ;;  %628 = vst [vmem:[%s1619_s16 + $0x70] sm:$0xff] %v585_v5  ;;  %v733_v10 = vmul.f32 %v585_v5, %v585_v5  ;;  %v587_v11 = vpop.f32.mrb[7].mxu1 }
 0x1fd   : > { %627 = vst [vmem:[%s1619_s16 + $0x68] sm:$0xff] %v474_v9  ;;  %v669_v12 = vadd.f32 %v474_v9, %v472_v2  ;;  %v732_v13 = vmul.f32 %v474_v9, %v474_v9  ;;  %v666_v14 = vadd.f32 %v665_v4, %v581_v61  ;;  %629 = vst [vmem:[%s1619_s16 + $0x78] sm:$0xff] %v587_v11 }
 0x1fe   : > { %v762_v15 = vadd.f32 %v761_v7, %v729_v60  ;;  %v734_v16 = vmul.f32 %v587_v11, %v587_v11 }
 0x1ff   : > { %662 = vadd.xlane.f32.xlu1 %v661_v0  ;;  %667 = vadd.xlane.f32.xlu0 %v666_v14  ;;  %v478_v17 = vpop.f32.mrb[8].mxu0  ;;  %v591_v19 = vpop.f32.mrb[8].mxu1  ;;  %v766_v20 = vadd.f32 %v732_v13, %v731_v8  ;;  %v670_v21 = vadd.f32 %v669_v12, %v585_v5 }
 0x200   : > { %v763_v18 = vadd.f32 %v762_v15, %v730_v6  ;;  %630 = vst [vmem:[%s1619_s16 + $0x80] sm:$0xff] %v478_v17  ;;  %v735_v22 = vmul.f32 %v478_v17, %v478_v17  ;;  %v480_v23 = vpop.f32.mrb[9].mxu0  ;;  %632 = vst [vmem:[%s1619_s16 + $0x90] sm:$0xff] %v591_v19  ;;  %v737_v24 = vmul.f32 %v591_v19, %v591_v19  ;;  %v593_v25 = vpop.f32.mrb[9].mxu1 }
 0x201   : > { %631 = vst [vmem:[%s1619_s16 + $0x88] sm:$0xff] %v480_v23  ;;  %v674_v26 = vadd.f32 %v480_v23, %v478_v17  ;;  %v736_v27 = vmul.f32 %v480_v23, %v480_v23  ;;  %633 = vst [vmem:[%s1619_s16 + $0x98] sm:$0xff] %v593_v25  ;;  %v767_v28 = vadd.f32 %v766_v20, %v733_v10 }
 0x202   : > { %v671_v29 = vadd.f32 %v670_v21, %v587_v11  ;;  %v738_v34 = vmul.f32 %v593_v25, %v593_v25 }
 0x203   : > { %759 = vadd.xlane.f32.xlu1 %v758_v3  ;;  %v768_v30 = vadd.f32 %v767_v28, %v734_v16  ;;  %v484_v31 = vpop.f32.mrb[10].mxu0  ;;  %v675_v32 = vadd.f32 %v674_v26, %v591_v19  ;;  %v597_v33 = vpop.f32.mrb[10].mxu1  ;;  %v771_v35 = vadd.f32 %v736_v27, %v735_v22 }
 0x204   : > { %634 = vst [vmem:[%s1619_s16 + $0xa0] sm:$0xff] %v484_v31  ;;  %v739_v36 = vmul.f32 %v484_v31, %v484_v31  ;;  %v486_v37 = vpop.f32.mrb[11].mxu0  ;;  %636 = vst [vmem:[%s1619_s16 + $0xb0] sm:$0xff] %v597_v33  ;;  %v741_v38 = vmul.f32 %v597_v33, %v597_v33  ;;  %v599_v39 = vpop.f32.mrb[11].mxu1 }
 0x205   : > { %769 = vadd.xlane.f32.xlu0 %v768_v30  ;;  %635 = vst [vmem:[%s1619_s16 + $0xa8] sm:$0xff] %v486_v37  ;;  %v679_v40 = vadd.f32 %v486_v37, %v484_v31  ;;  %v740_v41 = vmul.f32 %v486_v37, %v486_v37  ;;  %v676_v42 = vadd.f32 %v675_v32, %v593_v25  ;;  %637 = vst [vmem:[%s1619_s16 + $0xb8] sm:$0xff] %v599_v39 }
 0x206   : > { %v772_v43 = vadd.f32 %v771_v35, %v737_v24  ;;  %v742_v47 = vmul.f32 %v599_v39, %v599_v39 }
 0x207   : > { %764 = vadd.xlane.f32.xlu1 %v763_v18  ;;  %v490_v44 = vpop.f32.mrb[12].mxu0  ;;  %v603_v46 = vpop.f32.mrb[12].mxu1  ;;  %v776_v48 = vadd.f32 %v740_v41, %v739_v36  ;;  %v680_v49 = vadd.f32 %v679_v40, %v597_v33 }
 0x208   : > { %v773_v45 = vadd.f32 %v772_v43, %v738_v34  ;;  %638 = vst [vmem:[%s1619_s16 + $0xc0] sm:$0xff] %v490_v44  ;;  %v743_v50 = vmul.f32 %v490_v44, %v490_v44  ;;  %v492_v51 = vpop.f32.mrb[13].mxu0  ;;  %640 = vst [vmem:[%s1619_s16 + $0xd0] sm:$0xff] %v603_v46  ;;  %v605_v52 = vpop.f32.mrb[13].mxu1  ;;  %v745_v57 = vmul.f32 %v603_v46, %v603_v46 }
 0x209   : > { %639 = vst [vmem:[%s1619_s16 + $0xc8] sm:$0xff] %v492_v51  ;;  %v684_v53 = vadd.f32 %v492_v51, %v490_v44  ;;  %v744_v54 = vmul.f32 %v492_v51, %v492_v51  ;;  %641 = vst [vmem:[%s1619_s16 + $0xd8] sm:$0xff] %v605_v52  ;;  %v777_v55 = vadd.f32 %v776_v48, %v741_v38 }
 0x20a   : > { %v681_v56 = vadd.f32 %v680_v49, %v599_v39  ;;  %v746_v2 = vmul.f32 %v605_v52, %v605_v52 }
 0x20b   : > { %672 = vadd.xlane.f32.xlu1 %v671_v29  ;;  %v496_v58 = vpop.f32.mrb[14].mxu0  ;;  %v778_v59 = vadd.f32 %v777_v55, %v742_v47  ;;  %v609_v60 = vpop.f32.mrb[14].mxu1  ;;  %v685_v61 = vadd.f32 %v684_v53, %v603_v46  ;;  %v781_v62 = vadd.f32 %v744_v54, %v743_v50 }
 0x20c   : > { %642 = vst [vmem:[%s1619_s16 + $0xe0] sm:$0xff] %v496_v58  ;;  %v747_v63 = vmul.f32 %v496_v58, %v496_v58  ;;  %v498_v0 = vpop.f32.mrb[15].mxu0  ;;  %644 = vst [vmem:[%s1619_s16 + $0xf0] sm:$0xff] %v609_v60  ;;  %v611_v1 = vpop.f32.mrb[15].mxu1  ;;  %v749_v5 = vmul.f32 %v609_v60, %v609_v60 }
 0x20d   : > { %643 = vst [vmem:[%s1619_s16 + $0xe8] sm:$0xff] %v498_v0  ;;  %v689_v3 = vadd.f32 %v498_v0, %v496_v58  ;;  %v748_v4 = vmul.f32 %v498_v0, %v498_v0  ;;  %779 = vadd.xlane.f32.xlu0 %v778_v59  ;;  %645 = vst [vmem:[%s1619_s16 + $0xf8] sm:$0xff] %v611_v1  ;;  %v686_v6 = vadd.f32 %v685_v61, %v605_v52 }
 0x20e   : > { %v782_v7 = vadd.f32 %v781_v62, %v745_v57  ;;  %v750_v9 = vmul.f32 %v611_v1, %v611_v1 }
 0x20f   : > { %677 = vadd.xlane.f32.xlu1 %v676_v42  ;;  %v786_v8 = vadd.f32 %v748_v4, %v747_v63  ;;  %v690_v10 = vadd.f32 %v689_v3, %v609_v60 }
 0x210   : > { %v783_v11 = vadd.f32 %v782_v7, %v746_v2 }
 0x211   : > { %v787_v12 = vadd.f32 %v786_v8, %v749_v5  ;;  %v691_v13 = vadd.f32 %v690_v10, %v611_v1 }
 0x213   : > { %774 = vadd.xlane.f32.xlu1 %v773_v45  ;;  %v788_v14 = vadd.f32 %v787_v12, %v750_v9 }
 0x215   : > { %789 = vadd.xlane.f32.xlu0 %v788_v14 }
 0x217   : > { %682 = vadd.xlane.f32.xlu1 %v681_v56 }
 0x21b   : > { %687 = vadd.xlane.f32.xlu1 %v686_v6 }
 0x21f   : > { %692 = vadd.xlane.f32.xlu1 %v691_v13 }
 0x223   : > { %784 = vadd.xlane.f32.xlu1 %v783_v11 }
 0x224   : > { %1242 = shalt.err (!%p1239_p5)
}
 0x225   : > { %s1243_s13 = scalar_lea.hbm %s1696_s14, 4096  ;;  %s1247_s16 = scalar_lea.hbm %s1801_s4, 65536 }
 0x226   : > { %p1244_p0 = scmp.ne.s32.totalorder %s1696_s14, %s1243_s13  ;;  %p1248_p12 = scmp.lt.u32.totalorder %s1696_s14, %s1801_s4 }
 0x227   : > { %p1249_p2 = scmp.lt.u32.totalorder %s1247_s16, %s1243_s13  ;;  %p1251_p4 = scmp.lt.u32.totalorder %s1243_s13, %s1696_s14 }
 0x228   : > { %p1245_p11 = pnand %p1244_p0, %p1555_p6 }
 0x229   : > { %p1250_p1 = por %p1249_p2, %p1248_p12 }
 0x22a   : > { %p1246_p8 = pneg %p1245_p11 }
 0x22b   : > { %p1252_p9 = por %p1251_p4, %p1250_p1 }
 0x22d   : > { %p1253_p3 = pnand %p1252_p9, %p1246_p8 }
 0x22f   : > { %1256 = shalt.err (!%p1253_p3)
}
 0x230   : > { %s1371_s19 = smov 512   ;;  %s1372_s15 = smov 8192   ;;  %v646_v15 = vld [vmem:[#allocation11] sm:$0xff]  ;;  %vm702_vm2 = vcmask 7168   ;;  %v647_v21 = vld [vmem:[#allocation11 + $0x8] sm:$0xff]  ;;  %v648_v22 = vld [vmem:[#allocation11 + $0x10] sm:$0xff] }
 0x231   : > { %s1373_s9 = smov 32   ;;  %v711_v18 = vld [vmem:[#allocation13] sm:$0xff]  ;;  %v712_v27 = vld [vmem:[#allocation13 + $0x8] sm:$0xff]  ;;  %v714_v29 = vld [vmem:[#allocation13 + $0x18] sm:$0xff]  ;;  %s1374_s11 = smov [#allocation11]  }
 0x232   : > { %1027 = dma.vmem_to_hbm [thread:$0]  (%p1555_p6), %s1698_s17, 4096, %s1696_s14, %s808_s10, %s1371_s19, %s1372_s15, %s1373_s9   ;;  %v713_v31 = vld [vmem:[#allocation13 + $0x10] sm:$0xff]  ;;  %v649_v36 = vld [vmem:[#allocation11 + $0x18] sm:$0xff]  ;;  %v716_v38 = vld [vmem:[#allocation13 + $0x28] sm:$0xff] }
 0x233   : > { %v650_v40 = vld [vmem:[#allocation11 + $0x20] sm:$0xff]  ;;  %v718_v47 = vld [vmem:[#allocation13 + $0x38] sm:$0xff]  ;;  %v651_v49 = vld [vmem:[#allocation11 + $0x28] sm:$0xff]  ;;  %s834_s7 = sshll.u32 %s1374_s11, 4  ;;  %s1375_s17 = smov [#allocation13]   ;;  %s835_s7 = int_to_ptr.vmem [resolvable:$true] %s834_s7 }
 0x234   : > { %v715_v45 = vld [vmem:[#allocation13 + $0x20] sm:$0xff]  ;;  %v652_v54 = vld [vmem:[#allocation11 + $0x30] sm:$0xff]  ;;  %v653_v57 = vld [vmem:[#allocation11 + $0x38] sm:$0xff]  ;;  %s847_s14 = sshll.u32 %s1375_s17, 4  ;;  %s1257_s10 = scalar_lea.vmem %s835_s7, 1024  ;;  %s848_s14 = int_to_ptr.vmem [resolvable:$true] %s847_s14 }
 0x235   : > { %v717_v60 = vld [vmem:[#allocation13 + $0x30] sm:$0xff]  ;;  %p1258_p6 = scmp.ne.s32.totalorder %s835_s7, %s1257_s10  ;;  %p1822_p7 = scmp.eq.s32.totalorder %s1434_s25, 15 }
 0x236   : > { %p1264_p5 = scmp.lt.s32.totalorder %s835_s7, %s835_s7  ;;  %p1265_p0 = scmp.lt.s32.totalorder %s1257_s10, %s1257_s10 }
 0x237   : > { %p1259_p10 = pnand %p1258_p6, %p1822_p7 }
 0x238   : > { %p1266_p11 = por %p1265_p0, %p1264_p5 }
 0x239   : > { %p1260_p13 = pneg %p1259_p10 }
 0x23b   : > { %p1267_p8 = pnand %p1266_p11, %p1260_p13 }
 0x284   : > { %v658_v16 = vpop.xlane.xlu1 %657 }
 0x285   : > { %v694_v17 = vadd.f32 %v658_v16, %v646_v15 }
 0x287   : > { %703 = vst.msk [vmem:[#allocation11] sm:$0xff] %vm702_vm2, %v694_v17 }
 0x288   : > { %v755_v19 = vpop.xlane.xlu1 %754 }
 0x289   : > { %v791_v20 = vadd.f32 %v755_v19, %v711_v18 }
 0x28b   : > { %799 = vst.msk [vmem:[#allocation13] sm:$0xff] %vm702_vm2, %v791_v20 }
 0x28c   : > { %v663_v23 = vpop.xlane.xlu1 %662  ;;  %v668_v24 = vpop.xlane.xlu0 %667 }
 0x28d   : > { %v695_v25 = vadd.f32 %v663_v23, %v647_v21  ;;  %v696_v26 = vadd.f32 %v668_v24, %v648_v22 }
 0x28f   : > { %704 = vst.msk [vmem:[#allocation11 + $0x8] sm:$0xff] %vm702_vm2, %v695_v25  ;;  %705 = vst.msk [vmem:[#allocation11 + $0x10] sm:$0xff] %vm702_vm2, %v696_v26 }
 0x290   : > { %v760_v28 = vpop.xlane.xlu1 %759 }
 0x291   : > { %v792_v30 = vadd.f32 %v760_v28, %v712_v27 }
 0x292   : > { %v770_v32 = vpop.xlane.xlu0 %769 }
 0x293   : > { %800 = vst.msk [vmem:[#allocation13 + $0x8] sm:$0xff] %vm702_vm2, %v792_v30  ;;  %v794_v33 = vadd.f32 %v770_v32, %v714_v29 }
 0x294   : > { %v765_v34 = vpop.xlane.xlu1 %764 }
 0x295   : > { %v793_v35 = vadd.f32 %v765_v34, %v713_v31  ;;  %802 = vst.msk [vmem:[#allocation13 + $0x18] sm:$0xff] %vm702_vm2, %v794_v33 }
 0x297   : > { %801 = vst.msk [vmem:[#allocation13 + $0x10] sm:$0xff] %vm702_vm2, %v793_v35 }
 0x298   : > { %v673_v37 = vpop.xlane.xlu1 %672 }
 0x299   : > { %v697_v39 = vadd.f32 %v673_v37, %v649_v36 }
 0x29a   : > { %v780_v41 = vpop.xlane.xlu0 %779 }
 0x29b   : > { %706 = vst.msk [vmem:[#allocation11 + $0x18] sm:$0xff] %vm702_vm2, %v697_v39  ;;  %v796_v42 = vadd.f32 %v780_v41, %v716_v38 }
 0x29c   : > { %v678_v43 = vpop.xlane.xlu1 %677 }
 0x29d   : > { %v698_v44 = vadd.f32 %v678_v43, %v650_v40  ;;  %804 = vst.msk [vmem:[#allocation13 + $0x28] sm:$0xff] %vm702_vm2, %v796_v42 }
 0x29f   : > { %707 = vst.msk [vmem:[#allocation11 + $0x20] sm:$0xff] %vm702_vm2, %v698_v44 }
 0x2a0   : > { %v775_v46 = vpop.xlane.xlu1 %774 }
 0x2a1   : > { %v795_v48 = vadd.f32 %v775_v46, %v715_v45 }
 0x2a2   : > { %v790_v50 = vpop.xlane.xlu0 %789 }
 0x2a3   : > { %803 = vst.msk [vmem:[#allocation13 + $0x20] sm:$0xff] %vm702_vm2, %v795_v48  ;;  %v798_v51 = vadd.f32 %v790_v50, %v718_v47 }
 0x2a4   : > { %v683_v52 = vpop.xlane.xlu1 %682 }
 0x2a5   : > { %v699_v53 = vadd.f32 %v683_v52, %v651_v49  ;;  %806 = vst.msk [vmem:[#allocation13 + $0x38] sm:$0xff] %vm702_vm2, %v798_v51 }
 0x2a7   : > { %708 = vst.msk [vmem:[#allocation11 + $0x28] sm:$0xff] %vm702_vm2, %v699_v53 }
 0x2a8   : > { %v688_v55 = vpop.xlane.xlu1 %687 }
 0x2a9   : > { %v700_v56 = vadd.f32 %v688_v55, %v652_v54 }
 0x2ab   : > { %709 = vst.msk [vmem:[#allocation11 + $0x30] sm:$0xff] %vm702_vm2, %v700_v56 }
 0x2ac   : > { %v693_v58 = vpop.xlane.xlu1 %692 }
 0x2ad   : > { %v701_v59 = vadd.f32 %v693_v58, %v653_v57 }
 0x2af   : > { %710 = vst.msk [vmem:[#allocation11 + $0x38] sm:$0xff] %vm702_vm2, %v701_v59 }
 0x2b0   : > { %v785_v61 = vpop.xlane.xlu1 %784 }
 0x2b1   : > { %1270 = shalt.err (!%p1267_p8)
}
 0x2b2   : > { %s1271_s13 = scalar_lea.hbm %s1802_s5, 1024  ;;  %p1823_p2 = pmov %p1822_p7 }
 0x2b3   : > { %p1272_p12 = scmp.ne.s32.totalorder %s1802_s5, %s1271_s13  ;;  %p1277_p9 = scmp.lt.u32.totalorder %s1271_s13, %s1802_s5 }
 0x2b5   : > { %p1273_p1 = pnand %p1272_p12, %p1823_p2 }
 0x2b7   : > { %p1274_p4 = pneg %p1273_p1 }
 0x2b9   : > { %p1279_p3 = pnand %p1277_p9, %p1274_p4 }
 0x2bb   : > { %1282 = shalt.err (!%p1279_p3)
}
 0x2bc   : > { %s1376_s18 = smov 128   ;;  %s1377_s19 = smov 8   ;;  %v797_v62 = vadd.f32 %v785_v61, %v717_v60 }
 0x2bd   : > { %p1824_p6 = pmov %p1823_p2  ;;  %s1283_s11 = scalar_lea.vmem %s848_s14, 1024 }
 0x2be   : > { %805 = vst.msk [vmem:[#allocation13 + $0x30] sm:$0xff] %vm702_vm2, %v797_v62  ;;  %p1284_p7 = scmp.ne.s32.totalorder %s848_s14, %s1283_s11  ;;  %p1825_p10 = pmov %p1823_p2 }
 0x2bf   : > { %1029 = dma.vmem_to_hbm [thread:$0]  (%p1824_p6), %s835_s7, 1024, %s1802_s5, [#allocation12], %s1376_s18, %s1376_s18, %s1377_s19  }
 0x2c0   : > { %p1285_p13 = pnand %p1284_p7, %p1825_p10  ;;  %p1290_p0 = scmp.lt.s32.totalorder %s848_s14, %s848_s14 }
 0x2c1   : > { %p1291_p11 = scmp.lt.s32.totalorder %s1283_s11, %s1283_s11 }
 0x2c2   : > { %p1286_p5 = pneg %p1285_p13 }
 0x2c3   : > { %p1292_p8 = por %p1291_p11, %p1290_p0 }
 0x2c5   : > { %p1293_p12 = pnand %p1292_p8, %p1286_p5 }
 0x2c7   : > { %1296 = shalt.err (!%p1293_p12)
}
 0x2c8   : > { %s1297_s26 = scalar_lea.hbm %s1803_s6, 1024  ;;  %p1826_p1 = pmov %p1824_p6 }
 0x2c9   : > { %p1298_p2 = scmp.ne.s32.totalorder %s1803_s6, %s1297_s26  ;;  %p1303_p3 = scmp.lt.u32.totalorder %s1297_s26, %s1803_s6 }
 0x2cb   : > { %p1299_p4 = pnand %p1298_p2, %p1826_p1 }
 0x2cd   : > { %p1300_p9 = pneg %p1299_p4 }
 0x2cf   : > { %p1305_p6 = pnand %p1303_p3, %p1300_p9 }
 0x2d1   : > { %1308 = shalt.err (!%p1305_p6)
}
 0x2d2   : > { %p1827_p7 = pmov %p1826_p1  ;;  %p1828_p10 = pmov %p1826_p1 }
 0x2d4   : > { %1031 = dma.vmem_to_hbm [thread:$0]  (%p1827_p7), %s848_s14, 1024, %s1803_s6, [#allocation12], %s1376_s18, %s1376_s18, %s1377_s19  }
 0x2d5   : > { %1338 = dma.done.wait (%p1828_p10), [#allocation12], 2048   ;;  %p1829_p13 = pmov %p1826_p1 }
 0x2d7   : > { %1340 = vsyncadd (%p1829_p13), [#allocation12], 4294965248 }
 0x2d8 PF: > { %p1066_p5 = scmp.ge.s32.totalorder %s1359_s24, 2  ;;  %s870_s27 = sand.u32 1, %s1347_s21  }
 0x2d9   : > { %p1830_p0 = scmp.ne.s32.totalorder %s1808_s28, 0  ;;  %s871_s15 = scalar_lea.sflag [#allocation4], %s870_s27 }
 0x2db   : > { %p1052_p11 = pnand %p1066_p5, %p1830_p0 }
 0x2dd   : > { %1342 = dma.done.wait (!%p1052_p11), %s871_s15, 4096  }
 0x2de   : > { %1344 = vsyncadd (!%p1052_p11), %s871_s15, 4294963200  ;;  %p23_p8 = scmp.ge.s32.totalorder %s1541_s20, 18   ;;  %s1831_s21 = smov %s1351_s22 }
 0x2df   : > { %s1832_s22 = smov %s1355_s23  ;;  %s1833_s23 = smov %s1551_s8 }
 0x2e0   : > { %s1834_s24 = smov %s1541_s20  ;;  %25 = sbr.rel (!%p23_p8) target bundleno = 8 (0x8), region = 113 }
 0x2e7   :  { %876 = vsyncpa [#allocation3], 1 }
 0x2e8   :  { %878 = vsyncpa [#allocation3 + $0x1], 1 }
 0x2e9   :  { %879 = vsyncpa [#allocation6], 1 }
 0x2ea   :  { %880 = vsyncpa [#allocation9], 1 }
 0x2eb   :  { %881 = vsyncpa [#allocation4], 1 }
 0x2ec   :  { %883 = vsyncpa [#allocation4 + $0x1], 1 }
 0x2ed   :  { %884 = vsyncpa [#allocation12], 1 }

// kernel: linknet_up_3d.7
= control target key start
LH: loop header
LB: loop body
LE: loop exit
PB: predicated region body
PF: predicated region fallthrough
CT: control target
= control target key end

     0   :  { %8 = vsyncpa [#allocation3], 0  ;;  %s1228_s0 = inlined_call_operand.hbm [shape: f32[64,8192], index: 0, kind: input, shape index: {}]   ;;  %s1229_s1 = inlined_call_operand.hbm [shape: f32[64,1], index: 1, kind: input, shape index: {}]   ;;  %s1230_s2 = inlined_call_operand.hbm [shape: f32[64,1], index: 2, kind: input, shape index: {}]   ;;  %s1231_s3 = inlined_call_operand.hbm [shape: f32[64,8192], index: 3, kind: output, shape index: {}]  }
   0x1   :  { %10 = vsyncpa [#allocation3 + $0x1], 0 }
   0x2   :  { %11 = vsyncpa [#allocation6], 0 }
   0x3   :  { %12 = vsyncpa [#allocation4], 0 }
   0x4   :  { %14 = vsyncpa [#allocation4 + $0x1], 0  ;;  %s871_s12 = smov 0   ;;  %s873_s13 = smov 0  }
   0x5   :  { %s875_s14 = smov 0   ;;  %s877_s15 = smov 0  }
   0x6 LB: > { %s892_s16 = sadd.s32 4294967295, %s836_s15   ;;  %s582_s17 = sadd.s32 4294967294, %s836_s15   ;;  %s836_s15 = sphi %s877_s15, %s1256_s15   ;;  %s832_s14 = sphi %s875_s14, %s1255_s14   ;;  %s828_s13 = sphi %s873_s13, %s1254_s13   ;;  %s824_s12 = sphi %s871_s12, %s1253_s12  }
   0x7   : > { %s896_s18 = sadd.s32 1, %s836_s15   ;;  %s27_s19 = sadd.s32 1, %s832_s14 }
   0x8   : > { %s24_s20 = ssub.s32 %s836_s15, %s896_s18  ;;  %p34_p0 = scmp.ne.s32.totalorder %s832_s14, %s828_s13 }
   0x9   : > { %p25_p1 = scmp.eq.s32.totalorder %s24_s20, 0  ;;  %p35_p2 = scmp.eq.s32.totalorder %s836_s15, 0 }
   0xa   : > { %p40_p3 = scmp.ne.s32.totalorder %s828_s13, %s824_s12  ;;  %p1232_p4 = scmp.eq.s32.totalorder %s892_s16, 0 }
   0xb   : > { %s908_s21 = scalar_select %p25_p1, %s832_s14, %s27_s19  }
   0xc   : > { %p910_p5 = por %p35_p2, %p34_p0  ;;  %p916_p6 = por %p1232_p4, %p40_p3 }
   0xd   : > { %p106_p7 = scmp.eq.s32.totalorder %s892_s16, 15  ;;  %p112_p8 = scmp.eq.s32.totalorder %s582_s17, 15 }
   0xe   : > { %s1237_s22 = scalar_select %p910_p5, 1, 0 }
   0xf   : > { %s1238_s23 = scalar_select %p916_p6, 1, 0 }
  0x10   : > { %p583_p9 = scmp.ge.s32.totalorder %s836_s15, 1  ;;  %p119_p10 = scmp.lt.s32.totalorder %s836_s15, 17 }
  0x11   : > { %p923_p11 = por %p106_p7, %p34_p0  ;;  %p927_p12 = por %p112_p8, %p40_p3 }
  0x12   : > { %p931_p13 = pnand %p583_p9, %p119_p10  ;;  %s838_s27 = smov [#allocation5]  }
  0x13   : > { %s1239_s24 = scalar_select %p923_p11, 1, 0 }
  0x14   : > { %s1240_s25 = scalar_select %p927_p12, 1, 0 }
  0x15   : > { %s1241_s26 = scalar_select %p931_p13, 1, 0 }
  0x16   : > { %p614_p1 = pneg %p931_p13  ;;  %s131_s28 = sshll.u32 %s838_s27, 4  ;;  %s132_s28 = int_to_ptr.vmem [resolvable:$true] %s131_s28 }
  0x17   : > { %s839_s30 = smov [#allocation7]   ;;  %s680_s7 = scalar_lea.hbm %s1229_s1, 1024 }
  0x18   : > { %p939_p2 = pnand %p614_p1, %p1232_p4  ;;  %s144_s4 = sshll.u32 %s839_s30, 4  ;;  %s145_s4 = int_to_ptr.vmem [resolvable:$true] %s144_s4 }
  0x19   : > { %p681_p3 = scmp.ne.s32.totalorder %s1229_s1, %s680_s7  ;;  %p687_p10 = scmp.lt.u32.totalorder %s680_s7, %s1229_s1 }
  0x1a   : > { %p682_p7 = pneg %p939_p2 }
  0x1c   : > { %p683_p8 = pnand %p682_p7, %p681_p3 }
  0x1e   : > { %p684_p9 = pneg %p683_p8 }
  0x20   : > { %p689_p1 = pnand %p687_p10, %p684_p9 }
  0x22   : > { %692 = shalt.err (!%p689_p1)
}
  0x23   : > { %s693_s17 = scalar_lea.vmem %s132_s28, 1024  ;;  %p701_p11 = scmp.lt.s32.totalorder %s132_s28, %s132_s28 }
  0x24   : > { %p694_p4 = scmp.ne.s32.totalorder %s132_s28, %s693_s17  ;;  %p702_p6 = scmp.lt.s32.totalorder %s693_s17, %s693_s17 }
  0x26   : > { %p696_p0 = pnand %p694_p4, %p682_p7  ;;  %p703_p13 = por %p702_p6, %p701_p11 }
  0x28   : > { %p697_p12 = pneg %p696_p0 }
  0x2a   : > { %p704_p5 = pnand %p703_p13, %p697_p12 }
  0x2c   : > { %707 = shalt.err (!%p704_p5)
}
  0x2d   : > { %s840_s19 = smov 128   ;;  %s841_s20 = smov 8  }
  0x2e   : > { %617 = dma.hbm_to_vmem [thread:$0]  (!%p939_p2), %s1229_s1, 1024, %s132_s28, [#allocation6], %s840_s19, %s840_s19, %s841_s20  }
  0x2f   : > { %p1243_p3 = scmp.ne.s32.totalorder %s1237_s22, 0  ;;  %p1244_p8 = scmp.lt.s32.totalorder %s836_s15, 16 }
  0x30   : > { %s708_s8 = scalar_lea.hbm %s1230_s2, 1024 }
  0x31   : > { %p970_p4 = pnand %p1244_p8, %p1243_p3  ;;  %p709_p5 = scmp.ne.s32.totalorder %s1230_s2, %s708_s8 }
  0x32   : > { %p715_p12 = scmp.lt.u32.totalorder %s708_s8, %s1230_s2 }
  0x33   : > { %s1245_s5 = scalar_select %p970_p4, 1, 0 }
  0x34   : > { %p711_p6 = pnand %p709_p5, %p682_p7 }
  0x36   : > { %p712_p11 = pneg %p711_p6 }
  0x38   : > { %p717_p13 = pnand %p715_p12, %p712_p11 }
  0x3a   : > { %720 = shalt.err (!%p717_p13)
}
  0x3b   : > { %s721_s11 = scalar_lea.vmem %s145_s4, 1024  ;;  %p729_p1 = scmp.lt.s32.totalorder %s145_s4, %s145_s4 }
  0x3c   : > { %p722_p0 = scmp.ne.s32.totalorder %s145_s4, %s721_s11  ;;  %p730_p3 = scmp.lt.s32.totalorder %s721_s11, %s721_s11 }
  0x3e   : > { %p724_p9 = pnand %p722_p0, %p682_p7  ;;  %p731_p8 = por %p730_p3, %p729_p1 }
  0x40   : > { %p725_p10 = pneg %p724_p9 }
  0x42   : > { %p732_p4 = pnand %p731_p8, %p725_p10 }
  0x44   : > { %735 = shalt.err (!%p732_p4)
}
  0x45   : > { %620 = dma.hbm_to_vmem [thread:$0]  (!%p939_p2), %s1230_s2, 1024, %s145_s4, [#allocation6], %s840_s19, %s840_s19, %s841_s20  }
  0x46   : > { %s158_s30 = sand.u32 1, %s832_s14   ;;  %s600_s7 = sshll.u32 %s836_s15, 9 }
  0x47   : > { %s587_s6 = sshll.u32 %s158_s30, 8  ;;  %s999_s10 = scalar_lea.hbm %s1228_s0, %s600_s7 }
  0x48   : > { %s162_s29 = scalar_lea.vmem [#allocation2], %s587_s6  ;;  %s1003_s22 = scalar_lea.sflag [#allocation3], %s158_s30 }
  0x49   : > { %s169_s28 = sshll.u32 %s162_s29, 4  ;;  %s736_s11 = scalar_lea.hbm %s999_s10, 4096  ;;  %s1001_s28 = int_to_ptr.vmem [resolvable:$true] %s169_s28 }
  0x4a   : > { %p737_p2 = scmp.ne.s32.totalorder %s999_s10, %s736_s11  ;;  %p1246_p7 = scmp.ne.s32.totalorder %s1245_s5, 0 }
  0x4b   : > { %s741_s20 = scalar_lea.hbm %s1228_s0, 65536  ;;  %p742_p11 = scmp.lt.u32.totalorder %s999_s10, %s1228_s0 }
  0x4c   : > { %p738_p4 = pneg %p1246_p7  ;;  %p743_p12 = scmp.lt.u32.totalorder %s741_s20, %s736_s11 }
  0x4d   : > { %p745_p0 = scmp.lt.u32.totalorder %s736_s11, %s999_s10 }
  0x4e   : > { %p739_p5 = pnand %p738_p4, %p737_p2  ;;  %p744_p13 = por %p743_p12, %p742_p11 }
  0x50   : > { %p740_p6 = pneg %p739_p5  ;;  %p746_p9 = por %p745_p0, %p744_p13 }
  0x52   : > { %p747_p10 = pnand %p746_p9, %p740_p6 }
  0x54   : > { %750 = shalt.err (!%p747_p10)
}
  0x55   : > { %s751_s30 = scalar_lea.vmem %s1001_s28, 4096  ;;  %s842_s6 = smov [#allocation2]  }
  0x56   : > { %p752_p1 = scmp.ne.s32.totalorder %s1001_s28, %s751_s30  ;;  %s756_s7 = sshll.u32 %s842_s6, 4  ;;  %s757_s7 = int_to_ptr.vmem [resolvable:$false] %s756_s7 }
  0x57   : > { %s758_s8 = scalar_lea.vmem %s757_s7, 8192  ;;  %p759_p2 = scmp.lt.s32.totalorder %s1001_s28, %s757_s7 }
  0x58   : > { %p754_p3 = pnand %p752_p1, %p738_p4  ;;  %p760_p5 = scmp.lt.s32.totalorder %s758_s8, %s751_s30 }
  0x5a   : > { %p755_p8 = pneg %p754_p3  ;;  %p761_p11 = por %p760_p5, %p759_p2 }
  0x5c   : > { %p762_p12 = pnand %p761_p11, %p755_p8 }
  0x5e   : > { %765 = shalt.err (!%p762_p12)
}
  0x5f   : > { %s843_s9 = smov 8192   ;;  %s844_s29 = smov 512  }
  0x60   : > { %s845_s11 = smov 32   ;;  %p1247_p4 = scmp.ne.s32.totalorder %s1241_s26, 0 }
  0x61   : > { %624 = dma.hbm_to_vmem [thread:$0]  (!%p1246_p7), %s999_s10, 4096, %s1001_s28, %s1003_s22, %s843_s9, %s844_s29, %s845_s11  }
  0x62   : > { %181 = sbr.rel (%p1247_p4) target bundleno = 291 (0x123), region = 32  ;;  %s1034_s4 = sand.u32 (!%p1247_p4), 1, %s828_s13  }
  0x63   : > { %s591_s19 = sshll.u32 (!%p1247_p4), %s1034_s4, 8  ;;  %s184_s20 = scalar_lea.sflag (!%p1247_p4), [#allocation3], %s1034_s4 }
  0x64   : > { %s1040_s17 = scalar_lea.vmem (!%p1247_p4), [#allocation2], %s591_s19  ;;  %p1248_p6 = scmp.ne.s32.totalorder (!%p1247_p4), %s1238_s23, 0 }
  0x69   : > { %811 = dma.done.wait (%p1248_p6), %s184_s20, 4096  }
  0x6a   : > { %813 = vsyncadd (%p1248_p6), %s184_s20, 4294963200  ;;  %p1249_p7 = scmp.eq.s32.totalorder %s892_s16, 0 }
  0x6c   : > { %815 = dma.done.wait (%p1249_p7), [#allocation6], 2048   ;;  %p1250_p13 = pmov %p1249_p7 }
  0x6d   : > { %v846_v0 = vmov 0   ;;  %v254_v1 = vld [vmem:[#allocation5 + $0x10] sm:$0xff]  ;;  %v252_v2 = vld [vmem:[#allocation5] sm:$0xff]  ;;  %v255_v3 = vld [vmem:[#allocation5 + $0x18] sm:$0xff]  ;;  %s1124_s23 = scalar_lea.vmem [#allocation8], %s591_s19  ;;  %s601_s26 = sshll.u32 %s892_s16, 9 }
  0x6e   : > { %817 = vsyncadd (%p1250_p13), [#allocation6], 4294965248  ;;  %679 = vset.pattern.permute.xlu1 %v846_v0  ;;  %678 = vset.pattern.permute.xlu0 %v846_v0  ;;  %v253_v4 = vld [vmem:[#allocation5 + $0x8] sm:$0xff]  ;;  %v256_v6 = vld [vmem:[#allocation5 + $0x20] sm:$0xff]  ;;  %s490_s5 = sshll.u32 %s1124_s23, 4  ;;  %s1175_s28 = scalar_lea.hbm %s1231_s3, %s601_s26  ;;  %s1177_s5 = int_to_ptr.vmem [resolvable:$true] %s490_s5 }
  0x6f   : > { %272 = vperm.xlu1 %679, %v254_v1   ;;  %262 = vperm.xlu0 %678, %v252_v2   ;;  %v257_v5 = vld [vmem:[#allocation5 + $0x28] sm:$0xff]  ;;  %v259_v7 = vld [vmem:[#allocation5 + $0x38] sm:$0xff]  ;;  %v258_v8 = vld [vmem:[#allocation5 + $0x30] sm:$0xff]  ;;  %s477_s22 = scalar_lea.sflag [#allocation4], %s1034_s4  ;;  %s766_s27 = scalar_lea.vmem %s1177_s5, 4096 }
  0x70   : > { %v333_v9 = vld [vmem:[#allocation7 + $0x8] sm:$0xff]  ;;  %v332_v10 = vld [vmem:[#allocation7] sm:$0xff]  ;;  %v335_v11 = vld [vmem:[#allocation7 + $0x18] sm:$0xff]  ;;  %p767_p0 = scmp.ne.s32.totalorder %s1177_s5, %s766_s27  ;;  %p1251_p9 = scmp.ne.s32.totalorder %s1239_s24, 0 }
  0x71   : > { %v334_v12 = vld [vmem:[#allocation7 + $0x10] sm:$0xff]  ;;  %v337_v13 = vld [vmem:[#allocation7 + $0x28] sm:$0xff]  ;;  %v336_v14 = vld [vmem:[#allocation7 + $0x20] sm:$0xff]  ;;  %s847_s30 = smov [#allocation8]  }
  0x72   : > { %v339_v15 = vld [vmem:[#allocation7 + $0x38] sm:$0xff]  ;;  %v338_v16 = vld [vmem:[#allocation7 + $0x30] sm:$0xff]  ;;  %v228_v19 = vld [vmem:[%s1040_s17 + $0x40] sm:$0xff]  ;;  %p768_p10 = pnand %p767_p0, %p1251_p9  ;;  %s770_s6 = sshll.u32 %s847_s30, 4  ;;  %s771_s6 = int_to_ptr.vmem [resolvable:$false] %s770_s6 }
  0x73   : > { %277 = vperm.xlu1 %679, %v255_v3   ;;  %267 = vperm.xlu0 %678, %v253_v4   ;;  %v229_v20 = vld [vmem:[%s1040_s17 + $0x48] sm:$0xff]  ;;  %v230_v21 = vld [vmem:[%s1040_s17 + $0x50] sm:$0xff]  ;;  %v231_v22 = vld [vmem:[%s1040_s17 + $0x58] sm:$0xff]  ;;  %s772_s7 = scalar_lea.vmem %s771_s6, 8192  ;;  %p773_p3 = scmp.lt.s32.totalorder %s1177_s5, %s771_s6 }
  0x74   : > { %v220_v25 = vld [vmem:[%s1040_s17] sm:$0xff]  ;;  %v221_v26 = vld [vmem:[%s1040_s17 + $0x8] sm:$0xff]  ;;  %v222_v27 = vld [vmem:[%s1040_s17 + $0x10] sm:$0xff]  ;;  %p769_p1 = pneg %p768_p10  ;;  %p774_p8 = scmp.lt.s32.totalorder %s772_s7, %s766_s27 }
  0x75   : > { %v223_v28 = vld [vmem:[%s1040_s17 + $0x18] sm:$0xff]  ;;  %v232_v29 = vld [vmem:[%s1040_s17 + $0x60] sm:$0xff]  ;;  %v233_v30 = vld [vmem:[%s1040_s17 + $0x68] sm:$0xff] }
  0x76   : > { %v234_v31 = vld [vmem:[%s1040_s17 + $0x70] sm:$0xff]  ;;  %v235_v32 = vld [vmem:[%s1040_s17 + $0x78] sm:$0xff]  ;;  %v224_v33 = vld [vmem:[%s1040_s17 + $0x20] sm:$0xff]  ;;  %p775_p2 = por %p774_p8, %p773_p3 }
  0x77   : > { %287 = vperm.xlu1 %679, %v257_v5   ;;  %282 = vperm.xlu0 %678, %v256_v6   ;;  %v225_v34 = vld [vmem:[%s1040_s17 + $0x28] sm:$0xff]  ;;  %v226_v35 = vld [vmem:[%s1040_s17 + $0x30] sm:$0xff]  ;;  %v227_v36 = vld [vmem:[%s1040_s17 + $0x38] sm:$0xff] }
  0x78   : > { %v240_v38 = vld [vmem:[%s1040_s17 + $0xa0] sm:$0xff]  ;;  %v241_v44 = vld [vmem:[%s1040_s17 + $0xa8] sm:$0xff]  ;;  %v242_v45 = vld [vmem:[%s1040_s17 + $0xb0] sm:$0xff]  ;;  %p776_p5 = pnand %p775_p2, %p769_p1 }
  0x79   : > { %v243_v46 = vld [vmem:[%s1040_s17 + $0xb8] sm:$0xff]  ;;  %v236_v51 = vld [vmem:[%s1040_s17 + $0x80] sm:$0xff]  ;;  %v237_v52 = vld [vmem:[%s1040_s17 + $0x88] sm:$0xff] }
  0x7a   : > { %v238_v53 = vld [vmem:[%s1040_s17 + $0x90] sm:$0xff]  ;;  %v239_v58 = vld [vmem:[%s1040_s17 + $0x98] sm:$0xff]  ;;  %v248_v59 = vld [vmem:[%s1040_s17 + $0xe0] sm:$0xff] }
  0x7b   : > { %297 = vperm.xlu1 %679, %v259_v7   ;;  %292 = vperm.xlu0 %678, %v258_v8   ;;  %v249_v60 = vld [vmem:[%s1040_s17 + $0xe8] sm:$0xff]  ;;  %v250_v3 = vld [vmem:[%s1040_s17 + $0xf0] sm:$0xff]  ;;  %v251_v4 = vld [vmem:[%s1040_s17 + $0xf8] sm:$0xff] }
  0x7c   : > { %v244_v5 = vld [vmem:[%s1040_s17 + $0xc0] sm:$0xff] }
  0x7f   : > { %347 = vperm.xlu1 %679, %v333_v9   ;;  %342 = vperm.xlu0 %678, %v332_v10   ;;  %v245_v10 = vld [vmem:[%s1040_s17 + $0xc8] sm:$0xff] }
  0x83   : > { %357 = vperm.xlu1 %679, %v335_v11   ;;  %352 = vperm.xlu0 %678, %v334_v12   ;;  %v246_v11 = vld [vmem:[%s1040_s17 + $0xd0] sm:$0xff]  ;;  %v247_v12 = vld [vmem:[%s1040_s17 + $0xd8] sm:$0xff] }
  0x87   : > { %367 = vperm.xlu1 %679, %v337_v13   ;;  %362 = vperm.xlu0 %678, %v336_v14  }
  0x8b   : > { %377 = vperm.xlu1 %679, %v339_v15   ;;  %372 = vperm.xlu0 %678, %v338_v16  }
  0xee   : > { %v273_v17 = vpop.permute.xlu1 %272  ;;  %v263_v18 = vpop.permute.xlu0 %262 }
  0xef   : > { %v1067_v40 = vmul.f32 %v273_v17, %v228_v19  ;;  %v1069_v41 = vmul.f32 %v273_v17, %v229_v20  ;;  %v1071_v42 = vmul.f32 %v273_v17, %v230_v21  ;;  %v1073_v43 = vmul.f32 %v273_v17, %v231_v22 }
  0xf0   : > { %v300_v47 = vmul.f32 %v263_v18, %v220_v25  ;;  %v301_v48 = vmul.f32 %v263_v18, %v221_v26  ;;  %v302_v49 = vmul.f32 %v263_v18, %v222_v27  ;;  %v303_v50 = vmul.f32 %v263_v18, %v223_v28 }
  0xf2   : > { %v278_v23 = vpop.permute.xlu1 %277  ;;  %v268_v24 = vpop.permute.xlu0 %267 }
  0xf3   : > { %v312_v54 = vmul.f32 %v278_v23, %v232_v29  ;;  %v313_v55 = vmul.f32 %v278_v23, %v233_v30  ;;  %v314_v56 = vmul.f32 %v278_v23, %v234_v31  ;;  %v315_v57 = vmul.f32 %v278_v23, %v235_v32 }
  0xf4   : > { %v304_v61 = vmul.f32 %v268_v24, %v224_v33  ;;  %v305_v62 = vmul.f32 %v268_v24, %v225_v34  ;;  %v306_v63 = vmul.f32 %v268_v24, %v226_v35  ;;  %v307_v0 = vmul.f32 %v268_v24, %v227_v36 }
  0xf6   : > { %v288_v37 = vpop.permute.xlu1 %287  ;;  %v283_v39 = vpop.permute.xlu0 %282 }
  0xf7   : > { %v1087_v6 = vmul.f32 %v288_v37, %v240_v38  ;;  %v1089_v7 = vmul.f32 %v288_v37, %v241_v44  ;;  %v1091_v8 = vmul.f32 %v288_v37, %v242_v45  ;;  %v1093_v9 = vmul.f32 %v288_v37, %v243_v46 }
  0xf8   : > { %v1098_v13 = vmul.f32 %v283_v39, %v236_v51  ;;  %v1100_v14 = vmul.f32 %v283_v39, %v237_v52  ;;  %v1102_v15 = vmul.f32 %v283_v39, %v238_v53  ;;  %v1104_v16 = vmul.f32 %v283_v39, %v239_v58 }
  0xfa   : > { %v298_v1 = vpop.permute.xlu1 %297  ;;  %v293_v2 = vpop.permute.xlu0 %292 }
  0xfb   : > { %v1106_v17 = vmul.f32 %v298_v1, %v248_v59  ;;  %v1108_v18 = vmul.f32 %v298_v1, %v249_v60  ;;  %v1110_v19 = vmul.f32 %v298_v1, %v250_v3  ;;  %v1112_v20 = vmul.f32 %v298_v1, %v251_v4 }
  0xfc   : > { %v1114_v23 = vmul.f32 %v293_v2, %v244_v5  ;;  %v1116_v24 = vmul.f32 %v293_v2, %v245_v10  ;;  %v1118_v25 = vmul.f32 %v293_v2, %v246_v11  ;;  %v1120_v26 = vmul.f32 %v293_v2, %v247_v12 }
  0xfe   : > { %v348_v21 = vpop.permute.xlu1 %347  ;;  %v343_v22 = vpop.permute.xlu0 %342 }
  0xff   : > { %v384_v27 = vadd.f32 %v348_v21, %v304_v61  ;;  %v385_v28 = vadd.f32 %v348_v21, %v305_v62  ;;  %v386_v29 = vadd.f32 %v348_v21, %v306_v63  ;;  %v387_v30 = vadd.f32 %v348_v21, %v307_v0 }
 0x100   : > { %v380_v31 = vadd.f32 %v343_v22, %v300_v47  ;;  %v381_v32 = vadd.f32 %v343_v22, %v301_v48  ;;  %v382_v33 = vadd.f32 %v343_v22, %v302_v49  ;;  %v383_v34 = vadd.f32 %v343_v22, %v303_v50 }
 0x101   : > { %v416_v35 = vmax.f32 %v384_v27, 0.0  ;;  %v417_v36 = vmax.f32 %v385_v28, 0.0  ;;  %v418_v37 = vmax.f32 %v386_v29, 0.0  ;;  %v419_v38 = vmax.f32 %v387_v30, 0.0 }
 0x102   : > { %v412_v39 = vmax.f32 %v380_v31, 0.0  ;;  %v413_v44 = vmax.f32 %v381_v32, 0.0  ;;  %v414_v45 = vmax.f32 %v382_v33, 0.0  ;;  %v415_v46 = vmax.f32 %v383_v34, 0.0  ;;  %v358_v51 = vpop.permute.xlu1 %357  ;;  %v353_v52 = vpop.permute.xlu0 %352 }
 0x103   : > { %448 = vst [vmem:[%s1124_s23 + $0x20] sm:$0xff] %v416_v35  ;;  %449 = vst [vmem:[%s1124_s23 + $0x28] sm:$0xff] %v417_v36  ;;  %v392_v47 = vadd.f32 %v358_v51, %v312_v54  ;;  %v393_v48 = vadd.f32 %v358_v51, %v313_v55  ;;  %v394_v49 = vadd.f32 %v358_v51, %v314_v56 }
 0x104   : > { %450 = vst [vmem:[%s1124_s23 + $0x30] sm:$0xff] %v418_v37  ;;  %451 = vst [vmem:[%s1124_s23 + $0x38] sm:$0xff] %v419_v38  ;;  %v395_v50 = vadd.f32 %v358_v51, %v315_v57  ;;  %v388_v53 = vadd.f32 %v353_v52, %v1067_v40  ;;  %v389_v58 = vadd.f32 %v353_v52, %v1069_v41 }
 0x105   : > { %444 = vst [vmem:[%s1124_s23] sm:$0xff] %v412_v39  ;;  %445 = vst [vmem:[%s1124_s23 + $0x8] sm:$0xff] %v413_v44  ;;  %v390_v59 = vadd.f32 %v353_v52, %v1071_v42  ;;  %v391_v60 = vadd.f32 %v353_v52, %v1073_v43  ;;  %v424_v54 = vmax.f32 %v392_v47, 0.0  ;;  %v425_v55 = vmax.f32 %v393_v48, 0.0 }
 0x106   : > { %446 = vst [vmem:[%s1124_s23 + $0x10] sm:$0xff] %v414_v45  ;;  %447 = vst [vmem:[%s1124_s23 + $0x18] sm:$0xff] %v415_v46  ;;  %v426_v56 = vmax.f32 %v394_v49, 0.0  ;;  %v427_v57 = vmax.f32 %v395_v50, 0.0  ;;  %v420_v61 = vmax.f32 %v388_v53, 0.0  ;;  %v421_v62 = vmax.f32 %v389_v58, 0.0  ;;  %v368_v0 = vpop.permute.xlu1 %367  ;;  %v363_v1 = vpop.permute.xlu0 %362 }
 0x107   : > { %v422_v63 = vmax.f32 %v390_v59, 0.0  ;;  %v423_v40 = vmax.f32 %v391_v60, 0.0  ;;  %456 = vst [vmem:[%s1124_s23 + $0x60] sm:$0xff] %v424_v54  ;;  %457 = vst [vmem:[%s1124_s23 + $0x68] sm:$0xff] %v425_v55  ;;  %v400_v41 = vadd.f32 %v368_v0, %v1087_v6  ;;  %v401_v42 = vadd.f32 %v368_v0, %v1089_v7 }
 0x108   : > { %458 = vst [vmem:[%s1124_s23 + $0x70] sm:$0xff] %v426_v56  ;;  %459 = vst [vmem:[%s1124_s23 + $0x78] sm:$0xff] %v427_v57  ;;  %v402_v43 = vadd.f32 %v368_v0, %v1091_v8  ;;  %v403_v2 = vadd.f32 %v368_v0, %v1093_v9  ;;  %v396_v3 = vadd.f32 %v363_v1, %v1098_v13 }
 0x109   : > { %452 = vst [vmem:[%s1124_s23 + $0x40] sm:$0xff] %v420_v61  ;;  %453 = vst [vmem:[%s1124_s23 + $0x48] sm:$0xff] %v421_v62  ;;  %v397_v4 = vadd.f32 %v363_v1, %v1100_v14  ;;  %v398_v5 = vadd.f32 %v363_v1, %v1102_v15  ;;  %v399_v6 = vadd.f32 %v363_v1, %v1104_v16  ;;  %v432_v7 = vmax.f32 %v400_v41, 0.0 }
 0x10a   : > { %454 = vst [vmem:[%s1124_s23 + $0x50] sm:$0xff] %v422_v63  ;;  %455 = vst [vmem:[%s1124_s23 + $0x58] sm:$0xff] %v423_v40  ;;  %v433_v8 = vmax.f32 %v401_v42, 0.0  ;;  %v434_v9 = vmax.f32 %v402_v43, 0.0  ;;  %v435_v10 = vmax.f32 %v403_v2, 0.0  ;;  %v428_v11 = vmax.f32 %v396_v3, 0.0  ;;  %v378_v21 = vpop.permute.xlu1 %377  ;;  %v373_v22 = vpop.permute.xlu0 %372 }
 0x10b   : > { %v429_v12 = vmax.f32 %v397_v4, 0.0  ;;  %v430_v13 = vmax.f32 %v398_v5, 0.0  ;;  %v431_v14 = vmax.f32 %v399_v6, 0.0  ;;  %464 = vst [vmem:[%s1124_s23 + $0xa0] sm:$0xff] %v432_v7  ;;  %v408_v15 = vadd.f32 %v378_v21, %v1106_v17 }
 0x10c   : > { %465 = vst [vmem:[%s1124_s23 + $0xa8] sm:$0xff] %v433_v8  ;;  %466 = vst [vmem:[%s1124_s23 + $0xb0] sm:$0xff] %v434_v9  ;;  %v409_v16 = vadd.f32 %v378_v21, %v1108_v18  ;;  %v410_v27 = vadd.f32 %v378_v21, %v1110_v19  ;;  %v411_v28 = vadd.f32 %v378_v21, %v1112_v20 }
 0x10d   : > { %467 = vst [vmem:[%s1124_s23 + $0xb8] sm:$0xff] %v435_v10  ;;  %460 = vst [vmem:[%s1124_s23 + $0x80] sm:$0xff] %v428_v11  ;;  %v404_v29 = vadd.f32 %v373_v22, %v1114_v23  ;;  %v405_v30 = vadd.f32 %v373_v22, %v1116_v24  ;;  %v406_v17 = vadd.f32 %v373_v22, %v1118_v25  ;;  %v440_v19 = vmax.f32 %v408_v15, 0.0 }
 0x10e   : > { %461 = vst [vmem:[%s1124_s23 + $0x88] sm:$0xff] %v429_v12  ;;  %462 = vst [vmem:[%s1124_s23 + $0x90] sm:$0xff] %v430_v13  ;;  %v407_v18 = vadd.f32 %v373_v22, %v1120_v26  ;;  %v441_v20 = vmax.f32 %v409_v16, 0.0  ;;  %v442_v23 = vmax.f32 %v410_v27, 0.0  ;;  %v443_v31 = vmax.f32 %v411_v28, 0.0 }
 0x10f   : > { %463 = vst [vmem:[%s1124_s23 + $0x98] sm:$0xff] %v431_v14  ;;  %v436_v24 = vmax.f32 %v404_v29, 0.0  ;;  %v437_v25 = vmax.f32 %v405_v30, 0.0  ;;  %v438_v26 = vmax.f32 %v406_v17, 0.0  ;;  %472 = vst [vmem:[%s1124_s23 + $0xe0] sm:$0xff] %v440_v19 }
 0x110   : > { %v439_v32 = vmax.f32 %v407_v18, 0.0  ;;  %473 = vst [vmem:[%s1124_s23 + $0xe8] sm:$0xff] %v441_v20  ;;  %474 = vst [vmem:[%s1124_s23 + $0xf0] sm:$0xff] %v442_v23 }
 0x111   : > { %475 = vst [vmem:[%s1124_s23 + $0xf8] sm:$0xff] %v443_v31  ;;  %468 = vst [vmem:[%s1124_s23 + $0xc0] sm:$0xff] %v436_v24 }
 0x112   : > { %469 = vst [vmem:[%s1124_s23 + $0xc8] sm:$0xff] %v437_v25  ;;  %470 = vst [vmem:[%s1124_s23 + $0xd0] sm:$0xff] %v438_v26 }
 0x113   : > { %471 = vst [vmem:[%s1124_s23 + $0xd8] sm:$0xff] %v439_v32 }
 0x114   : > { %779 = shalt.err (!%p776_p5)
}
 0x115   : > { %s780_s8 = scalar_lea.hbm %s1175_s28, 4096  ;;  %s784_s11 = scalar_lea.hbm %s1231_s3, 65536 }
 0x116   : > { %p781_p11 = scmp.ne.s32.totalorder %s1175_s28, %s780_s8  ;;  %p785_p6 = scmp.lt.u32.totalorder %s1175_s28, %s1231_s3 }
 0x117   : > { %p786_p7 = scmp.lt.u32.totalorder %s784_s11, %s780_s8  ;;  %p788_p0 = scmp.lt.u32.totalorder %s780_s8, %s1175_s28 }
 0x118   : > { %p782_p12 = pnand %p781_p11, %p1251_p9 }
 0x119   : > { %p787_p13 = por %p786_p7, %p785_p6 }
 0x11a   : > { %p783_p4 = pneg %p782_p12 }
 0x11b   : > { %p789_p10 = por %p788_p0, %p787_p13 }
 0x11d   : > { %p790_p1 = pnand %p789_p10, %p783_p4 }
 0x11f   : > { %793 = shalt.err (!%p790_p1)
}
 0x120   : > { %s848_s17 = smov 512   ;;  %s849_s23 = smov 8192  }
 0x121   : > { %s850_s26 = smov 32  }
 0x122   : > { %612 = dma.vmem_to_hbm [thread:$0]  (%p1251_p9), %s1177_s5, 4096, %s1175_s28, %s477_s22, %s848_s17, %s849_s23, %s850_s26  }
 0x123 PF: > { %p634_p3 = scmp.ge.s32.totalorder %s836_s15, 2  ;;  %s505_s16 = sand.u32 1, %s824_s12  }
 0x124   : > { %p1252_p8 = scmp.ne.s32.totalorder %s1240_s25, 0  ;;  %s506_s10 = scalar_lea.sflag [#allocation4], %s505_s16 }
 0x126   : > { %p626_p2 = pnand %p634_p3, %p1252_p8 }
 0x128   : > { %819 = dma.done.wait (!%p626_p2), %s506_s10, 4096  }
 0x129   : > { %821 = vsyncadd (!%p626_p2), %s506_s10, 4294963200  ;;  %p17_p5 = scmp.ge.s32.totalorder %s896_s18, 18   ;;  %s1253_s12 = smov %s828_s13 }
 0x12a   : > { %s1254_s13 = smov %s832_s14  ;;  %s1255_s14 = smov %s908_s21 }
 0x12b   : > { %s1256_s15 = smov %s896_s18  ;;  %19 = sbr.rel (!%p17_p5) target bundleno = 6 (0x6), region = 85 }
 0x132   :  { %511 = vsyncpa [#allocation3], 1 }
 0x133   :  { %513 = vsyncpa [#allocation3 + $0x1], 1 }
 0x134   :  { %514 = vsyncpa [#allocation6], 1 }
 0x135   :  { %515 = vsyncpa [#allocation4], 1 }
 0x136   :  { %517 = vsyncpa [#allocation4 + $0x1], 1 }

// kernel: linknet_up_3d.6
= control target key start
LH: loop header
LB: loop body
LE: loop exit
PB: predicated region body
PF: predicated region fallthrough
CT: control target
= control target key end

     0   :  { %s2087_s0 = inlined_call_operand.hbm [shape: f32[64,8192], index: 0, kind: input, shape index: {}]   ;;  %s2088_s1 = inlined_call_operand.hbm [shape: f32[64,1], index: 1, kind: input, shape index: {}]   ;;  %s2089_s2 = inlined_call_operand.hbm [shape: f32[64,1], index: 2, kind: input, shape index: {}]   ;;  %s2090_s3 = inlined_call_operand.hbm [shape: f32[64,64], index: 3, kind: input, shape index: {}]   ;;  %s2091_s4 = inlined_call_operand.hbm [shape: f32[64,8192], index: 4, kind: output, shape index: {0}]   ;;  %s2092_s5 = inlined_call_operand.hbm [shape: f32[64,1], index: 5, kind: output, shape index: {1}]   ;;  %s2093_s6 = inlined_call_operand.hbm [shape: f32[64,1], index: 6, kind: output, shape index: {2}]  }
   0x1   :  { %2103 = sst [smem:[#allocation22_spill]] %s2088_s1 }
   0x2   :  { %12 = vsyncpa [#allocation3], 0 }
   0x3   :  { %14 = vsyncpa [#allocation3 + $0x1], 0 }
   0x4   :  { %15 = vsyncpa [#allocation6], 0 }
   0x5   :  { %16 = vsyncpa [#allocation9], 0 }
   0x6   :  { %17 = vsyncpa [#allocation4], 0 }
   0x7   :  { %19 = vsyncpa [#allocation4 + $0x1], 0 }
   0x8   :  { %20 = vsyncpa [#allocation12], 0  ;;  %s1654_s21 = smov 0   ;;  %s1656_s22 = smov 0  }
   0x9   :  { %s1658_s23 = smov 0   ;;  %s1660_s24 = smov 0  }
   0xa LB: > { %s1675_s25 = sadd.s32 4294967295, %s1597_s24   ;;  %s1172_s26 = sadd.s32 4294967294, %s1597_s24   ;;  %s1597_s24 = sphi %s1660_s24, %s2137_s24   ;;  %s1593_s23 = sphi %s1658_s23, %s2141_s23   ;;  %s1589_s22 = sphi %s1656_s22, %s2140_s22   ;;  %s1585_s21 = sphi %s1654_s21, %s2139_s21  }
   0xb   : > { %s1679_s27 = sadd.s32 1, %s1597_s24   ;;  %s33_s28 = sadd.s32 1, %s1593_s23 }
   0xc   : > { %2104 = sst [smem:[#allocation19_spill]] %s1679_s27  ;;  %s30_s29 = ssub.s32 %s1597_s24, %s1679_s27 }
   0xd   : > { %p40_p0 = scmp.ne.s32.totalorder %s1593_s23, %s1589_s22  ;;  %p31_p1 = scmp.eq.s32.totalorder %s30_s29, 0 }
   0xe   : > { %p41_p2 = scmp.eq.s32.totalorder %s1597_s24, 0  ;;  %p46_p3 = scmp.ne.s32.totalorder %s1589_s22, %s1585_s21 }
   0xf   : > { %p2095_p4 = scmp.eq.s32.totalorder %s1675_s25, 0  ;;  %p2094_p7 = scmp.eq.s32.totalorder %s1675_s25, 15 }
  0x10   : > { %s1691_s30 = scalar_select %p31_p1, %s1593_s23, %s33_s28  }
  0x11   : > { %p1693_p5 = por %p41_p2, %p40_p0  ;;  %p1699_p6 = por %p2095_p4, %p46_p3 }
  0x12   : > { %2105 = sst [smem:[#allocation20_spill]] %s1691_s30  ;;  %p139_p8 = scmp.eq.s32.totalorder %s1172_s26, 15 }
  0x13   : > { %s2106_s7 = scalar_select %p1693_p5, 1, 0 }
  0x14   : > { %s2107_s8 = scalar_select %p1699_p6, 1, 0 }
  0x15   : > { %p1173_p9 = scmp.ge.s32.totalorder %s1597_s24, 1  ;;  %p188_p10 = scmp.lt.s32.totalorder %s1597_s24, 17 }
  0x16   : > { %p1708_p11 = por %p2094_p7, %p40_p0  ;;  %p1712_p12 = por %p139_p8, %p46_p3 }
  0x17   : > { %p1716_p13 = pnand %p1173_p9, %p188_p10  ;;  %s1599_s12 = smov [#allocation5]  }
  0x18   : > { %s2108_s9 = scalar_select %p1708_p11, 1, 0 }
  0x19   : > { %s2109_s10 = scalar_select %p1712_p12, 1, 0 }
  0x1a   : > { %s2111_s11 = scalar_select %p1716_p13, 1, 0 }
  0x1b   : > { %2110 = sst [smem:[#allocation21_spill]] %s2109_s10  ;;  %p1271_p2 = pneg %p1716_p13 }
  0x1c   : > { %s200_s13 = sshll.u32 %s1599_s12, 4  ;;  %s1600_s15 = smov [#allocation7]   ;;  %s201_s13 = int_to_ptr.vmem [resolvable:$true] %s200_s13 }
  0x1d   : > { %p1725_p0 = pnand %p1271_p2, %p2095_p4  ;;  %s213_s16 = sshll.u32 %s1600_s15, 4  ;;  %s214_s16 = int_to_ptr.vmem [resolvable:$true] %s213_s16 }
  0x1e   : > { %s2113_s1 = sld [smem:[#allocation22_spill]] }
  0x1f   : > { %p1738_p9 = pneg %p1725_p0 }
  0x24   : > { %s1353_s19 = scalar_lea.hbm %s2113_s1, 1024 }
  0x25   : > { %p1354_p8 = scmp.ne.s32.totalorder %s2113_s1, %s1353_s19  ;;  %p1360_p7 = scmp.lt.u32.totalorder %s1353_s19, %s2113_s1 }
  0x27   : > { %p1356_p10 = pnand %p1738_p9, %p1354_p8 }
  0x29   : > { %p1357_p2 = pneg %p1356_p10 }
  0x2b   : > { %p1362_p1 = pnand %p1360_p7, %p1357_p2 }
  0x2d   : > { %1365 = shalt.err (!%p1362_p1)
}
  0x2e   : > { %s1366_s15 = scalar_lea.vmem %s201_s13, 1024  ;;  %p1374_p11 = scmp.lt.s32.totalorder %s201_s13, %s201_s13 }
  0x2f   : > { %p1367_p4 = scmp.ne.s32.totalorder %s201_s13, %s1366_s15  ;;  %p1375_p6 = scmp.lt.s32.totalorder %s1366_s15, %s1366_s15 }
  0x31   : > { %p1369_p3 = pnand %p1367_p4, %p1738_p9  ;;  %p1376_p13 = por %p1375_p6, %p1374_p11 }
  0x33   : > { %p1370_p12 = pneg %p1369_p3 }
  0x35   : > { %p1377_p5 = pnand %p1376_p13, %p1370_p12 }
  0x37   : > { %1380 = shalt.err (!%p1377_p5)
}
  0x38   : > { %s1601_s17 = smov 128   ;;  %s1602_s18 = smov 8  }
  0x39   : > { %1274 = dma.hbm_to_vmem [thread:$0]  (!%p1725_p0), %s2113_s1, 1024, %s201_s13, [#allocation6], %s1601_s17, %s1601_s17, %s1602_s18  }
  0x3a   : > { %p2115_p4 = scmp.ne.s32.totalorder %s2106_s7, 0  ;;  %p2116_p7 = scmp.lt.s32.totalorder %s1597_s24, 16 }
  0x3b   : > { %s1381_s15 = scalar_lea.hbm %s2089_s2, 1024 }
  0x3c   : > { %p1761_p1 = pnand %p2116_p7, %p2115_p4  ;;  %p1382_p5 = scmp.ne.s32.totalorder %s2089_s2, %s1381_s15 }
  0x3d   : > { %p1388_p12 = scmp.lt.u32.totalorder %s1381_s15, %s2089_s2 }
  0x3e   : > { %s2117_s26 = scalar_select %p1761_p1, 1, 0 }
  0x3f   : > { %p1384_p6 = pnand %p1382_p5, %p1738_p9 }
  0x41   : > { %p1385_p11 = pneg %p1384_p6 }
  0x43   : > { %p1390_p13 = pnand %p1388_p12, %p1385_p11 }
  0x45   : > { %1393 = shalt.err (!%p1390_p13)
}
  0x46   : > { %s1394_s7 = scalar_lea.vmem %s214_s16, 1024  ;;  %p1402_p2 = scmp.lt.s32.totalorder %s214_s16, %s214_s16 }
  0x47   : > { %p1395_p3 = scmp.ne.s32.totalorder %s214_s16, %s1394_s7  ;;  %p1403_p4 = scmp.lt.s32.totalorder %s1394_s7, %s1394_s7 }
  0x49   : > { %p1397_p8 = pnand %p1395_p3, %p1738_p9  ;;  %p1404_p7 = por %p1403_p4, %p1402_p2 }
  0x4b   : > { %p1398_p10 = pneg %p1397_p8 }
  0x4d   : > { %p1405_p1 = pnand %p1404_p7, %p1398_p10 }
  0x4f   : > { %1408 = shalt.err (!%p1405_p1)
}
  0x50   : > { %1277 = dma.hbm_to_vmem [thread:$0]  (!%p1725_p0), %s2089_s2, 1024, %s214_s16, [#allocation6], %s1601_s17, %s1601_s17, %s1602_s18  }
  0x51   : > { %s1603_s20 = smov [#allocation8]   ;;  %s240_s12 = sand.u32 1, %s1593_s23  }
  0x52   : > { %s226_s29 = sshll.u32 %s1603_s20, 4  ;;  %s1409_s13 = scalar_lea.hbm %s2090_s3, 1024  ;;  %s227_s29 = int_to_ptr.vmem [resolvable:$true] %s226_s29 }
  0x53   : > { %p1410_p1 = scmp.ne.s32.totalorder %s2090_s3, %s1409_s13  ;;  %p1416_p11 = scmp.lt.u32.totalorder %s1409_s13, %s2090_s3 }
  0x55   : > { %p1412_p5 = pnand %p1410_p1, %p1738_p9 }
  0x57   : > { %p1413_p6 = pneg %p1412_p5 }
  0x59   : > { %p1418_p12 = pnand %p1416_p11, %p1413_p6 }
  0x5b   : > { %1421 = shalt.err (!%p1418_p12)
}
  0x5c   : > { %s1422_s16 = scalar_lea.vmem %s227_s29, 1024  ;;  %p1430_p10 = scmp.lt.s32.totalorder %s227_s29, %s227_s29 }
  0x5d   : > { %p1423_p13 = scmp.ne.s32.totalorder %s227_s29, %s1422_s16  ;;  %p1431_p2 = scmp.lt.s32.totalorder %s1422_s16, %s1422_s16 }
  0x5f   : > { %p1425_p3 = pnand %p1423_p13, %p1738_p9  ;;  %p1432_p4 = por %p1431_p2, %p1430_p10 }
  0x61   : > { %p1426_p8 = pneg %p1425_p3 }
  0x63   : > { %p1433_p7 = pnand %p1432_p4, %p1426_p8 }
  0x65   : > { %1436 = shalt.err (!%p1433_p7)
}
  0x66   : > { %1280 = dma.hbm_to_vmem [thread:$0]  (!%p1725_p0), %s2090_s3, 1024, %s227_s29, [#allocation9], %s1601_s17, %s1601_s17, %s1602_s18  }
  0x67   : > { %s1178_s28 = sshll.u32 %s240_s12, 8  ;;  %s1213_s30 = sshll.u32 %s1597_s24, 9 }
  0x68   : > { %s1812_s19 = scalar_lea.hbm %s2087_s0, %s1213_s30  ;;  %s244_s14 = scalar_lea.vmem [#allocation2], %s1178_s28 }
  0x69   : > { %s251_s13 = sshll.u32 %s244_s14, 4  ;;  %s1816_s7 = scalar_lea.sflag [#allocation3], %s240_s12  ;;  %s1814_s13 = int_to_ptr.vmem [resolvable:$true] %s251_s13 }
  0x6a   : > { %s1437_s27 = scalar_lea.hbm %s1812_s19, 4096  ;;  %p2118_p0 = scmp.ne.s32.totalorder %s2117_s26, 0 }
  0x6b   : > { %p1438_p9 = scmp.ne.s32.totalorder %s1812_s19, %s1437_s27  ;;  %s1442_s29 = scalar_lea.hbm %s2087_s0, 65536 }
  0x6c   : > { %p1439_p1 = pneg %p2118_p0  ;;  %p1443_p11 = scmp.lt.u32.totalorder %s1812_s19, %s2087_s0 }
  0x6d   : > { %p1444_p12 = scmp.lt.u32.totalorder %s1442_s29, %s1437_s27  ;;  %p1446_p3 = scmp.lt.u32.totalorder %s1437_s27, %s1812_s19 }
  0x6e   : > { %p1440_p5 = pnand %p1439_p1, %p1438_p9 }
  0x6f   : > { %p1445_p13 = por %p1444_p12, %p1443_p11 }
  0x70   : > { %p1441_p6 = pneg %p1440_p5 }
  0x71   : > { %p1447_p8 = por %p1446_p3, %p1445_p13 }
  0x73   : > { %p1448_p10 = pnand %p1447_p8, %p1441_p6 }
  0x75   : > { %1451 = shalt.err (!%p1448_p10)
}
  0x76   : > { %s1452_s12 = scalar_lea.vmem %s1814_s13, 4096  ;;  %s1604_s10 = smov [#allocation2]  }
  0x77   : > { %p1453_p2 = scmp.ne.s32.totalorder %s1814_s13, %s1452_s12  ;;  %s1457_s28 = sshll.u32 %s1604_s10, 4  ;;  %s1458_s28 = int_to_ptr.vmem [resolvable:$false] %s1457_s28 }
  0x78   : > { %s1459_s30 = scalar_lea.vmem %s1458_s28, 8192  ;;  %p1460_p9 = scmp.lt.s32.totalorder %s1814_s13, %s1458_s28 }
  0x79   : > { %p1455_p4 = pnand %p1453_p2, %p1439_p1  ;;  %p1461_p5 = scmp.lt.s32.totalorder %s1459_s30, %s1452_s12 }
  0x7b   : > { %p1456_p7 = pneg %p1455_p4  ;;  %p1462_p11 = por %p1461_p5, %p1460_p9 }
  0x7d   : > { %p1463_p12 = pnand %p1462_p11, %p1456_p7 }
  0x7f   : > { %1466 = shalt.err (!%p1463_p12)
}
  0x80   : > { %s1605_s20 = smov 8192   ;;  %s1606_s15 = smov 512  }
  0x81   : > { %s1607_s14 = smov 32   ;;  %p2119_p1 = scmp.ne.s32.totalorder %s2111_s11, 0 }
  0x82   : > { %1284 = dma.hbm_to_vmem [thread:$0]  (!%p2118_p0), %s1812_s19, 4096, %s1814_s13, %s1816_s7, %s1605_s20, %s1606_s15, %s1607_s14  }
  0x83   : > { %263 = sbr.rel (%p2119_p1) target bundleno = 760 (0x2f8), region = 36  ;;  %s1847_s27 = sand.u32 (!%p2119_p1), 1, %s1589_s22  }
  0x84   : > { %s1182_s17 = sshll.u32 (!%p2119_p1), %s1847_s27, 8  ;;  %s266_s18 = scalar_lea.sflag (!%p2119_p1), [#allocation3], %s1847_s27 }
  0x85   : > { %s1851_s29 = scalar_lea.vmem (!%p2119_p1), [#allocation2], %s1182_s17  ;;  %p2120_p6 = scmp.ne.s32.totalorder (!%p2119_p1), %s2107_s8, 0 }
  0x8a   : > { %1564 = dma.done.wait (%p2120_p6), %s266_s18, 4096  }
  0x8b   : > { %1566 = vsyncadd (%p2120_p6), %s266_s18, 4294963200  ;;  %p2121_p0 = scmp.eq.s32.totalorder %s1675_s25, 0 }
  0x8d   : > { %1568 = dma.done.wait (%p2121_p0), [#allocation6], 2048   ;;  %p2122_p13 = pmov %p2121_p0 }
  0x8e   : > { %p2123_p3 = pmov %p2121_p0 }
  0x8f   : > { %1570 = vsyncadd (%p2122_p13), [#allocation6], 4294965248 }
  0x90   : > { %1572 = dma.done.wait (%p2123_p3), [#allocation9], 1024   ;;  %p2124_p8 = pmov %p2121_p0 }
  0x91   : > { %s1865_s11 = scalar_lea.vmem [#allocation10], %s1182_s17  ;;  %p2125_p10 = scmp.ne.s32.totalorder %s1675_s25, 0 }
  0x92   : > { %1574 = vsyncadd (%p2124_p8), [#allocation9], 4294966272  ;;  %vm316_vm0 = vcmask (!%p2125_p10), 7168   ;;  %v1608_v0 = vmov (!%p2125_p10), 0.0  }
  0x93   : > { %315 = sbr.rel (%p2125_p10) target bundleno = 155 (0x9b), region = 56  ;;  %317 = vst.msk [vmem:[#allocation11] sm:$0xff] (!%p2125_p10), %vm316_vm0, %v1608_v0  ;;  %318 = vst.msk [vmem:[#allocation11 + $0x8] sm:$0xff] (!%p2125_p10), %vm316_vm0, %v1608_v0 }
  0x94   : > { %319 = vst.msk [vmem:[#allocation11 + $0x10] sm:$0xff] (!%p2125_p10), %vm316_vm0, %v1608_v0  ;;  %320 = vst.msk [vmem:[#allocation11 + $0x18] sm:$0xff] (!%p2125_p10), %vm316_vm0, %v1608_v0 }
  0x95   : > { %321 = vst.msk [vmem:[#allocation11 + $0x20] sm:$0xff] (!%p2125_p10), %vm316_vm0, %v1608_v0  ;;  %322 = vst.msk [vmem:[#allocation11 + $0x28] sm:$0xff] (!%p2125_p10), %vm316_vm0, %v1608_v0 }
  0x96   : > { %323 = vst.msk [vmem:[#allocation11 + $0x30] sm:$0xff] (!%p2125_p10), %vm316_vm0, %v1608_v0  ;;  %324 = vst.msk [vmem:[#allocation11 + $0x38] sm:$0xff] (!%p2125_p10), %vm316_vm0, %v1608_v0 }
  0x97   : > { %325 = vst.msk [vmem:[#allocation13] sm:$0xff] (!%p2125_p10), %vm316_vm0, %v1608_v0  ;;  %326 = vst.msk [vmem:[#allocation13 + $0x8] sm:$0xff] (!%p2125_p10), %vm316_vm0, %v1608_v0 }
  0x98   : > { %327 = vst.msk [vmem:[#allocation13 + $0x10] sm:$0xff] (!%p2125_p10), %vm316_vm0, %v1608_v0  ;;  %328 = vst.msk [vmem:[#allocation13 + $0x18] sm:$0xff] (!%p2125_p10), %vm316_vm0, %v1608_v0 }
  0x99   : > { %329 = vst.msk [vmem:[#allocation13 + $0x20] sm:$0xff] (!%p2125_p10), %vm316_vm0, %v1608_v0  ;;  %330 = vst.msk [vmem:[#allocation13 + $0x28] sm:$0xff] (!%p2125_p10), %vm316_vm0, %v1608_v0 }
  0x9a   : > { %331 = vst.msk [vmem:[#allocation13 + $0x30] sm:$0xff] %vm316_vm0, %v1608_v0  ;;  %332 = vst.msk [vmem:[#allocation13 + $0x38] sm:$0xff] %vm316_vm0, %v1608_v0 }
  0x9b PF: > { %v445_v1 = vld [vmem:[#allocation7] sm:$0xff]  ;;  %v1609_v3 = vmov 0   ;;  %v446_v4 = vld [vmem:[#allocation7 + $0x8] sm:$0xff]  ;;  %v368_v6 = vld [vmem:[#allocation5 + $0x18] sm:$0xff]  ;;  %v1610_v18 = vmov 0.0   ;;  %vm565_vm1 = vcmask 523264  }
  0x9c   : > { %v365_v2 = vld [vmem:[#allocation5] sm:$0xff]  ;;  %1352 = vset.pattern.permute.xlu1 %v1609_v3  ;;  %1351 = vset.pattern.permute.xlu0 %v1609_v3  ;;  %v366_v5 = vld [vmem:[#allocation5 + $0x8] sm:$0xff]  ;;  %v367_v7 = vld [vmem:[#allocation5 + $0x10] sm:$0xff]  ;;  %s1214_s8 = sshll.u32 %s1675_s25, 9  ;;  %s1023_s26 = sshll.u32 %s1865_s11, 4  ;;  %s1988_s26 = int_to_ptr.vmem [resolvable:$true] %s1023_s26 }
  0x9d   : > { %455 = vperm.xlu1 %1352, %v445_v1   ;;  %375 = vperm.xlu0 %1351, %v365_v2   ;;  %v448_v8 = vld [vmem:[#allocation7 + $0x18] sm:$0xff]  ;;  %v447_v9 = vld [vmem:[#allocation7 + $0x10] sm:$0xff]  ;;  %v370_v10 = vld [vmem:[#allocation5 + $0x28] sm:$0xff]  ;;  %s1986_s7 = scalar_lea.hbm %s2091_s4, %s1214_s8  ;;  %s1010_s16 = scalar_lea.sflag [#allocation4], %s1847_s27 }
  0x9e   : > { %v369_v11 = vld [vmem:[#allocation5 + $0x20] sm:$0xff]  ;;  %v450_v12 = vld [vmem:[#allocation7 + $0x28] sm:$0xff]  ;;  %v372_v14 = vld [vmem:[#allocation5 + $0x38] sm:$0xff]  ;;  %654 = vmatprep.mubr.f32.mxu0 %v1610_v18  ;;  %767 = vmatprep.mubr.f32.mxu1 %v1610_v18  ;;  %s1467_s1 = scalar_lea.vmem %s1988_s26, 4096  ;;  %p2126_p4 = scmp.ne.s32.totalorder %s2108_s9, 0 }
  0x9f   : > { %v449_v13 = vld [vmem:[#allocation7 + $0x20] sm:$0xff]  ;;  %v371_v15 = vld [vmem:[#allocation5 + $0x30] sm:$0xff]  ;;  %v452_v16 = vld [vmem:[#allocation7 + $0x38] sm:$0xff]  ;;  %p1468_p2 = scmp.ne.s32.totalorder %s1988_s26, %s1467_s1  ;;  %s1611_s12 = smov [#allocation10]  }
  0xa0   : > { %v451_v17 = vld [vmem:[#allocation7 + $0x30] sm:$0xff]  ;;  %v333_v19 = vld [vmem:[%s1851_s29] sm:$0xff]  ;;  %v334_v21 = vld [vmem:[%s1851_s29 + $0x8] sm:$0xff]  ;;  %s1471_s10 = sshll.u32 %s1611_s12, 4  ;;  %s1472_s10 = int_to_ptr.vmem [resolvable:$false] %s1471_s10 }
  0xa1   : > { %460 = vperm.xlu1 %1352, %v446_v4   ;;  %380 = vperm.xlu0 %1351, %v366_v5   ;;  %v335_v20 = vld [vmem:[%s1851_s29 + $0x10] sm:$0xff]  ;;  %v336_v22 = vld [vmem:[%s1851_s29 + $0x18] sm:$0xff]  ;;  %v337_v29 = vld [vmem:[%s1851_s29 + $0x20] sm:$0xff]  ;;  %p1469_p7 = pnand %p1468_p2, %p2126_p4  ;;  %s1473_s28 = scalar_lea.vmem %s1472_s10, 8192 }
  0xa2   : > { %v339_v30 = vld [vmem:[%s1851_s29 + $0x30] sm:$0xff]  ;;  %v338_v31 = vld [vmem:[%s1851_s29 + $0x28] sm:$0xff]  ;;  %v340_v32 = vld [vmem:[%s1851_s29 + $0x38] sm:$0xff]  ;;  %p1474_p5 = scmp.lt.s32.totalorder %s1988_s26, %s1472_s10  ;;  %p1475_p11 = scmp.lt.s32.totalorder %s1473_s28, %s1467_s1 }
  0xa3   : > { %v345_v42 = vld [vmem:[%s1851_s29 + $0x60] sm:$0xff]  ;;  %v346_v44 = vld [vmem:[%s1851_s29 + $0x68] sm:$0xff]  ;;  %v347_v45 = vld [vmem:[%s1851_s29 + $0x70] sm:$0xff]  ;;  %p1470_p9 = pneg %p1469_p7 }
  0xa4   : > { %v348_v46 = vld [vmem:[%s1851_s29 + $0x78] sm:$0xff]  ;;  %v341_v52 = vld [vmem:[%s1851_s29 + $0x40] sm:$0xff]  ;;  %v342_v53 = vld [vmem:[%s1851_s29 + $0x48] sm:$0xff]  ;;  %p1476_p12 = por %p1475_p11, %p1474_p5 }
  0xa5   : > { %390 = vperm.xlu1 %1352, %v368_v6   ;;  %385 = vperm.xlu0 %1351, %v367_v7   ;;  %v343_v55 = vld [vmem:[%s1851_s29 + $0x50] sm:$0xff]  ;;  %v344_v56 = vld [vmem:[%s1851_s29 + $0x58] sm:$0xff] }
  0xa6   : > { %p1477_p1 = pnand %p1476_p12, %p1470_p9 }
  0xa9   : > { %470 = vperm.xlu1 %1352, %v448_v8   ;;  %465 = vperm.xlu0 %1351, %v447_v9  }
  0xad   : > { %400 = vperm.xlu1 %1352, %v370_v10   ;;  %395 = vperm.xlu0 %1351, %v369_v11  }
  0xb1   : > { %480 = vperm.xlu1 %1352, %v450_v12   ;;  %475 = vperm.xlu0 %1351, %v449_v13  }
  0xb5   : > { %410 = vperm.xlu1 %1352, %v372_v14   ;;  %405 = vperm.xlu0 %1351, %v371_v15  }
  0xb9   : > { %490 = vperm.xlu1 %1352, %v452_v16   ;;  %485 = vperm.xlu0 %1351, %v451_v17  }
 0x11c   : > { %v456_v23 = vpop.permute.xlu1 %455  ;;  %v376_v24 = vpop.permute.xlu0 %375 }
 0x11d   : > { %v413_v25 = vmul.f32 %v376_v24, %v333_v19  ;;  %v415_v26 = vmul.f32 %v376_v24, %v335_v20  ;;  %v414_v27 = vmul.f32 %v376_v24, %v334_v21  ;;  %v416_v28 = vmul.f32 %v376_v24, %v336_v22  ;;  %v353_v20 = vld [vmem:[%s1851_s29 + $0xa0] sm:$0xff]  ;;  %v354_v21 = vld [vmem:[%s1851_s29 + $0xa8] sm:$0xff] }
 0x11f   : > { %v494_v35 = vadd.f32 %v456_v23, %v414_v27  ;;  %v496_v36 = vadd.f32 %v456_v23, %v416_v28  ;;  %v493_v37 = vadd.f32 %v456_v23, %v413_v25  ;;  %v495_v41 = vadd.f32 %v456_v23, %v415_v26  ;;  %v355_v26 = vld [vmem:[%s1851_s29 + $0xb0] sm:$0xff]  ;;  %v356_v27 = vld [vmem:[%s1851_s29 + $0xb8] sm:$0xff]  ;;  %v349_v28 = vld [vmem:[%s1851_s29 + $0x80] sm:$0xff] }
 0x120   : > { %v461_v33 = vpop.permute.xlu1 %460  ;;  %v381_v34 = vpop.permute.xlu0 %380 }
 0x121   : > { %v417_v38 = vmul.f32 %v381_v34, %v337_v29  ;;  %v419_v39 = vmul.f32 %v381_v34, %v339_v30  ;;  %v418_v40 = vmul.f32 %v381_v34, %v338_v31  ;;  %v420_v43 = vmul.f32 %v381_v34, %v340_v32  ;;  %v350_v31 = vld [vmem:[%s1851_s29 + $0x88] sm:$0xff]  ;;  %v351_v32 = vld [vmem:[%s1851_s29 + $0x90] sm:$0xff] }
 0x122   : > { %v526_v57 = vmax.f32 %v494_v35, 0.0  ;;  %v528_v58 = vmax.f32 %v496_v36, 0.0  ;;  %v525_v59 = vmax.f32 %v493_v37, 0.0  ;;  %v527_v60 = vmax.f32 %v495_v41, 0.0 }
 0x123   : > { %v498_v47 = vadd.f32 %v461_v33, %v418_v40  ;;  %v497_v48 = vadd.f32 %v461_v33, %v417_v38  ;;  %v499_v49 = vadd.f32 %v461_v33, %v419_v39  ;;  %v500_v54 = vadd.f32 %v461_v33, %v420_v43  ;;  %v352_v39 = vld [vmem:[%s1851_s29 + $0x98] sm:$0xff] }
 0x124   : > { %v391_v50 = vpop.permute.xlu1 %390  ;;  %v386_v51 = vpop.permute.xlu0 %385 }
 0x125   : > { %v425_v61 = vmul.f32 %v391_v50, %v345_v42  ;;  %v426_v62 = vmul.f32 %v391_v50, %v346_v44  ;;  %v427_v63 = vmul.f32 %v391_v50, %v347_v45  ;;  %v428_v0 = vmul.f32 %v391_v50, %v348_v46 }
 0x126   : > { %v530_v1 = vmax.f32 %v498_v47, 0.0  ;;  %v532_v2 = vmax.f32 %v500_v54, 0.0  ;;  %v529_v3 = vmax.f32 %v497_v48, 0.0  ;;  %v531_v4 = vmax.f32 %v499_v49, 0.0 }
 0x127   : > { %v421_v5 = vmul.f32 %v386_v51, %v341_v52  ;;  %v422_v6 = vmul.f32 %v386_v51, %v342_v53  ;;  %v423_v7 = vmul.f32 %v386_v51, %v343_v55  ;;  %v424_v8 = vmul.f32 %v386_v51, %v344_v56 }
 0x128   : > { %v471_v9 = vpop.permute.xlu1 %470  ;;  %v466_v10 = vpop.permute.xlu0 %465  ;;  %v1215_v22 = vpack.c.bf16 %v530_v1, %v526_v57  ;;  %v1231_v23 = vpack.c.bf16 %v532_v2, %v528_v58  ;;  %v1217_v24 = vpack.c.bf16 %v529_v3, %v525_v59  ;;  %v1233_v25 = vpack.c.bf16 %v531_v4, %v527_v60  ;;  %v362_v1 = vld [vmem:[%s1851_s29 + $0xe8] sm:$0xff]  ;;  %v363_v2 = vld [vmem:[%s1851_s29 + $0xf0] sm:$0xff]  ;;  %v364_v3 = vld [vmem:[%s1851_s29 + $0xf8] sm:$0xff] }
 0x129   : > { %v505_v11 = vadd.f32 %v471_v9, %v425_v61  ;;  %v506_v12 = vadd.f32 %v471_v9, %v426_v62  ;;  %v507_v13 = vadd.f32 %v471_v9, %v427_v63  ;;  %v508_v14 = vadd.f32 %v471_v9, %v428_v0  ;;  %v361_v62 = vld [vmem:[%s1851_s29 + $0xe0] sm:$0xff] }
 0x12a   : > { %v501_v15 = vadd.f32 %v466_v10, %v421_v5  ;;  %v502_v16 = vadd.f32 %v466_v10, %v422_v6  ;;  %v503_v17 = vadd.f32 %v466_v10, %v423_v7  ;;  %v504_v19 = vadd.f32 %v466_v10, %v424_v8  ;;  %1216 = vmatprep.subr.bf16.mxu0 %v1215_v22  ;;  %v357_v8 = vld [vmem:[%s1851_s29 + $0xc0] sm:$0xff] }
 0x12b   : > { %v538_v34 = vmax.f32 %v506_v12, 0.0  ;;  %v540_v36 = vmax.f32 %v508_v14, 0.0  ;;  %1232 = vmatprep.subr.bf16.mxu1 %v1231_v23  ;;  %1218 = vmatpush1.bf16.msra.mxu0 %v1217_v24  ;;  %v537_v44 = vmax.f32 %v505_v11, 0.0  ;;  %v539_v54 = vmax.f32 %v507_v13, 0.0  ;;  %v358_v11 = vld [vmem:[%s1851_s29 + $0xc8] sm:$0xff]  ;;  %v359_v12 = vld [vmem:[%s1851_s29 + $0xd0] sm:$0xff] }
 0x12c   : > { %v401_v29 = vpop.permute.xlu1 %400  ;;  %v396_v30 = vpop.permute.xlu0 %395  ;;  %v534_v33 = vmax.f32 %v502_v16, 0.0  ;;  %v536_v35 = vmax.f32 %v504_v19, 0.0  ;;  %v533_v40 = vmax.f32 %v501_v15, 0.0  ;;  %1234 = vmatpush1.bf16.msra.mxu1 %v1233_v25  ;;  %v535_v53 = vmax.f32 %v503_v17, 0.0  ;;  %v360_v13 = vld [vmem:[%s1851_s29 + $0xd8] sm:$0xff] }
 0x12d   : > { %v433_v37 = vmul.f32 %v401_v29, %v353_v20  ;;  %v434_v38 = vmul.f32 %v401_v29, %v354_v21  ;;  %v435_v41 = vmul.f32 %v401_v29, %v355_v26  ;;  %v436_v42 = vmul.f32 %v401_v29, %v356_v27 }
 0x12e   : > { %v429_v43 = vmul.f32 %v396_v30, %v349_v28  ;;  %v430_v45 = vmul.f32 %v396_v30, %v350_v31  ;;  %v431_v46 = vmul.f32 %v396_v30, %v351_v32  ;;  %v1219_v47 = vpack.c.bf16 %v538_v34, %v534_v33 }
 0x12f   : > { %v1235_v48 = vpack.c.bf16 %v540_v36, %v536_v35  ;;  %v432_v49 = vmul.f32 %v396_v30, %v352_v39  ;;  %v1221_v52 = vpack.c.bf16 %v537_v44, %v533_v40  ;;  %v1237_v0 = vpack.c.bf16 %v539_v54, %v535_v53  ;;  %v557_v53 = vld [vmem:[#allocation8] sm:$0xff]  ;;  %v558_v54 = vld [vmem:[#allocation8 + $0x8] sm:$0xff] }
 0x130   : > { %v481_v50 = vpop.permute.xlu1 %480  ;;  %v476_v51 = vpop.permute.xlu0 %475  ;;  %1220 = vmatprep.subr.bf16.mxu0 %v1219_v47 }
 0x131   : > { %1236 = vmatprep.subr.bf16.mxu1 %v1235_v48  ;;  %v513_v55 = vadd.f32 %v481_v50, %v433_v37  ;;  %v514_v56 = vadd.f32 %v481_v50, %v434_v38  ;;  %v515_v57 = vadd.f32 %v481_v50, %v435_v41  ;;  %v516_v58 = vadd.f32 %v481_v50, %v436_v42 }
 0x132   : > { %v509_v59 = vadd.f32 %v476_v51, %v429_v43  ;;  %v510_v60 = vadd.f32 %v476_v51, %v430_v45  ;;  %v511_v61 = vadd.f32 %v476_v51, %v431_v46  ;;  %1222 = vmatpush1.bf16.msra.mxu0 %v1221_v52  ;;  %v512_v63 = vadd.f32 %v476_v51, %v432_v49 }
 0x133   : > { %v546_v4 = vmax.f32 %v514_v56, 0.0  ;;  %v545_v5 = vmax.f32 %v513_v55, 0.0  ;;  %1238 = vmatpush1.bf16.msra.mxu1 %v1237_v0  ;;  %v548_v14 = vmax.f32 %v516_v58, 0.0  ;;  %v547_v24 = vmax.f32 %v515_v57, 0.0  ;;  %v559_v55 = vld [vmem:[#allocation8 + $0x10] sm:$0xff]  ;;  %v560_v56 = vld [vmem:[#allocation8 + $0x18] sm:$0xff] }
 0x134   : > { %v411_v6 = vpop.permute.xlu1 %410  ;;  %v406_v7 = vpop.permute.xlu0 %405  ;;  %v542_v9 = vmax.f32 %v510_v60, 0.0  ;;  %v541_v10 = vmax.f32 %v509_v59, 0.0  ;;  %v543_v15 = vmax.f32 %v511_v61, 0.0  ;;  %v544_v22 = vmax.f32 %v512_v63, 0.0  ;;  %v561_v57 = vld [vmem:[#allocation8 + $0x20] sm:$0xff]  ;;  %v562_v58 = vld [vmem:[#allocation8 + $0x28] sm:$0xff] }
 0x135   : > { %v441_v16 = vmul.f32 %v411_v6, %v361_v62  ;;  %v442_v17 = vmul.f32 %v411_v6, %v362_v1  ;;  %v443_v19 = vmul.f32 %v411_v6, %v363_v2  ;;  %v444_v20 = vmul.f32 %v411_v6, %v364_v3  ;;  %v563_v59 = vld [vmem:[#allocation8 + $0x30] sm:$0xff]  ;;  %v564_v60 = vld [vmem:[#allocation8 + $0x38] sm:$0xff] }
 0x136   : > { %v1223_v21 = vpack.c.bf16 %v546_v4, %v542_v9  ;;  %v1225_v23 = vpack.c.bf16 %v545_v5, %v541_v10  ;;  %v437_v25 = vmul.f32 %v406_v7, %v357_v8  ;;  %v438_v26 = vmul.f32 %v406_v7, %v358_v11 }
 0x137   : > { %v439_v27 = vmul.f32 %v406_v7, %v359_v12  ;;  %v440_v28 = vmul.f32 %v406_v7, %v360_v13  ;;  %v1239_v31 = vpack.c.bf16 %v548_v14, %v544_v22  ;;  %v1241_v40 = vpack.c.bf16 %v547_v24, %v543_v15 }
 0x138   : > { %v491_v29 = vpop.permute.xlu1 %490  ;;  %v486_v30 = vpop.permute.xlu0 %485  ;;  %1224 = vmatprep.subr.bf16.mxu0 %v1223_v21 }
 0x139   : > { %v521_v32 = vadd.f32 %v491_v29, %v441_v16  ;;  %v522_v33 = vadd.f32 %v491_v29, %v442_v17  ;;  %v523_v34 = vadd.f32 %v491_v29, %v443_v19  ;;  %v524_v35 = vadd.f32 %v491_v29, %v444_v20  ;;  %1226 = vmatpush1.bf16.msra.mxu0 %v1225_v23 }
 0x13a   : > { %v517_v36 = vadd.f32 %v486_v30, %v437_v25  ;;  %v518_v37 = vadd.f32 %v486_v30, %v438_v26  ;;  %v519_v38 = vadd.f32 %v486_v30, %v439_v27  ;;  %1240 = vmatprep.subr.bf16.mxu1 %v1239_v31  ;;  %v520_v39 = vadd.f32 %v486_v30, %v440_v28 }
 0x13b   : > { %v554_v41 = vmax.f32 %v522_v33, 0.0  ;;  %v553_v42 = vmax.f32 %v521_v32, 0.0  ;;  %v556_v44 = vmax.f32 %v524_v35, 0.0  ;;  %1242 = vmatpush1.bf16.msra.mxu1 %v1241_v40  ;;  %v555_v48 = vmax.f32 %v523_v34, 0.0 }
 0x13c   : > { %v550_v43 = vmax.f32 %v518_v37, 0.0  ;;  %v549_v45 = vmax.f32 %v517_v36, 0.0  ;;  %v551_v46 = vmax.f32 %v519_v38, 0.0  ;;  %v552_v47 = vmax.f32 %v520_v39, 0.0 }
 0x13e   : > { %v1227_v49 = vpack.c.bf16 %v554_v41, %v550_v43  ;;  %v1229_v50 = vpack.c.bf16 %v553_v42, %v549_v45  ;;  %v1243_v51 = vpack.c.bf16 %v556_v44, %v552_v47  ;;  %v1245_v52 = vpack.c.bf16 %v555_v48, %v551_v46 }
 0x140   : > { %1228 = vmatprep.subr.bf16.mxu0 %v1227_v49  ;;  %1244 = vmatprep.subr.bf16.mxu1 %v1243_v51 }
 0x141   : > { %1230 = vmatpush1.bf16.msra.mxu0 %v1229_v50  ;;  %1246 = vmatpush1.bf16.msra.mxu1 %v1245_v52 }
 0x144   : > { %1188 = vmatmul.mubr.msk.f32.vlgmr.msra.gmra.mrb[0].mxu0 %vm565_vm1, %v557_v53  ;;  %1196 = vmatmul.mubr.msk.f32.vlgmr.msra.gmra.mrb[0].mxu1 %vm565_vm1, %v557_v53 }
 0x145   : > { %660 = vmatprep.mubr.f32.mxu0 %v1610_v18  ;;  %773 = vmatprep.mubr.f32.mxu1 %v1610_v18 }
 0x148   : > { %1189 = vmatmul.mubr.msk.f32.gmra.mrb[2].mxu0 %vm565_vm1, %v558_v54  ;;  %1197 = vmatmul.mubr.msk.f32.gmra.mrb[2].mxu1 %vm565_vm1, %v558_v54 }
 0x149   : > { %666 = vmatprep.mubr.f32.mxu0 %v1610_v18  ;;  %779 = vmatprep.mubr.f32.mxu1 %v1610_v18 }
 0x14c   : > { %1190 = vmatmul.mubr.msk.f32.gmra.mrb[4].mxu0 %vm565_vm1, %v559_v55  ;;  %1198 = vmatmul.mubr.msk.f32.gmra.mrb[4].mxu1 %vm565_vm1, %v559_v55 }
 0x14d   : > { %672 = vmatprep.mubr.f32.mxu0 %v1610_v18  ;;  %785 = vmatprep.mubr.f32.mxu1 %v1610_v18 }
 0x150   : > { %1191 = vmatmul.mubr.msk.f32.gmra.mrb[6].mxu0 %vm565_vm1, %v560_v56  ;;  %1199 = vmatmul.mubr.msk.f32.gmra.mrb[6].mxu1 %vm565_vm1, %v560_v56 }
 0x151   : > { %678 = vmatprep.mubr.f32.mxu0 %v1610_v18  ;;  %791 = vmatprep.mubr.f32.mxu1 %v1610_v18 }
 0x154   : > { %1192 = vmatmul.mubr.msk.f32.gmra.mrb[8].mxu0 %vm565_vm1, %v561_v57  ;;  %1200 = vmatmul.mubr.msk.f32.gmra.mrb[8].mxu1 %vm565_vm1, %v561_v57 }
 0x155   : > { %684 = vmatprep.mubr.f32.mxu0 %v1610_v18  ;;  %797 = vmatprep.mubr.f32.mxu1 %v1610_v18 }
 0x158   : > { %1193 = vmatmul.mubr.msk.f32.gmra.mrb[10].mxu0 %vm565_vm1, %v562_v58  ;;  %1201 = vmatmul.mubr.msk.f32.gmra.mrb[10].mxu1 %vm565_vm1, %v562_v58 }
 0x159   : > { %690 = vmatprep.mubr.f32.mxu0 %v1610_v18  ;;  %803 = vmatprep.mubr.f32.mxu1 %v1610_v18 }
 0x15c   : > { %1194 = vmatmul.mubr.msk.f32.gmra.mrb[12].mxu0 %vm565_vm1, %v563_v59  ;;  %1202 = vmatmul.mubr.msk.f32.gmra.mrb[12].mxu1 %vm565_vm1, %v563_v59 }
 0x15d   : > { %696 = vmatprep.mubr.f32.mxu0 %v1610_v18  ;;  %809 = vmatprep.mubr.f32.mxu1 %v1610_v18 }
 0x160   : > { %1195 = vmatmul.mubr.msk.f32.gmra.mrb[14].mxu0 %vm565_vm1, %v564_v60  ;;  %1203 = vmatmul.mubr.msk.f32.gmra.mrb[14].mxu1 %vm565_vm1, %v564_v60 }
 0x217   : > { %v656_v61 = vpop.f32.mrb[0].mxu0  ;;  %v769_v0 = vpop.f32.mrb[0].mxu1 }
 0x218   : > { %816 = vst [vmem:[%s1865_s11] sm:$0xff] %v656_v61  ;;  %v921_v62 = vmul.f32 %v656_v61, %v656_v61  ;;  %v658_v63 = vpop.f32.mrb[1].mxu0  ;;  %818 = vst [vmem:[%s1865_s11 + $0x10] sm:$0xff] %v769_v0  ;;  %v771_v3 = vpop.f32.mrb[1].mxu1  ;;  %v923_v4 = vmul.f32 %v769_v0, %v769_v0 }
 0x219   : > { %817 = vst [vmem:[%s1865_s11 + $0x8] sm:$0xff] %v658_v63  ;;  %v856_v1 = vadd.f32 %v658_v63, %v656_v61  ;;  %v922_v2 = vmul.f32 %v658_v63, %v658_v63  ;;  %819 = vst [vmem:[%s1865_s11 + $0x18] sm:$0xff] %v771_v3  ;;  %v924_v15 = vmul.f32 %v771_v3, %v771_v3 }
 0x21b   : > { %v662_v18 = vpop.f32.mrb[2].mxu0  ;;  %v857_v5 = vadd.f32 %v856_v1, %v769_v0  ;;  %v953_v6 = vadd.f32 %v922_v2, %v921_v62  ;;  %v775_v9 = vpop.f32.mrb[2].mxu1 }
 0x21c   : > { %820 = vst [vmem:[%s1865_s11 + $0x20] sm:$0xff] %v662_v18  ;;  %v925_v7 = vmul.f32 %v662_v18, %v662_v18  ;;  %v664_v8 = vpop.f32.mrb[3].mxu0  ;;  %822 = vst [vmem:[%s1865_s11 + $0x30] sm:$0xff] %v775_v9  ;;  %v927_v12 = vmul.f32 %v775_v9, %v775_v9  ;;  %v777_v13 = vpop.f32.mrb[3].mxu1 }
 0x21d   : > { %821 = vst [vmem:[%s1865_s11 + $0x28] sm:$0xff] %v664_v8  ;;  %v861_v10 = vadd.f32 %v664_v8, %v662_v18  ;;  %v926_v11 = vmul.f32 %v664_v8, %v664_v8  ;;  %v858_v14 = vadd.f32 %v857_v5, %v771_v3  ;;  %823 = vst [vmem:[%s1865_s11 + $0x38] sm:$0xff] %v777_v13 }
 0x21e   : > { %v954_v16 = vadd.f32 %v953_v6, %v923_v4  ;;  %v928_v25 = vmul.f32 %v777_v13, %v777_v13 }
 0x21f   : > { %859 = vadd.xlane.f32.xlu0 %v858_v14  ;;  %v668_v17 = vpop.f32.mrb[4].mxu0  ;;  %v958_v19 = vadd.f32 %v926_v11, %v925_v7  ;;  %v862_v20 = vadd.f32 %v861_v10, %v775_v9  ;;  %v781_v24 = vpop.f32.mrb[4].mxu1 }
 0x220   : > { %824 = vst [vmem:[%s1865_s11 + $0x40] sm:$0xff] %v668_v17  ;;  %v929_v21 = vmul.f32 %v668_v17, %v668_v17  ;;  %v670_v22 = vpop.f32.mrb[5].mxu0  ;;  %v955_v23 = vadd.f32 %v954_v16, %v924_v15  ;;  %826 = vst [vmem:[%s1865_s11 + $0x50] sm:$0xff] %v781_v24  ;;  %v931_v28 = vmul.f32 %v781_v24, %v781_v24  ;;  %v783_v29 = vpop.f32.mrb[5].mxu1 }
 0x221   : > { %825 = vst [vmem:[%s1865_s11 + $0x48] sm:$0xff] %v670_v22  ;;  %v866_v26 = vadd.f32 %v670_v22, %v668_v17  ;;  %v930_v27 = vmul.f32 %v670_v22, %v670_v22  ;;  %v959_v30 = vadd.f32 %v958_v19, %v927_v12  ;;  %827 = vst [vmem:[%s1865_s11 + $0x58] sm:$0xff] %v783_v29 }
 0x222   : > { %956 = vadd.xlane.f32.xlu1 %v955_v23  ;;  %v863_v31 = vadd.f32 %v862_v20, %v777_v13  ;;  %v932_v34 = vmul.f32 %v783_v29, %v783_v29 }
 0x223   : > { %v674_v32 = vpop.f32.mrb[6].mxu0  ;;  %v960_v33 = vadd.f32 %v959_v30, %v928_v25  ;;  %v963_v35 = vadd.f32 %v930_v27, %v929_v21  ;;  %v867_v36 = vadd.f32 %v866_v26, %v781_v24  ;;  %v787_v39 = vpop.f32.mrb[6].mxu1 }
 0x224   : > { %828 = vst [vmem:[%s1865_s11 + $0x60] sm:$0xff] %v674_v32  ;;  %v933_v37 = vmul.f32 %v674_v32, %v674_v32  ;;  %v676_v38 = vpop.f32.mrb[7].mxu0  ;;  %830 = vst [vmem:[%s1865_s11 + $0x70] sm:$0xff] %v787_v39  ;;  %v789_v42 = vpop.f32.mrb[7].mxu1  ;;  %v935_v44 = vmul.f32 %v787_v39, %v787_v39 }
 0x225   : > { %829 = vst [vmem:[%s1865_s11 + $0x68] sm:$0xff] %v676_v38  ;;  %v871_v40 = vadd.f32 %v676_v38, %v674_v32  ;;  %v934_v41 = vmul.f32 %v676_v38, %v676_v38  ;;  %961 = vadd.xlane.f32.xlu0 %v960_v33  ;;  %v964_v43 = vadd.f32 %v963_v35, %v931_v28  ;;  %831 = vst [vmem:[%s1865_s11 + $0x78] sm:$0xff] %v789_v42 }
 0x226   : > { %864 = vadd.xlane.f32.xlu1 %v863_v31  ;;  %v868_v45 = vadd.f32 %v867_v36, %v783_v29  ;;  %v936_v53 = vmul.f32 %v789_v42, %v789_v42 }
 0x227   : > { %v680_v46 = vpop.f32.mrb[8].mxu0  ;;  %v965_v47 = vadd.f32 %v964_v43, %v932_v34  ;;  %v872_v48 = vadd.f32 %v871_v40, %v787_v39  ;;  %v968_v49 = vadd.f32 %v934_v41, %v933_v37  ;;  %v793_v52 = vpop.f32.mrb[8].mxu1 }
 0x228   : > { %832 = vst [vmem:[%s1865_s11 + $0x80] sm:$0xff] %v680_v46  ;;  %v937_v50 = vmul.f32 %v680_v46, %v680_v46  ;;  %v682_v51 = vpop.f32.mrb[9].mxu0  ;;  %834 = vst [vmem:[%s1865_s11 + $0x90] sm:$0xff] %v793_v52  ;;  %v795_v56 = vpop.f32.mrb[9].mxu1  ;;  %v939_v58 = vmul.f32 %v793_v52, %v793_v52 }
 0x229   : > { %833 = vst [vmem:[%s1865_s11 + $0x88] sm:$0xff] %v682_v51  ;;  %v876_v54 = vadd.f32 %v682_v51, %v680_v46  ;;  %v938_v55 = vmul.f32 %v682_v51, %v682_v51  ;;  %869 = vadd.xlane.f32.xlu0 %v868_v45  ;;  %v873_v57 = vadd.f32 %v872_v48, %v789_v42  ;;  %835 = vst [vmem:[%s1865_s11 + $0x98] sm:$0xff] %v795_v56 }
 0x22a   : > { %966 = vadd.xlane.f32.xlu1 %v965_v47  ;;  %v969_v59 = vadd.f32 %v968_v49, %v935_v44  ;;  %v940_v3 = vmul.f32 %v795_v56, %v795_v56 }
 0x22b   : > { %v686_v60 = vpop.f32.mrb[10].mxu0  ;;  %v877_v61 = vadd.f32 %v876_v54, %v793_v52  ;;  %v973_v62 = vadd.f32 %v938_v55, %v937_v50  ;;  %v799_v1 = vpop.f32.mrb[10].mxu1 }
 0x22c   : > { %836 = vst [vmem:[%s1865_s11 + $0xa0] sm:$0xff] %v686_v60  ;;  %v941_v63 = vmul.f32 %v686_v60, %v686_v60  ;;  %v688_v0 = vpop.f32.mrb[11].mxu0  ;;  %v970_v2 = vadd.f32 %v969_v59, %v936_v53  ;;  %838 = vst [vmem:[%s1865_s11 + $0xb0] sm:$0xff] %v799_v1  ;;  %v801_v6 = vpop.f32.mrb[11].mxu1  ;;  %v943_v7 = vmul.f32 %v799_v1, %v799_v1 }
 0x22d   : > { %837 = vst [vmem:[%s1865_s11 + $0xa8] sm:$0xff] %v688_v0  ;;  %v881_v4 = vadd.f32 %v688_v0, %v686_v60  ;;  %v942_v18 = vmul.f32 %v688_v0, %v688_v0  ;;  %874 = vadd.xlane.f32.xlu0 %v873_v57  ;;  %v878_v5 = vadd.f32 %v877_v61, %v795_v56  ;;  %839 = vst [vmem:[%s1865_s11 + $0xb8] sm:$0xff] %v801_v6 }
 0x22e   : > { %v974_v8 = vadd.f32 %v973_v62, %v939_v58  ;;  %v944_v16 = vmul.f32 %v801_v6, %v801_v6 }
 0x22f   : > { %879 = vadd.xlane.f32.xlu1 %v878_v5  ;;  %v692_v9 = vpop.f32.mrb[12].mxu0  ;;  %v882_v10 = vadd.f32 %v881_v4, %v799_v1  ;;  %v978_v11 = vadd.f32 %v942_v18, %v941_v63  ;;  %v805_v14 = vpop.f32.mrb[12].mxu1 }
 0x230   : > { %840 = vst [vmem:[%s1865_s11 + $0xc0] sm:$0xff] %v692_v9  ;;  %v945_v12 = vmul.f32 %v692_v9, %v692_v9  ;;  %v694_v13 = vpop.f32.mrb[13].mxu0  ;;  %v975_v15 = vadd.f32 %v974_v8, %v940_v3  ;;  %842 = vst [vmem:[%s1865_s11 + $0xd0] sm:$0xff] %v805_v14  ;;  %v807_v20 = vpop.f32.mrb[13].mxu1  ;;  %v947_v22 = vmul.f32 %v805_v14, %v805_v14 }
 0x231   : > { %841 = vst [vmem:[%s1865_s11 + $0xc8] sm:$0xff] %v694_v13  ;;  %v886_v17 = vadd.f32 %v694_v13, %v692_v9  ;;  %v946_v19 = vmul.f32 %v694_v13, %v694_v13  ;;  %971 = vadd.xlane.f32.xlu0 %v970_v2  ;;  %v883_v21 = vadd.f32 %v882_v10, %v801_v6  ;;  %843 = vst [vmem:[%s1865_s11 + $0xd8] sm:$0xff] %v807_v20 }
 0x232   : > { %v979_v23 = vadd.f32 %v978_v11, %v943_v7  ;;  %v948_v31 = vmul.f32 %v807_v20, %v807_v20 }
 0x233   : > { %976 = vadd.xlane.f32.xlu1 %v975_v15  ;;  %v698_v24 = vpop.f32.mrb[14].mxu0  ;;  %v887_v25 = vadd.f32 %v886_v17, %v805_v14  ;;  %v983_v26 = vadd.f32 %v946_v19, %v945_v12  ;;  %v811_v29 = vpop.f32.mrb[14].mxu1 }
 0x234   : > { %844 = vst [vmem:[%s1865_s11 + $0xe0] sm:$0xff] %v698_v24  ;;  %v949_v27 = vmul.f32 %v698_v24, %v698_v24  ;;  %v700_v28 = vpop.f32.mrb[15].mxu0  ;;  %v980_v30 = vadd.f32 %v979_v23, %v944_v16  ;;  %846 = vst [vmem:[%s1865_s11 + $0xf0] sm:$0xff] %v811_v29  ;;  %v951_v34 = vmul.f32 %v811_v29, %v811_v29  ;;  %v813_v36 = vpop.f32.mrb[15].mxu1 }
 0x235   : > { %845 = vst [vmem:[%s1865_s11 + $0xe8] sm:$0xff] %v700_v28  ;;  %v891_v32 = vadd.f32 %v700_v28, %v698_v24  ;;  %v950_v33 = vmul.f32 %v700_v28, %v700_v28  ;;  %884 = vadd.xlane.f32.xlu0 %v883_v21  ;;  %v888_v35 = vadd.f32 %v887_v25, %v807_v20  ;;  %847 = vst [vmem:[%s1865_s11 + $0xf8] sm:$0xff] %v813_v36 }
 0x236   : > { %v984_v37 = vadd.f32 %v983_v26, %v947_v22  ;;  %v952_v39 = vmul.f32 %v813_v36, %v813_v36 }
 0x237   : > { %v988_v38 = vadd.f32 %v950_v33, %v949_v27  ;;  %889 = vadd.xlane.f32.xlu1 %v888_v35  ;;  %v892_v40 = vadd.f32 %v891_v32, %v811_v29 }
 0x238   : > { %v985_v41 = vadd.f32 %v984_v37, %v948_v31 }
 0x239   : > { %981 = vadd.xlane.f32.xlu0 %v980_v30  ;;  %v893_v42 = vadd.f32 %v892_v40, %v813_v36  ;;  %v989_v43 = vadd.f32 %v988_v38, %v951_v34 }
 0x23b   : > { %986 = vadd.xlane.f32.xlu1 %v985_v41  ;;  %v990_v44 = vadd.f32 %v989_v43, %v952_v39 }
 0x23d   : > { %894 = vadd.xlane.f32.xlu0 %v893_v42 }
 0x241   : > { %991 = vadd.xlane.f32.xlu0 %v990_v44 }
 0x242   : > { %1480 = shalt.err (!%p1477_p1)
}
 0x243   : > { %s1481_s30 = scalar_lea.hbm %s1986_s7, 4096  ;;  %s1485_s14 = scalar_lea.hbm %s2091_s4, 65536 }
 0x244   : > { %p1482_p6 = scmp.ne.s32.totalorder %s1986_s7, %s1481_s30  ;;  %p1486_p3 = scmp.lt.u32.totalorder %s1986_s7, %s2091_s4 }
 0x245   : > { %p1487_p8 = scmp.lt.u32.totalorder %s1485_s14, %s1481_s30  ;;  %p1489_p2 = scmp.lt.u32.totalorder %s1481_s30, %s1986_s7 }
 0x246   : > { %p1483_p0 = pnand %p1482_p6, %p2126_p4 }
 0x247   : > { %p1488_p10 = por %p1487_p8, %p1486_p3 }
 0x248   : > { %p1484_p13 = pneg %p1483_p0 }
 0x249   : > { %p1490_p7 = por %p1489_p2, %p1488_p10 }
 0x24b   : > { %p1491_p9 = pnand %p1490_p7, %p1484_p13 }
 0x24d   : > { %1494 = shalt.err (!%p1491_p9)
}
 0x24e   : > { %s1612_s29 = smov 512   ;;  %s1613_s11 = smov 8192   ;;  %v848_v45 = vld [vmem:[#allocation11] sm:$0xff]  ;;  %vm904_vm2 = vcmask 7168   ;;  %v914_v51 = vld [vmem:[#allocation13 + $0x8] sm:$0xff]  ;;  %v850_v57 = vld [vmem:[#allocation11 + $0x10] sm:$0xff] }
 0x24f   : > { %s1614_s8 = smov 32   ;;  %v913_v48 = vld [vmem:[#allocation13] sm:$0xff]  ;;  %v849_v52 = vld [vmem:[#allocation11 + $0x8] sm:$0xff]  ;;  %v915_v58 = vld [vmem:[#allocation13 + $0x10] sm:$0xff]  ;;  %s1615_s9 = smov [#allocation11]  }
 0x250   : > { %1261 = dma.vmem_to_hbm [thread:$0]  (%p2126_p4), %s1988_s26, 4096, %s1986_s7, %s1010_s16, %s1612_s29, %s1613_s11, %s1614_s8   ;;  %v851_v63 = vld [vmem:[#allocation11 + $0x18] sm:$0xff]  ;;  %v852_v1 = vld [vmem:[#allocation11 + $0x20] sm:$0xff]  ;;  %v853_v9 = vld [vmem:[#allocation11 + $0x28] sm:$0xff] }
 0x251   : > { %v916_v4 = vld [vmem:[#allocation13 + $0x18] sm:$0xff]  ;;  %v917_v6 = vld [vmem:[#allocation13 + $0x20] sm:$0xff]  ;;  %v854_v12 = vld [vmem:[#allocation11 + $0x30] sm:$0xff]  ;;  %s1036_s27 = sshll.u32 %s1615_s9, 4  ;;  %s1616_s26 = smov [#allocation13]   ;;  %s1037_s27 = int_to_ptr.vmem [resolvable:$true] %s1036_s27 }
 0x252   : > { %v918_v15 = vld [vmem:[#allocation13 + $0x28] sm:$0xff]  ;;  %v919_v19 = vld [vmem:[#allocation13 + $0x30] sm:$0xff]  ;;  %v855_v22 = vld [vmem:[#allocation11 + $0x38] sm:$0xff]  ;;  %s1049_s19 = sshll.u32 %s1616_s26, 4  ;;  %s1495_s13 = scalar_lea.vmem %s1037_s27, 1024  ;;  %s1050_s19 = int_to_ptr.vmem [resolvable:$true] %s1049_s19 }
 0x253   : > { %v920_v26 = vld [vmem:[#allocation13 + $0x38] sm:$0xff]  ;;  %p1496_p4 = scmp.ne.s32.totalorder %s1037_s27, %s1495_s13  ;;  %p2127_p5 = scmp.eq.s32.totalorder %s1675_s25, 15 }
 0x254   : > { %p1502_p1 = scmp.lt.s32.totalorder %s1037_s27, %s1037_s27  ;;  %p1503_p6 = scmp.lt.s32.totalorder %s1495_s13, %s1495_s13 }
 0x255   : > { %p1497_p11 = pnand %p1496_p4, %p2127_p5 }
 0x256   : > { %p1504_p0 = por %p1503_p6, %p1502_p1 }
 0x257   : > { %p1498_p12 = pneg %p1497_p11 }
 0x259   : > { %p1505_p13 = pnand %p1504_p0, %p1498_p12 }
 0x2ac   : > { %v860_v46 = vpop.xlane.xlu0 %859 }
 0x2ad   : > { %v896_v47 = vadd.f32 %v860_v46, %v848_v45 }
 0x2af   : > { %905 = vst.msk [vmem:[#allocation11] sm:$0xff] %vm904_vm2, %v896_v47  ;;  %v957_v49 = vpop.xlane.xlu1 %956 }
 0x2b0   : > { %v993_v50 = vadd.f32 %v957_v49, %v913_v48 }
 0x2b2   : > { %1001 = vst.msk [vmem:[#allocation13] sm:$0xff] %vm904_vm2, %v993_v50  ;;  %v962_v53 = vpop.xlane.xlu0 %961 }
 0x2b3   : > { %v994_v54 = vadd.f32 %v962_v53, %v914_v51  ;;  %v865_v55 = vpop.xlane.xlu1 %864 }
 0x2b4   : > { %v897_v56 = vadd.f32 %v865_v55, %v849_v52 }
 0x2b5   : > { %1002 = vst.msk [vmem:[#allocation13 + $0x8] sm:$0xff] %vm904_vm2, %v994_v54 }
 0x2b6   : > { %906 = vst.msk [vmem:[#allocation11 + $0x8] sm:$0xff] %vm904_vm2, %v897_v56  ;;  %v870_v59 = vpop.xlane.xlu0 %869 }
 0x2b7   : > { %v967_v60 = vpop.xlane.xlu1 %966  ;;  %v898_v61 = vadd.f32 %v870_v59, %v850_v57 }
 0x2b8   : > { %v995_v62 = vadd.f32 %v967_v60, %v915_v58 }
 0x2b9   : > { %907 = vst.msk [vmem:[#allocation11 + $0x10] sm:$0xff] %vm904_vm2, %v898_v61 }
 0x2ba   : > { %1003 = vst.msk [vmem:[#allocation13 + $0x10] sm:$0xff] %vm904_vm2, %v995_v62  ;;  %v875_v0 = vpop.xlane.xlu0 %874 }
 0x2bb   : > { %v899_v2 = vadd.f32 %v875_v0, %v851_v63 }
 0x2bc   : > { %v880_v3 = vpop.xlane.xlu1 %879 }
 0x2bd   : > { %908 = vst.msk [vmem:[#allocation11 + $0x18] sm:$0xff] %vm904_vm2, %v899_v2  ;;  %v900_v18 = vadd.f32 %v880_v3, %v852_v1 }
 0x2be   : > { %v972_v5 = vpop.xlane.xlu0 %971 }
 0x2bf   : > { %909 = vst.msk [vmem:[#allocation11 + $0x20] sm:$0xff] %vm904_vm2, %v900_v18  ;;  %v996_v7 = vadd.f32 %v972_v5, %v916_v4 }
 0x2c0   : > { %v977_v8 = vpop.xlane.xlu1 %976 }
 0x2c1   : > { %1004 = vst.msk [vmem:[#allocation13 + $0x18] sm:$0xff] %vm904_vm2, %v996_v7  ;;  %v997_v10 = vadd.f32 %v977_v8, %v917_v6 }
 0x2c2   : > { %v885_v11 = vpop.xlane.xlu0 %884 }
 0x2c3   : > { %1005 = vst.msk [vmem:[#allocation13 + $0x20] sm:$0xff] %vm904_vm2, %v997_v10  ;;  %v901_v13 = vadd.f32 %v885_v11, %v853_v9 }
 0x2c4   : > { %v890_v14 = vpop.xlane.xlu1 %889 }
 0x2c5   : > { %910 = vst.msk [vmem:[#allocation11 + $0x28] sm:$0xff] %vm904_vm2, %v901_v13  ;;  %v902_v16 = vadd.f32 %v890_v14, %v854_v12 }
 0x2c6   : > { %v982_v17 = vpop.xlane.xlu0 %981 }
 0x2c7   : > { %911 = vst.msk [vmem:[#allocation11 + $0x30] sm:$0xff] %vm904_vm2, %v902_v16  ;;  %v998_v20 = vadd.f32 %v982_v17, %v918_v15 }
 0x2c8   : > { %v987_v21 = vpop.xlane.xlu1 %986 }
 0x2c9   : > { %1006 = vst.msk [vmem:[#allocation13 + $0x28] sm:$0xff] %vm904_vm2, %v998_v20  ;;  %v999_v23 = vadd.f32 %v987_v21, %v919_v19 }
 0x2ca   : > { %v895_v24 = vpop.xlane.xlu0 %894 }
 0x2cb   : > { %1007 = vst.msk [vmem:[#allocation13 + $0x30] sm:$0xff] %vm904_vm2, %v999_v23  ;;  %v903_v25 = vadd.f32 %v895_v24, %v855_v22 }
 0x2cd   : > { %912 = vst.msk [vmem:[#allocation11 + $0x38] sm:$0xff] %vm904_vm2, %v903_v25 }
 0x2ce   : > { %v992_v27 = vpop.xlane.xlu0 %991 }
 0x2cf   : > { %1508 = shalt.err (!%p1505_p13)
}
 0x2d0   : > { %s1509_s1 = scalar_lea.hbm %s2092_s5, 1024  ;;  %p2128_p8 = pmov %p2127_p5 }
 0x2d1   : > { %p1510_p3 = scmp.ne.s32.totalorder %s2092_s5, %s1509_s1  ;;  %p1515_p7 = scmp.lt.u32.totalorder %s1509_s1, %s2092_s5 }
 0x2d3   : > { %p1511_p10 = pnand %p1510_p3, %p2128_p8 }
 0x2d5   : > { %p1512_p2 = pneg %p1511_p10 }
 0x2d7   : > { %p1517_p9 = pnand %p1515_p7, %p1512_p2 }
 0x2d9   : > { %1520 = shalt.err (!%p1517_p9)
}
 0x2da   : > { %s1617_s20 = smov 128   ;;  %s1618_s15 = smov 8   ;;  %v1000_v28 = vadd.f32 %v992_v27, %v920_v26 }
 0x2db   : > { %p2129_p4 = pmov %p2127_p5  ;;  %s1521_s18 = scalar_lea.vmem %s1050_s19, 1024 }
 0x2dc   : > { %1008 = vst.msk [vmem:[#allocation13 + $0x38] sm:$0xff] %vm904_vm2, %v1000_v28  ;;  %p1522_p5 = scmp.ne.s32.totalorder %s1050_s19, %s1521_s18  ;;  %p1528_p6 = scmp.lt.s32.totalorder %s1050_s19, %s1050_s19 }
 0x2dd   : > { %1263 = dma.vmem_to_hbm [thread:$0]  (%p2129_p4), %s1037_s27, 1024, %s2092_s5, [#allocation12], %s1617_s20, %s1617_s20, %s1618_s15  }
 0x2de   : > { %p2130_p11 = pmov %p2129_p4  ;;  %p1529_p0 = scmp.lt.s32.totalorder %s1521_s18, %s1521_s18 }
 0x2e0   : > { %p1523_p12 = pnand %p1522_p5, %p2130_p11  ;;  %p1530_p13 = por %p1529_p0, %p1528_p6 }
 0x2e2   : > { %p1524_p1 = pneg %p1523_p12 }
 0x2e4   : > { %p1531_p3 = pnand %p1530_p13, %p1524_p1 }
 0x2e6   : > { %1534 = shalt.err (!%p1531_p3)
}
 0x2e7   : > { %s1535_s8 = scalar_lea.hbm %s2093_s6, 1024  ;;  %p2131_p10 = pmov %p2129_p4 }
 0x2e8   : > { %p1536_p8 = scmp.ne.s32.totalorder %s2093_s6, %s1535_s8  ;;  %p1541_p9 = scmp.lt.u32.totalorder %s1535_s8, %s2093_s6 }
 0x2ea   : > { %p1537_p2 = pnand %p1536_p8, %p2131_p10 }
 0x2ec   : > { %p1538_p7 = pneg %p1537_p2 }
 0x2ee   : > { %p1543_p4 = pnand %p1541_p9, %p1538_p7 }
 0x2f0   : > { %1546 = shalt.err (!%p1543_p4)
}
 0x2f1   : > { %p2132_p5 = pmov %p2131_p10 }
 0x2f3   : > { %1265 = dma.vmem_to_hbm [thread:$0]  (%p2132_p5), %s1050_s19, 1024, %s2093_s6, [#allocation12], %s1617_s20, %s1617_s20, %s1618_s15  }
 0x2f4   : > { %p2133_p11 = pmov %p2132_p5 }
 0x2f5   : > { %p2134_p12 = pmov %p2132_p5 }
 0x2f6   : > { %1576 = dma.done.wait (%p2133_p11), [#allocation12], 2048  }
 0x2f7   : > { %1578 = vsyncadd (%p2134_p12), [#allocation12], 4294965248 }
 0x2f8 PF: > { %s2135_s1 = sld [smem:[#allocation21_spill]]  ;;  %p1300_p1 = scmp.ge.s32.totalorder %s1597_s24, 2 }
 0x2f9   : > { %s1072_s12 = sand.u32 1, %s1585_s21  }
 0x2fa   : > { %s1073_s10 = scalar_lea.sflag [#allocation4], %s1072_s12 }
 0x2fe   : > { %p2136_p6 = scmp.ne.s32.totalorder %s2135_s1, 0 }
 0x300   : > { %p1286_p0 = pnand %p1300_p1, %p2136_p6 }
 0x302   : > { %1580 = dma.done.wait (!%p1286_p0), %s1073_s10, 4096  }
 0x303   : > { %1582 = vsyncadd (!%p1286_p0), %s1073_s10, 4294963200  ;;  %s2137_s24 = sld [smem:[#allocation19_spill]]  ;;  %s2138_s19 = sld [smem:[#allocation20_spill]] }
 0x304   : > { %s2139_s21 = smov %s1589_s22  ;;  %s2140_s22 = smov %s1593_s23 }
 0x309   : > { %p23_p13 = scmp.ge.s32.totalorder %s2137_s24, 18   ;;  %s2141_s23 = smov %s2138_s19 }
 0x30b   :  { %25 = sbr.rel (!%p23_p13) target bundleno = 10 (0xa), region = 113 }
 0x312   :  { %1078 = vsyncpa [#allocation3], 1 }
 0x313   :  { %1080 = vsyncpa [#allocation3 + $0x1], 1 }
 0x314   :  { %1081 = vsyncpa [#allocation6], 1 }
 0x315   :  { %1082 = vsyncpa [#allocation9], 1 }
 0x316   :  { %1083 = vsyncpa [#allocation4], 1 }
 0x317   :  { %1085 = vsyncpa [#allocation4 + $0x1], 1 }
 0x318   :  { %1086 = vsyncpa [#allocation12], 1 }

</bundles_post_ra>
